<compile_context>
chip_gen: v5e
topology: v5e:2x2
jax: 0.10.0
libtpu: 0.0.40
codegen_flags: <defaults>
</compile_context>

<pallas_src>
import numpy as np
import jax
import jax.numpy as jnp
from jax import lax
from jax.experimental import pallas as pl
from jax.experimental.pallas import tpu as pltpu

# Small deterministic problem sizes (logical).
T, B, E, H, N_ITEMS = 8, 4, 32, 32, 50
# Hardware-friendly padded sizes: 128 lanes, 8 sublanes.
BP, EP, HP = 8, 128, 128
NP = 128            # padded item vocab (one-hot gather width); NP == HP so the
                    # same lane-broadcast of the ids serves both gather and mask
assert N_ITEMS <= NP


# ----------------------------------------------------------------------------
# Fused Pallas kernel: embedding gather + masked GRU + NARM attention.
# ----------------------------------------------------------------------------
def narm_kernel(seq_ref, emb_ref, wih_ref, whh_ref, bih_ref, bhhn_ref,
                a1_ref, a2_ref, vt_ref, out_ref, ig_scr, g_scr, mask_scr):
    """All refs live in VMEM (zero-padded, lane/sublane dense).

    seq_ref  : (T*BP, 1)    int32 item ids (0 = padding), time-major flattened
    emb_ref  : (NP, EP)     padded item-embedding table (row 0 == 0)
    wih_ref  : (EP, 3*HP)   fused input->hidden weights  [r | z | n]
    whh_ref  : (HP, 3*HP)   fused hidden->hidden weights [r | z | n]
    bih_ref  : (1, 3*HP)    b_ih with b_hh_{r,z} folded in
    bhhn_ref : (BP, HP)     b_hh_n, pre-broadcast over sublanes
    a1_ref   : (HP, HP)     a_1.weight.T
    a2_ref   : (HP, HP)     a_2.weight.T
    vt_ref   : (HP, HP)     v_t.weight.T replicated across all 128 lanes
    out_ref  : (BP, 2*HP)   [c_local | h_T]
    ig_scr   : (T*BP, 3*HP) VMEM scratch: hoisted input projections
    g_scr    : (T*BP, HP)   VMEM scratch: gru_out (masked hidden states)
    mask_scr : (T*BP, HP)   VMEM scratch: validity mask, lane-broadcast
    """
    # ---- fused embedding gather (one-hot MXU matmul) + mask, done once -----
    ids = jnp.broadcast_to(seq_ref[...], (T * BP, NP))          # one lane bcast
    onehot = (ids == lax.broadcasted_iota(jnp.int32, (T * BP, NP), 1)
              ).astype(jnp.float32)
    mask_scr[...] = (ids > 0).astype(jnp.float32)               # NP == HP

    x = jnp.dot(onehot, emb_ref[...], preferred_element_type=jnp.float32)
    # Hoisted input->hidden projection, spilled to VMEM (not held in vregs).
    ig_scr[...] = jnp.dot(x, wih_ref[...],
                          preferred_element_type=jnp.float32) + bih_ref[...]

    bhh_n = bhhn_ref[...]                                       # 1 vreg, loop-live

    # ---- masked single-layer GRU recurrence (pack_padded semantics) --------
    def step(t, h):
        off = pl.multiple_of(t * BP, BP)
        ig = ig_scr[pl.ds(off, BP), :]                          # (BP, 3HP)
        m = mask_scr[pl.ds(off, BP), :]                         # (BP, HP), no bcast
        hg = jnp.dot(h, whh_ref[...],                           # whh streams from VMEM
                     preferred_element_type=jnp.float32)
        r = jax.nn.sigmoid(ig[:, 0:HP] + hg[:, 0:HP])
        z = jax.nn.sigmoid(ig[:, HP:2 * HP] + hg[:, HP:2 * HP])
        n = jnp.tanh(ig[:, 2 * HP:3 * HP] + r * (hg[:, 2 * HP:3 * HP] + bhh_n))
        h_new = (1.0 - z) * n + z * h
        g_t = m * h_new                                         # padded steps -> 0
        g_scr[pl.ds(off, BP), :] = g_t
        return g_t + (1.0 - m) * h                              # freeze finished rows

    h = lax.fori_loop(0, T, step, jnp.zeros((BP, HP), jnp.float32),
                      unroll=True)

    # ---- NARM attention: flat 2-D MXU dots fed straight from scratch -------
    g = g_scr[...]
    m_full = mask_scr[...]
    q1 = jnp.dot(g, a1_ref[...], preferred_element_type=jnp.float32)
    q2 = jnp.dot(h, a2_ref[...], preferred_element_type=jnp.float32)
    s = jax.nn.sigmoid(q1.reshape(T, BP, HP)
                       + m_full.reshape(T, BP, HP) * q2[None, :, :])
    alpha = jnp.dot(s.reshape(T * BP, HP), vt_ref[...],         # lane-dense: every
                    preferred_element_type=jnp.float32)         # column identical
    weighted = alpha * g                                        # no lane broadcast
    cl = jnp.sum(weighted.reshape(T, BP, HP), axis=0)           # leading-axis reduce
    out_ref[:, 0:HP] = cl
    out_ref[:, HP:2 * HP] = h


# ----------------------------------------------------------------------------
# Wrapper
# ----------------------------------------------------------------------------
def _pad2(a, rows, cols):
    return jnp.pad(a, ((0, rows - a.shape[0]), (0, cols - a.shape[1])))


def prepare_kernel_params(params):
    """One-time weight fusion/padding into lane-dense layouts (outside kernel)."""
    wih = jnp.concatenate([_pad2(params["w_ih"][g], EP, HP) for g in range(3)], axis=1)
    whh = jnp.concatenate([_pad2(params["w_hh"][g], HP, HP) for g in range(3)], axis=1)
    # Bias fold: b_hh for the r/z gates commutes with the pre-sigmoid sum, so
    # fold it into b_ih once here; only b_hh_n must stay inside r*(...).
    bih = jnp.concatenate([
        _pad2(params["b_ih"][0] + params["b_hh"][0], 1, HP),
        _pad2(params["b_ih"][1] + params["b_hh"][1], 1, HP),
        _pad2(params["b_ih"][2], 1, HP)], axis=1)                 # (1, 3*HP)
    bhh_n = jnp.tile(_pad2(params["b_hh"][2], 1, HP), (BP, 1))    # (BP, HP)
    vt = jnp.tile(_pad2(params["v_t"], 1, HP).T, (1, HP))         # (HP, HP), cols equal
    emb = jnp.pad(params["emb"], ((0, NP - N_ITEMS), (0, EP - E)))  # (NP, EP)
    return dict(emb=emb, wih=wih, whh=whh, bih=bih, bhh_n=bhh_n,
                a1=_pad2(params["a1_T"], HP, HP),
                a2=_pad2(params["a2_T"], HP, HP), vt=vt)


def narm_forward(seq, kp):
    """seq: (T, B) int32.  Returns c_t: (B, 2H) float32."""
    seq_p = jnp.pad(seq, ((0, 0), (0, BP - B)))                   # pad batch with item 0
    seq_col = seq_p.reshape(T * BP, 1).astype(jnp.int32)          # 256 B, only per-call input

    vmem = pl.BlockSpec(memory_space=pltpu.MemorySpace.VMEM)
    out = pl.pallas_call(
        narm_kernel,
        out_shape=jax.ShapeDtypeStruct((BP, 2 * HP), jnp.float32),
        in_specs=[vmem] * 9,
        out_specs=vmem,
        scratch_shapes=[pltpu.VMEM((T * BP, 3 * HP), jnp.float32),   # i_gates
                        pltpu.VMEM((T * BP, HP), jnp.float32),       # gru_out
                        pltpu.VMEM((T * BP, HP), jnp.float32)],      # mask (lane-bcast)
    )(seq_col, kp["emb"], kp["wih"], kp["whh"], kp["bih"], kp["bhh_n"],
      kp["a1"], kp["a2"], kp["vt"])

    c_local = out[:B, 0:H]
    c_global = out[:B, HP:HP + H]
    return jnp.concatenate([c_local, c_global], axis=1)             # ct_dropout = identity


# ----------------------------------------------------------------------------
# Pure-JAX reference (mirrors the PyTorch forward, unpadded)
# ----------------------------------------------------------------------------
def narm_reference(seq, params):
    embs = params["emb"][seq]                          # (T, B, E)
    mask_tb = (seq > 0).astype(jnp.float32)            # (T, B)
    w_ih, w_hh = params["w_ih"], params["w_hh"]
    b_ih, b_hh = params["b_ih"], params["b_hh"]

    def step(h, xs):
        x_t, m_t = xs
        i_r = x_t @ w_ih[0] + b_ih[0]
        i_z = x_t @ w_ih[1] + b_ih[1]
        i_n = x_t @ w_ih[2] + b_ih[2]
        h_r = h @ w_hh[0] + b_hh[0]
        h_z = h @ w_hh[1] + b_hh[1]
        h_n = h @ w_hh[2] + b_hh[2]
        r = jax.nn.sigmoid(i_r + h_r)
        z = jax.nn.sigmoid(i_z + h_z)
        n = jnp.tanh(i_n + r * h_n)
        h_new = (1.0 - z) * n + z * h
        m = m_t[:, None]
        return m * h_new + (1.0 - m) * h, m * h_new

    h0 = jnp.zeros((B, H), jnp.float32)
    ht, gru_out = lax.scan(step, h0, (embs, mask_tb))

    q1 = jnp.einsum('tbh,hk->tbk', gru_out, params["a1_T"])
    q2 = ht @ params["a2_T"]
    q2_masked = mask_tb[:, :, None] * q2[None, :, :]
    s = jax.nn.sigmoid(q1 + q2_masked)
    alpha = jnp.sum(s * params["v_t"][None, :, :], axis=-1, keepdims=True)
    c_local = jnp.sum(alpha * gru_out, axis=0)
    return jnp.concatenate([c_local, ht], axis=1)


# ----------------------------------------------------------------------------
# Deterministic parameter init (matching module shapes; n_layers = 1)
# ----------------------------------------------------------------------------
def init_params(key):
    ks = jax.random.split(key, 8)
    k = 1.0 / np.sqrt(H)

    emb = jax.random.normal(ks[0], (N_ITEMS, E), jnp.float32)
    emb = emb.at[0].set(0.0)                               # padding_idx=0

    def u(kk, shape):
        return jax.random.uniform(kk, shape, jnp.float32, -k, k)

    # GRU: per-gate (r, z, n); stored pre-transposed for x @ W.
    w_ih = u(ks[1], (3, E, H))
    w_hh = u(ks[2], (3, H, H))
    b_ih = u(ks[3], (3, 1, H))
    b_hh = u(ks[4], (3, 1, H))

    a1_T = u(ks[5], (H, H))        # a_1.weight.T
    a2_T = u(ks[6], (H, H))        # a_2.weight.T
    v_t = u(ks[7], (1, H))         # v_t.weight

    return dict(emb=emb, w_ih=w_ih, w_hh=w_hh, b_ih=b_ih, b_hh=b_hh,
                a1_T=a1_T, a2_T=a2_T, v_t=v_t)


if __name__ == "__main__":
    key = jax.random.PRNGKey(0)
    pkey, skey = jax.random.split(key)
    params = init_params(pkey)
    kparams = prepare_kernel_params(params)

    # Padded session batch: lengths sorted descending (pack_padded_sequence).
    lengths = jnp.array([8, 6, 5, 3], dtype=jnp.int32)         # (B,)
    items = jax.random.randint(skey, (T, B), 1, N_ITEMS, jnp.int32)
    t_idx = jnp.arange(T)[:, None]
    seq = jnp.where(t_idx < lengths[None, :], items, 0)        # (T, B), 0 = pad

    c_t = jax.jit(narm_forward)(seq, kparams)
    c_t = jax.block_until_ready(c_t)

    c_t_ref = narm_reference(seq, params)
    assert c_t.shape == (B, 2 * H)
    np.testing.assert_allclose(np.asarray(c_t), np.asarray(c_t_ref),
                               rtol=1e-4, atol=1e-4)
    print("KERNEL_OK")
</pallas_src>

<mosaic_0001>
module attributes {stable_mosaic.version = 11 : i64} {
  func.func @narm_kernel(%arg0: memref<64x1xi32, #tpu.memory_space<vmem>>, %arg1: memref<128x128xf32, #tpu.memory_space<vmem>>, %arg2: memref<128x384xf32, #tpu.memory_space<vmem>>, %arg3: memref<128x384xf32, #tpu.memory_space<vmem>>, %arg4: memref<1x384xf32, #tpu.memory_space<vmem>>, %arg5: memref<8x128xf32, #tpu.memory_space<vmem>>, %arg6: memref<128x128xf32, #tpu.memory_space<vmem>>, %arg7: memref<128x128xf32, #tpu.memory_space<vmem>>, %arg8: memref<128x128xf32, #tpu.memory_space<vmem>>, %arg9: memref<8x256xf32, #tpu.memory_space<vmem>>, %arg10: memref<64x384xf32, #tpu.memory_space<vmem>>, %arg11: memref<64x128xf32, #tpu.memory_space<vmem>>, %arg12: memref<64x128xf32, #tpu.memory_space<vmem>>) attributes {dimension_semantics = [], scalar_prefetch = 0 : i64, scratch_operands = 3 : i64, tpu.core_type = #tpu.core_type<tc>} {
    %c0 = arith.constant 0 : index
    %c0_0 = arith.constant 0 : index
    %0 = vector.load %arg0[%c0, %c0_0] : memref<64x1xi32, #tpu.memory_space<vmem>>, vector<64x1xi32>
    %1 = vector.shape_cast %0 : vector<64x1xi32> to vector<64x1xi32>
    %2 = vector.broadcast %1 : vector<64x1xi32> to vector<64x128xi32>
    %3 = tpu.iota {dimensions = array<i32: 1>} : vector<64x128xi32>
    %4 = arith.cmpi eq, %2, %3 : vector<64x128xi32>
    %5 = arith.extui %4 : vector<64x128xi1> to vector<64x128xi32>
    %6 = arith.sitofp %5 : vector<64x128xi32> to vector<64x128xf32>
    %c0_i32 = arith.constant 0 : i32
    %7 = vector.broadcast %c0_i32 : i32 to vector<64x128xi32>
    %8 = arith.cmpi sgt, %2, %7 : vector<64x128xi32>
    %9 = arith.extui %8 : vector<64x128xi1> to vector<64x128xi32>
    %10 = arith.sitofp %9 : vector<64x128xi32> to vector<64x128xf32>
    %c0_1 = arith.constant 0 : index
    %c0_2 = arith.constant 0 : index
    %11 = vector.load %arg12[%c0_1, %c0_2] : memref<64x128xf32, #tpu.memory_space<vmem>>, vector<64x128xf32>
    tpu.vector_store %arg12[%c0_1, %c0_2], %10 {strides = array<i32>} : memref<64x128xf32, #tpu.memory_space<vmem>>, vector<64x128xf32>,
    %c0_3 = arith.constant 0 : index
    %c0_4 = arith.constant 0 : index
    %12 = vector.load %arg1[%c0_3, %c0_4] : memref<128x128xf32, #tpu.memory_space<vmem>>, vector<128x128xf32>
    %cst = arith.constant dense<0.000000e+00> : vector<64x128xf32>
    %13 = tpu.matmul %6, %12, %cst {dimension_numbers = #tpu.dot_dimension_numbers<[1], [0], [0], [1], [0, 0, 1, 1], [], []>} : vector<64x128xf32>, vector<128x128xf32>, vector<64x128xf32> -> vector<64x128xf32>
    %c0_5 = arith.constant 0 : index
    %c0_6 = arith.constant 0 : index
    %14 = vector.load %arg2[%c0_5, %c0_6] : memref<128x384xf32, #tpu.memory_space<vmem>>, vector<128x384xf32>
    %cst_7 = arith.constant dense<0.000000e+00> : vector<64x384xf32>
    %15 = tpu.matmul %13, %14, %cst_7 {dimension_numbers = #tpu.dot_dimension_numbers<[1], [0], [0], [1], [0, 0, 1, 1], [], []>} : vector<64x128xf32>, vector<128x384xf32>, vector<64x384xf32> -> vector<64x384xf32>
    %c0_8 = arith.constant 0 : index
    %c0_9 = arith.constant 0 : index
    %16 = vector.load %arg4[%c0_8, %c0_9] : memref<1x384xf32, #tpu.memory_space<vmem>>, vector<1x384xf32>
    %17 = vector.broadcast %16 : vector<1x384xf32> to vector<64x384xf32>
    %18 = arith.addf %15, %17 : vector<64x384xf32>
    %c0_10 = arith.constant 0 : index
    %c0_11 = arith.constant 0 : index
    %19 = vector.load %arg10[%c0_10, %c0_11] : memref<64x384xf32, #tpu.memory_space<vmem>>, vector<64x384xf32>
    tpu.vector_store %arg10[%c0_10, %c0_11], %18 {strides = array<i32>} : memref<64x384xf32, #tpu.memory_space<vmem>>, vector<64x384xf32>,
    %c0_12 = arith.constant 0 : index
    %c0_13 = arith.constant 0 : index
    %20 = vector.load %arg5[%c0_12, %c0_13] : memref<8x128xf32, #tpu.memory_space<vmem>>, vector<8x128xf32>
    %cst_14 = arith.constant 0.000000e+00 : f32
    %21 = vector.broadcast %cst_14 : f32 to vector<8x128xf32>
    %c0_i32_15 = arith.constant 0 : i32
    %c8_i32 = arith.constant 8 : i32
    %22 = arith.muli %c0_i32_15, %c8_i32 : i32
    %23 = tpu.assume_multiple %22, 8 : i32
    %24 = arith.index_cast %23 : i32 to index
    %c0_16 = arith.constant 0 : index
    %25 = vector.load %arg10[%24, %c0_16] : memref<64x384xf32, #tpu.memory_space<vmem>>, vector<8x384xf32>
    %26 = arith.index_cast %23 : i32 to index
    %c0_17 = arith.constant 0 : index
    %27 = vector.load %arg12[%26, %c0_17] : memref<64x128xf32, #tpu.memory_space<vmem>>, vector<8x128xf32>
    %c0_18 = arith.constant 0 : index
    %c0_19 = arith.constant 0 : index
    %28 = vector.load %arg3[%c0_18, %c0_19] : memref<128x384xf32, #tpu.memory_space<vmem>>, vector<128x384xf32>
    %cst_20 = arith.constant dense<0.000000e+00> : vector<8x384xf32>
    %29 = tpu.matmul %21, %28, %cst_20 {dimension_numbers = #tpu.dot_dimension_numbers<[1], [0], [0], [1], [0, 0, 1, 1], [], []>} : vector<8x128xf32>, vector<128x384xf32>, vector<8x384xf32> -> vector<8x384xf32>
    %30 = vector.extract_strided_slice %25 {offsets = [0, 0], sizes = [8, 128], strides = [1, 1]} : vector<8x384xf32> to vector<8x128xf32>
    %31 = vector.extract_strided_slice %29 {offsets = [0, 0], sizes = [8, 128], strides = [1, 1]} : vector<8x384xf32> to vector<8x128xf32>
    %32 = arith.addf %30, %31 : vector<8x128xf32>
    %33 = arith.negf %32 : vector<8x128xf32>
    %34 = math.exp %33 : vector<8x128xf32>
    %cst_21 = arith.constant 1.000000e+00 : f32
    %35 = vector.broadcast %cst_21 : f32 to vector<8x128xf32>
    %36 = arith.addf %35, %34 : vector<8x128xf32>
    %37 = arith.divf %35, %36 : vector<8x128xf32>
    %38 = vector.extract_strided_slice %25 {offsets = [0, 128], sizes = [8, 128], strides = [1, 1]} : vector<8x384xf32> to vector<8x128xf32>
    %39 = vector.extract_strided_slice %29 {offsets = [0, 128], sizes = [8, 128], strides = [1, 1]} : vector<8x384xf32> to vector<8x128xf32>
    %40 = arith.addf %38, %39 : vector<8x128xf32>
    %41 = arith.negf %40 : vector<8x128xf32>
    %42 = math.exp %41 : vector<8x128xf32>
    %cst_22 = arith.constant 1.000000e+00 : f32
    %43 = vector.broadcast %cst_22 : f32 to vector<8x128xf32>
    %44 = arith.addf %43, %42 : vector<8x128xf32>
    %45 = arith.divf %43, %44 : vector<8x128xf32>
    %46 = vector.extract_strided_slice %25 {offsets = [0, 256], sizes = [8, 128], strides = [1, 1]} : vector<8x384xf32> to vector<8x128xf32>
    %47 = vector.extract_strided_slice %29 {offsets = [0, 256], sizes = [8, 128], strides = [1, 1]} : vector<8x384xf32> to vector<8x128xf32>
    %48 = arith.addf %47, %20 : vector<8x128xf32>
    %49 = arith.mulf %37, %48 : vector<8x128xf32>
    %50 = arith.addf %46, %49 : vector<8x128xf32>
    %51 = math.tanh %50 : vector<8x128xf32>
    %cst_23 = arith.constant 1.000000e+00 : f32
    %52 = vector.broadcast %cst_23 : f32 to vector<8x128xf32>
    %53 = arith.subf %52, %45 : vector<8x128xf32>
    %54 = arith.mulf %53, %51 : vector<8x128xf32>
    %55 = arith.mulf %45, %21 : vector<8x128xf32>
    %56 = arith.addf %54, %55 : vector<8x128xf32>
    %57 = arith.mulf %27, %56 : vector<8x128xf32>
    %58 = arith.index_cast %23 : i32 to index
    %c0_24 = arith.constant 0 : index
    %59 = vector.load %arg11[%58, %c0_24] : memref<64x128xf32, #tpu.memory_space<vmem>>, vector<8x128xf32>
    tpu.vector_store %arg11[%58, %c0_24], %57 {strides = array<i32>} : memref<64x128xf32, #tpu.memory_space<vmem>>, vector<8x128xf32>,
    %cst_25 = arith.constant 1.000000e+00 : f32
    %60 = vector.broadcast %cst_25 : f32 to vector<8x128xf32>
    %61 = arith.subf %60, %27 : vector<8x128xf32>
    %62 = arith.mulf %61, %21 : vector<8x128xf32>
    %63 = arith.addf %57, %62 : vector<8x128xf32>
    %c1_i32 = arith.constant 1 : i32
    %c8_i32_26 = arith.constant 8 : i32
    %64 = arith.muli %c1_i32, %c8_i32_26 : i32
    %65 = tpu.assume_multiple %64, 8 : i32
    %66 = arith.index_cast %65 : i32 to index
    %c0_27 = arith.constant 0 : index
    %67 = vector.load %arg10[%66, %c0_27] : memref<64x384xf32, #tpu.memory_space<vmem>>, vector<8x384xf32>
    %68 = arith.index_cast %65 : i32 to index
    %c0_28 = arith.constant 0 : index
    %69 = vector.load %arg12[%68, %c0_28] : memref<64x128xf32, #tpu.memory_space<vmem>>, vector<8x128xf32>
    %c0_29 = arith.constant 0 : index
    %c0_30 = arith.constant 0 : index
    %70 = vector.load %arg3[%c0_29, %c0_30] : memref<128x384xf32, #tpu.memory_space<vmem>>, vector<128x384xf32>
    %cst_31 = arith.constant dense<0.000000e+00> : vector<8x384xf32>
    %71 = tpu.matmul %63, %70, %cst_31 {dimension_numbers = #tpu.dot_dimension_numbers<[1], [0], [0], [1], [0, 0, 1, 1], [], []>} : vector<8x128xf32>, vector<128x384xf32>, vector<8x384xf32> -> vector<8x384xf32>
    %72 = vector.extract_strided_slice %67 {offsets = [0, 0], sizes = [8, 128], strides = [1, 1]} : vector<8x384xf32> to vector<8x128xf32>
    %73 = vector.extract_strided_slice %71 {offsets = [0, 0], sizes = [8, 128], strides = [1, 1]} : vector<8x384xf32> to vector<8x128xf32>
    %74 = arith.addf %72, %73 : vector<8x128xf32>
    %75 = arith.negf %74 : vector<8x128xf32>
    %76 = math.exp %75 : vector<8x128xf32>
    %cst_32 = arith.constant 1.000000e+00 : f32
    %77 = vector.broadcast %cst_32 : f32 to vector<8x128xf32>
    %78 = arith.addf %77, %76 : vector<8x128xf32>
    %79 = arith.divf %77, %78 : vector<8x128xf32>
    %80 = vector.extract_strided_slice %67 {offsets = [0, 128], sizes = [8, 128], strides = [1, 1]} : vector<8x384xf32> to vector<8x128xf32>
    %81 = vector.extract_strided_slice %71 {offsets = [0, 128], sizes = [8, 128], strides = [1, 1]} : vector<8x384xf32> to vector<8x128xf32>
    %82 = arith.addf %80, %81 : vector<8x128xf32>
    %83 = arith.negf %82 : vector<8x128xf32>
    %84 = math.exp %83 : vector<8x128xf32>
    %cst_33 = arith.constant 1.000000e+00 : f32
    %85 = vector.broadcast %cst_33 : f32 to vector<8x128xf32>
    %86 = arith.addf %85, %84 : vector<8x128xf32>
    %87 = arith.divf %85, %86 : vector<8x128xf32>
    %88 = vector.extract_strided_slice %67 {offsets = [0, 256], sizes = [8, 128], strides = [1, 1]} : vector<8x384xf32> to vector<8x128xf32>
    %89 = vector.extract_strided_slice %71 {offsets = [0, 256], sizes = [8, 128], strides = [1, 1]} : vector<8x384xf32> to vector<8x128xf32>
    %90 = arith.addf %89, %20 : vector<8x128xf32>
    %91 = arith.mulf %79, %90 : vector<8x128xf32>
    %92 = arith.addf %88, %91 : vector<8x128xf32>
    %93 = math.tanh %92 : vector<8x128xf32>
    %cst_34 = arith.constant 1.000000e+00 : f32
    %94 = vector.broadcast %cst_34 : f32 to vector<8x128xf32>
    %95 = arith.subf %94, %87 : vector<8x128xf32>
    %96 = arith.mulf %95, %93 : vector<8x128xf32>
    %97 = arith.mulf %87, %63 : vector<8x128xf32>
    %98 = arith.addf %96, %97 : vector<8x128xf32>
    %99 = arith.mulf %69, %98 : vector<8x128xf32>
    %100 = arith.index_cast %65 : i32 to index
    %c0_35 = arith.constant 0 : index
    %101 = vector.load %arg11[%100, %c0_35] : memref<64x128xf32, #tpu.memory_space<vmem>>, vector<8x128xf32>
    tpu.vector_store %arg11[%100, %c0_35], %99 {strides = array<i32>} : memref<64x128xf32, #tpu.memory_space<vmem>>, vector<8x128xf32>,
    %cst_36 = arith.constant 1.000000e+00 : f32
    %102 = vector.broadcast %cst_36 : f32 to vector<8x128xf32>
    %103 = arith.subf %102, %69 : vector<8x128xf32>
    %104 = arith.mulf %103, %63 : vector<8x128xf32>
    %105 = arith.addf %99, %104 : vector<8x128xf32>
    %c2_i32 = arith.constant 2 : i32
    %c8_i32_37 = arith.constant 8 : i32
    %106 = arith.muli %c2_i32, %c8_i32_37 : i32
    %107 = tpu.assume_multiple %106, 8 : i32
    %108 = arith.index_cast %107 : i32 to index
    %c0_38 = arith.constant 0 : index
    %109 = vector.load %arg10[%108, %c0_38] : memref<64x384xf32, #tpu.memory_space<vmem>>, vector<8x384xf32>
    %110 = arith.index_cast %107 : i32 to index
    %c0_39 = arith.constant 0 : index
    %111 = vector.load %arg12[%110, %c0_39] : memref<64x128xf32, #tpu.memory_space<vmem>>, vector<8x128xf32>
    %c0_40 = arith.constant 0 : index
    %c0_41 = arith.constant 0 : index
    %112 = vector.load %arg3[%c0_40, %c0_41] : memref<128x384xf32, #tpu.memory_space<vmem>>, vector<128x384xf32>
    %cst_42 = arith.constant dense<0.000000e+00> : vector<8x384xf32>
    %113 = tpu.matmul %105, %112, %cst_42 {dimension_numbers = #tpu.dot_dimension_numbers<[1], [0], [0], [1], [0, 0, 1, 1], [], []>} : vector<8x128xf32>, vector<128x384xf32>, vector<8x384xf32> -> vector<8x384xf32>
    %114 = vector.extract_strided_slice %109 {offsets = [0, 0], sizes = [8, 128], strides = [1, 1]} : vector<8x384xf32> to vector<8x128xf32>
    %115 = vector.extract_strided_slice %113 {offsets = [0, 0], sizes = [8, 128], strides = [1, 1]} : vector<8x384xf32> to vector<8x128xf32>
    %116 = arith.addf %114, %115 : vector<8x128xf32>
    %117 = arith.negf %116 : vector<8x128xf32>
    %118 = math.exp %117 : vector<8x128xf32>
    %cst_43 = arith.constant 1.000000e+00 : f32
    %119 = vector.broadcast %cst_43 : f32 to vector<8x128xf32>
    %120 = arith.addf %119, %118 : vector<8x128xf32>
    %121 = arith.divf %119, %120 : vector<8x128xf32>
    %122 = vector.extract_strided_slice %109 {offsets = [0, 128], sizes = [8, 128], strides = [1, 1]} : vector<8x384xf32> to vector<8x128xf32>
    %123 = vector.extract_strided_slice %113 {offsets = [0, 128], sizes = [8, 128], strides = [1, 1]} : vector<8x384xf32> to vector<8x128xf32>
    %124 = arith.addf %122, %123 : vector<8x128xf32>
    %125 = arith.negf %124 : vector<8x128xf32>
    %126 = math.exp %125 : vector<8x128xf32>
    %cst_44 = arith.constant 1.000000e+00 : f32
    %127 = vector.broadcast %cst_44 : f32 to vector<8x128xf32>
    %128 = arith.addf %127, %126 : vector<8x128xf32>
    %129 = arith.divf %127, %128 : vector<8x128xf32>
    %130 = vector.extract_strided_slice %109 {offsets = [0, 256], sizes = [8, 128], strides = [1, 1]} : vector<8x384xf32> to vector<8x128xf32>
    %131 = vector.extract_strided_slice %113 {offsets = [0, 256], sizes = [8, 128], strides = [1, 1]} : vector<8x384xf32> to vector<8x128xf32>
    %132 = arith.addf %131, %20 : vector<8x128xf32>
    %133 = arith.mulf %121, %132 : vector<8x128xf32>
    %134 = arith.addf %130, %133 : vector<8x128xf32>
    %135 = math.tanh %134 : vector<8x128xf32>
    %cst_45 = arith.constant 1.000000e+00 : f32
    %136 = vector.broadcast %cst_45 : f32 to vector<8x128xf32>
    %137 = arith.subf %136, %129 : vector<8x128xf32>
    %138 = arith.mulf %137, %135 : vector<8x128xf32>
    %139 = arith.mulf %129, %105 : vector<8x128xf32>
    %140 = arith.addf %138, %139 : vector<8x128xf32>
    %141 = arith.mulf %111, %140 : vector<8x128xf32>
    %142 = arith.index_cast %107 : i32 to index
    %c0_46 = arith.constant 0 : index
    %143 = vector.load %arg11[%142, %c0_46] : memref<64x128xf32, #tpu.memory_space<vmem>>, vector<8x128xf32>
    tpu.vector_store %arg11[%142, %c0_46], %141 {strides = array<i32>} : memref<64x128xf32, #tpu.memory_space<vmem>>, vector<8x128xf32>,
    %cst_47 = arith.constant 1.000000e+00 : f32
    %144 = vector.broadcast %cst_47 : f32 to vector<8x128xf32>
    %145 = arith.subf %144, %111 : vector<8x128xf32>
    %146 = arith.mulf %145, %105 : vector<8x128xf32>
    %147 = arith.addf %141, %146 : vector<8x128xf32>
    %c3_i32 = arith.constant 3 : i32
    %c8_i32_48 = arith.constant 8 : i32
    %148 = arith.muli %c3_i32, %c8_i32_48 : i32
    %149 = tpu.assume_multiple %148, 8 : i32
    %150 = arith.index_cast %149 : i32 to index
    %c0_49 = arith.constant 0 : index
    %151 = vector.load %arg10[%150, %c0_49] : memref<64x384xf32, #tpu.memory_space<vmem>>, vector<8x384xf32>
    %152 = arith.index_cast %149 : i32 to index
    %c0_50 = arith.constant 0 : index
    %153 = vector.load %arg12[%152, %c0_50] : memref<64x128xf32, #tpu.memory_space<vmem>>, vector<8x128xf32>
    %c0_51 = arith.constant 0 : index
    %c0_52 = arith.constant 0 : index
    %154 = vector.load %arg3[%c0_51, %c0_52] : memref<128x384xf32, #tpu.memory_space<vmem>>, vector<128x384xf32>
    %cst_53 = arith.constant dense<0.000000e+00> : vector<8x384xf32>
    %155 = tpu.matmul %147, %154, %cst_53 {dimension_numbers = #tpu.dot_dimension_numbers<[1], [0], [0], [1], [0, 0, 1, 1], [], []>} : vector<8x128xf32>, vector<128x384xf32>, vector<8x384xf32> -> vector<8x384xf32>
    %156 = vector.extract_strided_slice %151 {offsets = [0, 0], sizes = [8, 128], strides = [1, 1]} : vector<8x384xf32> to vector<8x128xf32>
    %157 = vector.extract_strided_slice %155 {offsets = [0, 0], sizes = [8, 128], strides = [1, 1]} : vector<8x384xf32> to vector<8x128xf32>
    %158 = arith.addf %156, %157 : vector<8x128xf32>
    %159 = arith.negf %158 : vector<8x128xf32>
    %160 = math.exp %159 : vector<8x128xf32>
    %cst_54 = arith.constant 1.000000e+00 : f32
    %161 = vector.broadcast %cst_54 : f32 to vector<8x128xf32>
    %162 = arith.addf %161, %160 : vector<8x128xf32>
    %163 = arith.divf %161, %162 : vector<8x128xf32>
    %164 = vector.extract_strided_slice %151 {offsets = [0, 128], sizes = [8, 128], strides = [1, 1]} : vector<8x384xf32> to vector<8x128xf32>
    %165 = vector.extract_strided_slice %155 {offsets = [0, 128], sizes = [8, 128], strides = [1, 1]} : vector<8x384xf32> to vector<8x128xf32>
    %166 = arith.addf %164, %165 : vector<8x128xf32>
    %167 = arith.negf %166 : vector<8x128xf32>
    %168 = math.exp %167 : vector<8x128xf32>
    %cst_55 = arith.constant 1.000000e+00 : f32
    %169 = vector.broadcast %cst_55 : f32 to vector<8x128xf32>
    %170 = arith.addf %169, %168 : vector<8x128xf32>
    %171 = arith.divf %169, %170 : vector<8x128xf32>
    %172 = vector.extract_strided_slice %151 {offsets = [0, 256], sizes = [8, 128], strides = [1, 1]} : vector<8x384xf32> to vector<8x128xf32>
    %173 = vector.extract_strided_slice %155 {offsets = [0, 256], sizes = [8, 128], strides = [1, 1]} : vector<8x384xf32> to vector<8x128xf32>
    %174 = arith.addf %173, %20 : vector<8x128xf32>
    %175 = arith.mulf %163, %174 : vector<8x128xf32>
    %176 = arith.addf %172, %175 : vector<8x128xf32>
    %177 = math.tanh %176 : vector<8x128xf32>
    %cst_56 = arith.constant 1.000000e+00 : f32
    %178 = vector.broadcast %cst_56 : f32 to vector<8x128xf32>
    %179 = arith.subf %178, %171 : vector<8x128xf32>
    %180 = arith.mulf %179, %177 : vector<8x128xf32>
    %181 = arith.mulf %171, %147 : vector<8x128xf32>
    %182 = arith.addf %180, %181 : vector<8x128xf32>
    %183 = arith.mulf %153, %182 : vector<8x128xf32>
    %184 = arith.index_cast %149 : i32 to index
    %c0_57 = arith.constant 0 : index
    %185 = vector.load %arg11[%184, %c0_57] : memref<64x128xf32, #tpu.memory_space<vmem>>, vector<8x128xf32>
    tpu.vector_store %arg11[%184, %c0_57], %183 {strides = array<i32>} : memref<64x128xf32, #tpu.memory_space<vmem>>, vector<8x128xf32>,
    %cst_58 = arith.constant 1.000000e+00 : f32
    %186 = vector.broadcast %cst_58 : f32 to vector<8x128xf32>
    %187 = arith.subf %186, %153 : vector<8x128xf32>
    %188 = arith.mulf %187, %147 : vector<8x128xf32>
    %189 = arith.addf %183, %188 : vector<8x128xf32>
    %c4_i32 = arith.constant 4 : i32
    %c8_i32_59 = arith.constant 8 : i32
    %190 = arith.muli %c4_i32, %c8_i32_59 : i32
    %191 = tpu.assume_multiple %190, 8 : i32
    %192 = arith.index_cast %191 : i32 to index
    %c0_60 = arith.constant 0 : index
    %193 = vector.load %arg10[%192, %c0_60] : memref<64x384xf32, #tpu.memory_space<vmem>>, vector<8x384xf32>
    %194 = arith.index_cast %191 : i32 to index
    %c0_61 = arith.constant 0 : index
    %195 = vector.load %arg12[%194, %c0_61] : memref<64x128xf32, #tpu.memory_space<vmem>>, vector<8x128xf32>
    %c0_62 = arith.constant 0 : index
    %c0_63 = arith.constant 0 : index
    %196 = vector.load %arg3[%c0_62, %c0_63] : memref<128x384xf32, #tpu.memory_space<vmem>>, vector<128x384xf32>
    %cst_64 = arith.constant dense<0.000000e+00> : vector<8x384xf32>
    %197 = tpu.matmul %189, %196, %cst_64 {dimension_numbers = #tpu.dot_dimension_numbers<[1], [0], [0], [1], [0, 0, 1, 1], [], []>} : vector<8x128xf32>, vector<128x384xf32>, vector<8x384xf32> -> vector<8x384xf32>
    %198 = vector.extract_strided_slice %193 {offsets = [0, 0], sizes = [8, 128], strides = [1, 1]} : vector<8x384xf32> to vector<8x128xf32>
    %199 = vector.extract_strided_slice %197 {offsets = [0, 0], sizes = [8, 128], strides = [1, 1]} : vector<8x384xf32> to vector<8x128xf32>
    %200 = arith.addf %198, %199 : vector<8x128xf32>
    %201 = arith.negf %200 : vector<8x128xf32>
    %202 = math.exp %201 : vector<8x128xf32>
    %cst_65 = arith.constant 1.000000e+00 : f32
    %203 = vector.broadcast %cst_65 : f32 to vector<8x128xf32>
    %204 = arith.addf %203, %202 : vector<8x128xf32>
    %205 = arith.divf %203, %204 : vector<8x128xf32>
    %206 = vector.extract_strided_slice %193 {offsets = [0, 128], sizes = [8, 128], strides = [1, 1]} : vector<8x384xf32> to vector<8x128xf32>
    %207 = vector.extract_strided_slice %197 {offsets = [0, 128], sizes = [8, 128], strides = [1, 1]} : vector<8x384xf32> to vector<8x128xf32>
    %208 = arith.addf %206, %207 : vector<8x128xf32>
    %209 = arith.negf %208 : vector<8x128xf32>
    %210 = math.exp %209 : vector<8x128xf32>
    %cst_66 = arith.constant 1.000000e+00 : f32
    %211 = vector.broadcast %cst_66 : f32 to vector<8x128xf32>
    %212 = arith.addf %211, %210 : vector<8x128xf32>
    %213 = arith.divf %211, %212 : vector<8x128xf32>
    %214 = vector.extract_strided_slice %193 {offsets = [0, 256], sizes = [8, 128], strides = [1, 1]} : vector<8x384xf32> to vector<8x128xf32>
    %215 = vector.extract_strided_slice %197 {offsets = [0, 256], sizes = [8, 128], strides = [1, 1]} : vector<8x384xf32> to vector<8x128xf32>
    %216 = arith.addf %215, %20 : vector<8x128xf32>
    %217 = arith.mulf %205, %216 : vector<8x128xf32>
    %218 = arith.addf %214, %217 : vector<8x128xf32>
    %219 = math.tanh %218 : vector<8x128xf32>
    %cst_67 = arith.constant 1.000000e+00 : f32
    %220 = vector.broadcast %cst_67 : f32 to vector<8x128xf32>
    %221 = arith.subf %220, %213 : vector<8x128xf32>
    %222 = arith.mulf %221, %219 : vector<8x128xf32>
    %223 = arith.mulf %213, %189 : vector<8x128xf32>
    %224 = arith.addf %222, %223 : vector<8x128xf32>
    %225 = arith.mulf %195, %224 : vector<8x128xf32>
    %226 = arith.index_cast %191 : i32 to index
    %c0_68 = arith.constant 0 : index
    %227 = vector.load %arg11[%226, %c0_68] : memref<64x128xf32, #tpu.memory_space<vmem>>, vector<8x128xf32>
    tpu.vector_store %arg11[%226, %c0_68], %225 {strides = array<i32>} : memref<64x128xf32, #tpu.memory_space<vmem>>, vector<8x128xf32>,
    %cst_69 = arith.constant 1.000000e+00 : f32
    %228 = vector.broadcast %cst_69 : f32 to vector<8x128xf32>
    %229 = arith.subf %228, %195 : vector<8x128xf32>
    %230 = arith.mulf %229, %189 : vector<8x128xf32>
    %231 = arith.addf %225, %230 : vector<8x128xf32>
    %c5_i32 = arith.constant 5 : i32
    %c8_i32_70 = arith.constant 8 : i32
    %232 = arith.muli %c5_i32, %c8_i32_70 : i32
    %233 = tpu.assume_multiple %232, 8 : i32
    %234 = arith.index_cast %233 : i32 to index
    %c0_71 = arith.constant 0 : index
    %235 = vector.load %arg10[%234, %c0_71] : memref<64x384xf32, #tpu.memory_space<vmem>>, vector<8x384xf32>
    %236 = arith.index_cast %233 : i32 to index
    %c0_72 = arith.constant 0 : index
    %237 = vector.load %arg12[%236, %c0_72] : memref<64x128xf32, #tpu.memory_space<vmem>>, vector<8x128xf32>
    %c0_73 = arith.constant 0 : index
    %c0_74 = arith.constant 0 : index
    %238 = vector.load %arg3[%c0_73, %c0_74] : memref<128x384xf32, #tpu.memory_space<vmem>>, vector<128x384xf32>
    %cst_75 = arith.constant dense<0.000000e+00> : vector<8x384xf32>
    %239 = tpu.matmul %231, %238, %cst_75 {dimension_numbers = #tpu.dot_dimension_numbers<[1], [0], [0], [1], [0, 0, 1, 1], [], []>} : vector<8x128xf32>, vector<128x384xf32>, vector<8x384xf32> -> vector<8x384xf32>
    %240 = vector.extract_strided_slice %235 {offsets = [0, 0], sizes = [8, 128], strides = [1, 1]} : vector<8x384xf32> to vector<8x128xf32>
    %241 = vector.extract_strided_slice %239 {offsets = [0, 0], sizes = [8, 128], strides = [1, 1]} : vector<8x384xf32> to vector<8x128xf32>
    %242 = arith.addf %240, %241 : vector<8x128xf32>
    %243 = arith.negf %242 : vector<8x128xf32>
    %244 = math.exp %243 : vector<8x128xf32>
    %cst_76 = arith.constant 1.000000e+00 : f32
    %245 = vector.broadcast %cst_76 : f32 to vector<8x128xf32>
    %246 = arith.addf %245, %244 : vector<8x128xf32>
    %247 = arith.divf %245, %246 : vector<8x128xf32>
    %248 = vector.extract_strided_slice %235 {offsets = [0, 128], sizes = [8, 128], strides = [1, 1]} : vector<8x384xf32> to vector<8x128xf32>
    %249 = vector.extract_strided_slice %239 {offsets = [0, 128], sizes = [8, 128], strides = [1, 1]} : vector<8x384xf32> to vector<8x128xf32>
    %250 = arith.addf %248, %249 : vector<8x128xf32>
    %251 = arith.negf %250 : vector<8x128xf32>
    %252 = math.exp %251 : vector<8x128xf32>
    %cst_77 = arith.constant 1.000000e+00 : f32
    %253 = vector.broadcast %cst_77 : f32 to vector<8x128xf32>
    %254 = arith.addf %253, %252 : vector<8x128xf32>
    %255 = arith.divf %253, %254 : vector<8x128xf32>
    %256 = vector.extract_strided_slice %235 {offsets = [0, 256], sizes = [8, 128], strides = [1, 1]} : vector<8x384xf32> to vector<8x128xf32>
    %257 = vector.extract_strided_slice %239 {offsets = [0, 256], sizes = [8, 128], strides = [1, 1]} : vector<8x384xf32> to vector<8x128xf32>
    %258 = arith.addf %257, %20 : vector<8x128xf32>
    %259 = arith.mulf %247, %258 : vector<8x128xf32>
    %260 = arith.addf %256, %259 : vector<8x128xf32>
    %261 = math.tanh %260 : vector<8x128xf32>
    %cst_78 = arith.constant 1.000000e+00 : f32
    %262 = vector.broadcast %cst_78 : f32 to vector<8x128xf32>
    %263 = arith.subf %262, %255 : vector<8x128xf32>
    %264 = arith.mulf %263, %261 : vector<8x128xf32>
    %265 = arith.mulf %255, %231 : vector<8x128xf32>
    %266 = arith.addf %264, %265 : vector<8x128xf32>
    %267 = arith.mulf %237, %266 : vector<8x128xf32>
    %268 = arith.index_cast %233 : i32 to index
    %c0_79 = arith.constant 0 : index
    %269 = vector.load %arg11[%268, %c0_79] : memref<64x128xf32, #tpu.memory_space<vmem>>, vector<8x128xf32>
    tpu.vector_store %arg11[%268, %c0_79], %267 {strides = array<i32>} : memref<64x128xf32, #tpu.memory_space<vmem>>, vector<8x128xf32>,
    %cst_80 = arith.constant 1.000000e+00 : f32
    %270 = vector.broadcast %cst_80 : f32 to vector<8x128xf32>
    %271 = arith.subf %270, %237 : vector<8x128xf32>
    %272 = arith.mulf %271, %231 : vector<8x128xf32>
    %273 = arith.addf %267, %272 : vector<8x128xf32>
    %c6_i32 = arith.constant 6 : i32
    %c8_i32_81 = arith.constant 8 : i32
    %274 = arith.muli %c6_i32, %c8_i32_81 : i32
    %275 = tpu.assume_multiple %274, 8 : i32
    %276 = arith.index_cast %275 : i32 to index
    %c0_82 = arith.constant 0 : index
    %277 = vector.load %arg10[%276, %c0_82] : memref<64x384xf32, #tpu.memory_space<vmem>>, vector<8x384xf32>
    %278 = arith.index_cast %275 : i32 to index
    %c0_83 = arith.constant 0 : index
    %279 = vector.load %arg12[%278, %c0_83] : memref<64x128xf32, #tpu.memory_space<vmem>>, vector<8x128xf32>
    %c0_84 = arith.constant 0 : index
    %c0_85 = arith.constant 0 : index
    %280 = vector.load %arg3[%c0_84, %c0_85] : memref<128x384xf32, #tpu.memory_space<vmem>>, vector<128x384xf32>
    %cst_86 = arith.constant dense<0.000000e+00> : vector<8x384xf32>
    %281 = tpu.matmul %273, %280, %cst_86 {dimension_numbers = #tpu.dot_dimension_numbers<[1], [0], [0], [1], [0, 0, 1, 1], [], []>} : vector<8x128xf32>, vector<128x384xf32>, vector<8x384xf32> -> vector<8x384xf32>
    %282 = vector.extract_strided_slice %277 {offsets = [0, 0], sizes = [8, 128], strides = [1, 1]} : vector<8x384xf32> to vector<8x128xf32>
    %283 = vector.extract_strided_slice %281 {offsets = [0, 0], sizes = [8, 128], strides = [1, 1]} : vector<8x384xf32> to vector<8x128xf32>
    %284 = arith.addf %282, %283 : vector<8x128xf32>
    %285 = arith.negf %284 : vector<8x128xf32>
    %286 = math.exp %285 : vector<8x128xf32>
    %cst_87 = arith.constant 1.000000e+00 : f32
    %287 = vector.broadcast %cst_87 : f32 to vector<8x128xf32>
    %288 = arith.addf %287, %286 : vector<8x128xf32>
    %289 = arith.divf %287, %288 : vector<8x128xf32>
    %290 = vector.extract_strided_slice %277 {offsets = [0, 128], sizes = [8, 128], strides = [1, 1]} : vector<8x384xf32> to vector<8x128xf32>
    %291 = vector.extract_strided_slice %281 {offsets = [0, 128], sizes = [8, 128], strides = [1, 1]} : vector<8x384xf32> to vector<8x128xf32>
    %292 = arith.addf %290, %291 : vector<8x128xf32>
    %293 = arith.negf %292 : vector<8x128xf32>
    %294 = math.exp %293 : vector<8x128xf32>
    %cst_88 = arith.constant 1.000000e+00 : f32
    %295 = vector.broadcast %cst_88 : f32 to vector<8x128xf32>
    %296 = arith.addf %295, %294 : vector<8x128xf32>
    %297 = arith.divf %295, %296 : vector<8x128xf32>
    %298 = vector.extract_strided_slice %277 {offsets = [0, 256], sizes = [8, 128], strides = [1, 1]} : vector<8x384xf32> to vector<8x128xf32>
    %299 = vector.extract_strided_slice %281 {offsets = [0, 256], sizes = [8, 128], strides = [1, 1]} : vector<8x384xf32> to vector<8x128xf32>
    %300 = arith.addf %299, %20 : vector<8x128xf32>
    %301 = arith.mulf %289, %300 : vector<8x128xf32>
    %302 = arith.addf %298, %301 : vector<8x128xf32>
    %303 = math.tanh %302 : vector<8x128xf32>
    %cst_89 = arith.constant 1.000000e+00 : f32
    %304 = vector.broadcast %cst_89 : f32 to vector<8x128xf32>
    %305 = arith.subf %304, %297 : vector<8x128xf32>
    %306 = arith.mulf %305, %303 : vector<8x128xf32>
    %307 = arith.mulf %297, %273 : vector<8x128xf32>
    %308 = arith.addf %306, %307 : vector<8x128xf32>
    %309 = arith.mulf %279, %308 : vector<8x128xf32>
    %310 = arith.index_cast %275 : i32 to index
    %c0_90 = arith.constant 0 : index
    %311 = vector.load %arg11[%310, %c0_90] : memref<64x128xf32, #tpu.memory_space<vmem>>, vector<8x128xf32>
    tpu.vector_store %arg11[%310, %c0_90], %309 {strides = array<i32>} : memref<64x128xf32, #tpu.memory_space<vmem>>, vector<8x128xf32>,
    %cst_91 = arith.constant 1.000000e+00 : f32
    %312 = vector.broadcast %cst_91 : f32 to vector<8x128xf32>
    %313 = arith.subf %312, %279 : vector<8x128xf32>
    %314 = arith.mulf %313, %273 : vector<8x128xf32>
    %315 = arith.addf %309, %314 : vector<8x128xf32>
    %c7_i32 = arith.constant 7 : i32
    %c8_i32_92 = arith.constant 8 : i32
    %316 = arith.muli %c7_i32, %c8_i32_92 : i32
    %317 = tpu.assume_multiple %316, 8 : i32
    %318 = arith.index_cast %317 : i32 to index
    %c0_93 = arith.constant 0 : index
    %319 = vector.load %arg10[%318, %c0_93] : memref<64x384xf32, #tpu.memory_space<vmem>>, vector<8x384xf32>
    %320 = arith.index_cast %317 : i32 to index
    %c0_94 = arith.constant 0 : index
    %321 = vector.load %arg12[%320, %c0_94] : memref<64x128xf32, #tpu.memory_space<vmem>>, vector<8x128xf32>
    %c0_95 = arith.constant 0 : index
    %c0_96 = arith.constant 0 : index
    %322 = vector.load %arg3[%c0_95, %c0_96] : memref<128x384xf32, #tpu.memory_space<vmem>>, vector<128x384xf32>
    %cst_97 = arith.constant dense<0.000000e+00> : vector<8x384xf32>
    %323 = tpu.matmul %315, %322, %cst_97 {dimension_numbers = #tpu.dot_dimension_numbers<[1], [0], [0], [1], [0, 0, 1, 1], [], []>} : vector<8x128xf32>, vector<128x384xf32>, vector<8x384xf32> -> vector<8x384xf32>
    %324 = vector.extract_strided_slice %319 {offsets = [0, 0], sizes = [8, 128], strides = [1, 1]} : vector<8x384xf32> to vector<8x128xf32>
    %325 = vector.extract_strided_slice %323 {offsets = [0, 0], sizes = [8, 128], strides = [1, 1]} : vector<8x384xf32> to vector<8x128xf32>
    %326 = arith.addf %324, %325 : vector<8x128xf32>
    %327 = arith.negf %326 : vector<8x128xf32>
    %328 = math.exp %327 : vector<8x128xf32>
    %cst_98 = arith.constant 1.000000e+00 : f32
    %329 = vector.broadcast %cst_98 : f32 to vector<8x128xf32>
    %330 = arith.addf %329, %328 : vector<8x128xf32>
    %331 = arith.divf %329, %330 : vector<8x128xf32>
    %332 = vector.extract_strided_slice %319 {offsets = [0, 128], sizes = [8, 128], strides = [1, 1]} : vector<8x384xf32> to vector<8x128xf32>
    %333 = vector.extract_strided_slice %323 {offsets = [0, 128], sizes = [8, 128], strides = [1, 1]} : vector<8x384xf32> to vector<8x128xf32>
    %334 = arith.addf %332, %333 : vector<8x128xf32>
    %335 = arith.negf %334 : vector<8x128xf32>
    %336 = math.exp %335 : vector<8x128xf32>
    %cst_99 = arith.constant 1.000000e+00 : f32
    %337 = vector.broadcast %cst_99 : f32 to vector<8x128xf32>
    %338 = arith.addf %337, %336 : vector<8x128xf32>
    %339 = arith.divf %337, %338 : vector<8x128xf32>
    %340 = vector.extract_strided_slice %319 {offsets = [0, 256], sizes = [8, 128], strides = [1, 1]} : vector<8x384xf32> to vector<8x128xf32>
    %341 = vector.extract_strided_slice %323 {offsets = [0, 256], sizes = [8, 128], strides = [1, 1]} : vector<8x384xf32> to vector<8x128xf32>
    %342 = arith.addf %341, %20 : vector<8x128xf32>
    %343 = arith.mulf %331, %342 : vector<8x128xf32>
    %344 = arith.addf %340, %343 : vector<8x128xf32>
    %345 = math.tanh %344 : vector<8x128xf32>
    %cst_100 = arith.constant 1.000000e+00 : f32
    %346 = vector.broadcast %cst_100 : f32 to vector<8x128xf32>
    %347 = arith.subf %346, %339 : vector<8x128xf32>
    %348 = arith.mulf %347, %345 : vector<8x128xf32>
    %349 = arith.mulf %339, %315 : vector<8x128xf32>
    %350 = arith.addf %348, %349 : vector<8x128xf32>
    %351 = arith.mulf %321, %350 : vector<8x128xf32>
    %352 = arith.index_cast %317 : i32 to index
    %c0_101 = arith.constant 0 : index
    %353 = vector.load %arg11[%352, %c0_101] : memref<64x128xf32, #tpu.memory_space<vmem>>, vector<8x128xf32>
    tpu.vector_store %arg11[%352, %c0_101], %351 {strides = array<i32>} : memref<64x128xf32, #tpu.memory_space<vmem>>, vector<8x128xf32>,
    %cst_102 = arith.constant 1.000000e+00 : f32
    %354 = vector.broadcast %cst_102 : f32 to vector<8x128xf32>
    %355 = arith.subf %354, %321 : vector<8x128xf32>
    %356 = arith.mulf %355, %315 : vector<8x128xf32>
    %357 = arith.addf %351, %356 : vector<8x128xf32>
    %c8_i32_103 = arith.constant 8 : i32
    %c0_104 = arith.constant 0 : index
    %c0_105 = arith.constant 0 : index
    %358 = vector.load %arg11[%c0_104, %c0_105] : memref<64x128xf32, #tpu.memory_space<vmem>>, vector<64x128xf32>
    %c0_106 = arith.constant 0 : index
    %c0_107 = arith.constant 0 : index
    %359 = vector.load %arg12[%c0_106, %c0_107] : memref<64x128xf32, #tpu.memory_space<vmem>>, vector<64x128xf32>
    %c0_108 = arith.constant 0 : index
    %c0_109 = arith.constant 0 : index
    %360 = vector.load %arg6[%c0_108, %c0_109] : memref<128x128xf32, #tpu.memory_space<vmem>>, vector<128x128xf32>
    %cst_110 = arith.constant dense<0.000000e+00> : vector<64x128xf32>
    %361 = tpu.matmul %358, %360, %cst_110 {dimension_numbers = #tpu.dot_dimension_numbers<[1], [0], [0], [1], [0, 0, 1, 1], [], []>} : vector<64x128xf32>, vector<128x128xf32>, vector<64x128xf32> -> vector<64x128xf32>
    %c0_111 = arith.constant 0 : index
    %c0_112 = arith.constant 0 : index
    %362 = vector.load %arg7[%c0_111, %c0_112] : memref<128x128xf32, #tpu.memory_space<vmem>>, vector<128x128xf32>
    %cst_113 = arith.constant dense<0.000000e+00> : vector<8x128xf32>
    %363 = tpu.matmul %357, %362, %cst_113 {dimension_numbers = #tpu.dot_dimension_numbers<[1], [0], [0], [1], [0, 0, 1, 1], [], []>} : vector<8x128xf32>, vector<128x128xf32>, vector<8x128xf32> -> vector<8x128xf32>
    %364 = vector.shape_cast %361 : vector<64x128xf32> to vector<8x8x128xf32>
    %365 = vector.shape_cast %359 : vector<64x128xf32> to vector<8x8x128xf32>
    %366 = vector.shape_cast %363 : vector<8x128xf32> to vector<1x8x128xf32>
    %367 = vector.broadcast %366 : vector<1x8x128xf32> to vector<8x8x128xf32>
    %368 = arith.mulf %365, %367 : vector<8x8x128xf32>
    %369 = arith.addf %364, %368 : vector<8x8x128xf32>
    %370 = arith.negf %369 : vector<8x8x128xf32>
    %371 = math.exp %370 : vector<8x8x128xf32>
    %cst_114 = arith.constant 1.000000e+00 : f32
    %372 = vector.broadcast %cst_114 : f32 to vector<8x8x128xf32>
    %373 = arith.addf %372, %371 : vector<8x8x128xf32>
    %374 = arith.divf %372, %373 : vector<8x8x128xf32>
    %375 = vector.shape_cast %374 : vector<8x8x128xf32> to vector<64x128xf32>
    %c0_115 = arith.constant 0 : index
    %c0_116 = arith.constant 0 : index
    %376 = vector.load %arg8[%c0_115, %c0_116] : memref<128x128xf32, #tpu.memory_space<vmem>>, vector<128x128xf32>
    %cst_117 = arith.constant dense<0.000000e+00> : vector<64x128xf32>
    %377 = tpu.matmul %375, %376, %cst_117 {dimension_numbers = #tpu.dot_dimension_numbers<[1], [0], [0], [1], [0, 0, 1, 1], [], []>} : vector<64x128xf32>, vector<128x128xf32>, vector<64x128xf32> -> vector<64x128xf32>
    %378 = arith.mulf %377, %358 : vector<64x128xf32>
    %379 = vector.shape_cast %378 : vector<64x128xf32> to vector<8x8x128xf32>
    %cst_118 = arith.constant dense<0.000000e+00> : vector<8x128xf32>
    %380 = vector.multi_reduction <add>, %379, %cst_118 [0] : vector<8x8x128xf32> to vector<8x128xf32>
    %c0_119 = arith.constant 0 : index
    %c0_120 = arith.constant 0 : index
    %381 = vector.load %arg9[%c0_119, %c0_120] : memref<8x256xf32, #tpu.memory_space<vmem>>, vector<8x128xf32>
    tpu.vector_store %arg9[%c0_119, %c0_120], %380 {strides = array<i32>} : memref<8x256xf32, #tpu.memory_space<vmem>>, vector<8x128xf32>,
    %c0_121 = arith.constant 0 : index
    %c128 = arith.constant 128 : index
    %382 = vector.load %arg9[%c0_121, %c128] : memref<8x256xf32, #tpu.memory_space<vmem>>, vector<8x128xf32>
    tpu.vector_store %arg9[%c0_121, %c128], %357 {strides = array<i32>} : memref<8x256xf32, #tpu.memory_space<vmem>>, vector<8x128xf32>,
    return
  }
}

</mosaic_0001>

<bundles_post_ra>
// kernel: narm_forward.1
= control target key start
LH: loop header
LB: loop body
LE: loop exit
PB: predicated region body
PF: predicated region fallthrough
CT: control target
= control target key end

     0   :  { %14 = vsyncpa [#allocation6], 0  ;;  %s3562_s0 = inlined_call_operand.vmem [shape: s32[64,1], index: 0, kind: input, shape index: {}]   ;;  %s3563_s1 = inlined_call_operand.hbm [shape: f32[128,128], index: 1, kind: input, shape index: {}]   ;;  %s3564_s2 = inlined_call_operand.hbm [shape: f32[128,384], index: 2, kind: input, shape index: {}]   ;;  %s3565_s3 = inlined_call_operand.hbm [shape: f32[128,384], index: 3, kind: input, shape index: {}]   ;;  %s3566_s4 = inlined_call_operand.vmem [shape: f32[1,384], index: 4, kind: input, shape index: {}]   ;;  %s3567_s5 = inlined_call_operand.vmem [shape: f32[8,128], index: 5, kind: input, shape index: {}]   ;;  %s3568_s6 = inlined_call_operand.hbm [shape: f32[128,128], index: 6, kind: input, shape index: {}]   ;;  %s3569_s7 = inlined_call_operand.hbm [shape: f32[128,128], index: 7, kind: input, shape index: {}]   ;;  %s3570_s8 = inlined_call_operand.hbm [shape: f32[128,128], index: 8, kind: input, shape index: {}]   ;;  %s3571_s9 = inlined_call_operand.vmem [shape: f32[8,256], index: 9, kind: output, shape index: {}]  }
   0x1   :  { %15 = vsyncpa [#allocation8], 0 }
   0x2   :  { %16 = vsyncpa [#allocation11], 0  ;;  %s37_s11 = sshll.u32 %s3564_s2, 4  ;;  %s38_s11 = int_to_ptr.hbm [resolvable:$true] %s37_s11 }
   0x3   :  { %17 = vsyncpa [#allocation14], 0  ;;  %s2562_s12 = smov [#allocation7]   ;;  %s2563_s14 = smov 384  }
   0x4   :  { %s39_s13 = sshll.u32 %s2562_s12, 4  ;;  %s2564_s15 = smov 24   ;;  %s40_s13 = int_to_ptr.vmem [resolvable:$true] %s39_s13 }
   0x5   :  { %45 = dma.hbm_to_vmem [thread:$0]  %s38_s11, 6144, %s40_s13, [#allocation8], %s2563_s14, %s2563_s14, %s2564_s15  }
   0x6   :  { %s67_s18 = sshll.u32 %s3568_s6, 4  ;;  %s2565_s19 = smov [#allocation10]   ;;  %s68_s18 = int_to_ptr.hbm [resolvable:$true] %s67_s18 }
   0x7   :  { %s69_s20 = sshll.u32 %s2565_s19, 4  ;;  %s24_s23 = sshll.u32 %s3563_s1, 4  ;;  %s70_s20 = int_to_ptr.vmem [resolvable:$true] %s69_s20  ;;  %s25_s23 = int_to_ptr.hbm [resolvable:$true] %s24_s23 }
   0x8   :  { %s2566_s2 = smov 128   ;;  %s2567_s24 = smov 8  }
   0x9   :  { %75 = dma.hbm_to_vmem [thread:$0]  %s68_s18, 2048, %s70_s20, [#allocation11], %s2566_s2, %s2566_s2, %s2567_s24  }
   0xa   :  { %s50_s27 = sshll.u32 %s3565_s3, 4  ;;  %s2568_s28 = smov [#allocation5]   ;;  %s51_s27 = int_to_ptr.hbm [resolvable:$true] %s50_s27 }
   0xb   :  { %s26_s29 = sshll.u32 %s2568_s28, 4  ;;  %s2569_s6 = smov [#allocation9]   ;;  %s27_s29 = int_to_ptr.vmem [resolvable:$true] %s26_s29 }
   0xc   :  { %32 = dma.hbm_to_vmem [thread:$0]  %s25_s23, 2048, %s27_s29, [#allocation6], %s2566_s2, %s2566_s2, %s2567_s24  }
   0xd   :  { %s52_s30 = sshll.u32 %s2569_s6, 4  ;;  %s80_s1 = sshll.u32 %s3569_s7, 4  ;;  %s53_s30 = int_to_ptr.vmem [resolvable:$true] %s52_s30  ;;  %s81_s1 = int_to_ptr.hbm [resolvable:$true] %s80_s1 }
   0xe   :  { %58 = dma.hbm_to_vmem [thread:$0]  %s51_s27, 6144, %s53_s30, [#allocation8], %s2563_s14, %s2563_s14, %s2564_s15  }
   0xf   :  { %s93_s16 = sshll.u32 %s3570_s8, 4  ;;  %s2570_s17 = smov [#allocation12]   ;;  %s94_s16 = int_to_ptr.hbm [resolvable:$true] %s93_s16 }
  0x10   :  { %s82_s3 = sshll.u32 %s2570_s17, 4  ;;  %s2571_s18 = smov [#allocation13]   ;;  %s83_s3 = int_to_ptr.vmem [resolvable:$true] %s82_s3 }
  0x11   :  { %88 = dma.hbm_to_vmem [thread:$0]  %s81_s1, 2048, %s83_s3, [#allocation11], %s2566_s2, %s2566_s2, %s2567_s24  }
  0x12   :  { %s95_s19 = sshll.u32 %s2571_s18, 4  ;;  %s96_s19 = int_to_ptr.vmem [resolvable:$true] %s95_s19 }
  0x13   :  { %101 = dma.hbm_to_vmem [thread:$0]  %s94_s16, 2048, %s96_s19, [#allocation14], %s2566_s2, %s2566_s2, %s2567_s24  }
  0x14   :  { %2554 = dma.done.wait [#allocation6], 2048  }
  0x15   :  { %2555 = vsyncadd [#allocation6], 4294965248 }
  0x16   :  { %2556 = dma.done.wait [#allocation8], 12288  }
  0x17   :  { %2557 = vsyncadd [#allocation8], 4294955008 }
  0x18   :  { %2558 = dma.done.wait [#allocation11], 4096  }
  0x19   :  { %2559 = vsyncadd [#allocation11], 4294963200 }
  0x1a   :  { %2560 = dma.done.wait [#allocation14], 2048  }
  0x1b   :  { %2561 = vsyncadd [#allocation14], 4294965248  ;;  %v2572_v0 = vmov 0   ;;  %v128_v1 = vld [vmem:[%s3562_s0 + $0x10] sm:$0xff]  ;;  %v126_v2 = vld [vmem:[%s3562_s0] sm:$0xff]  ;;  %v158_v25 = vlaneseq  ;;  %v2573_v28 = vmov 1.0  }
  0x1c   :  { %2295 = vset.pattern.permute.xlu1 %v2572_v0  ;;  %2294 = vset.pattern.permute.xlu0 %v2572_v0  ;;  %v130_v3 = vld [vmem:[%s3562_s0 + $0x20] sm:$0xff]  ;;  %v231_v4 = vld [vmem:[#allocation5 + $0x78] sm:$0xff]  ;;  %v230_v5 = vld [vmem:[#allocation5 + $0x70] sm:$0xff] }
  0x1d   :  { %2296 = vset.pattern.permute.xlu2 %v2572_v0  ;;  %141 = vperm.xlu1 %2295, %v128_v1   ;;  %v229_v6 = vld [vmem:[#allocation5 + $0x68] sm:$0xff]  ;;  %v129_v7 = vld [vmem:[%s3562_s0 + $0x18] sm:$0xff]  ;;  %v228_v9 = vld [vmem:[#allocation5 + $0x60] sm:$0xff]  ;;  %v2667_v26 = vand.u32 127, %v158_v25 }
  0x1e   :  { %135 = vperm.xlu0 %2294, %v126_v2   ;;  %147 = vperm.xlu2 %2296, %v130_v3   ;;  %v127_v8 = vld [vmem:[%s3562_s0 + $0x8] sm:$0xff]  ;;  %v227_v11 = vld [vmem:[#allocation5 + $0x58] sm:$0xff]  ;;  %v226_v12 = vld [vmem:[#allocation5 + $0x50] sm:$0xff] }
  0x1f   :  { %232 = vmatpush.msra.mxu0 %v231_v4  ;;  %2249 = vmatpush.msra.mxu3 %v231_v4  ;;  %v131_v10 = vld [vmem:[%s3562_s0 + $0x28] sm:$0xff]  ;;  %v133_v14 = vld [vmem:[%s3562_s0 + $0x38] sm:$0xff]  ;;  %v132_v15 = vld [vmem:[%s3562_s0 + $0x30] sm:$0xff] }
  0x20   :  { %v225_v13 = vld [vmem:[#allocation5 + $0x48] sm:$0xff]  ;;  %v224_v16 = vld [vmem:[#allocation5 + $0x40] sm:$0xff]  ;;  %v223_v17 = vld [vmem:[#allocation5 + $0x38] sm:$0xff] }
  0x21   :  { %233 = vmatpush.msra.mxu0 %v230_v5  ;;  %2250 = vmatpush.msra.mxu3 %v230_v5  ;;  %v222_v18 = vld [vmem:[#allocation5 + $0x30] sm:$0xff]  ;;  %v221_v19 = vld [vmem:[#allocation5 + $0x28] sm:$0xff]  ;;  %v220_v20 = vld [vmem:[#allocation5 + $0x20] sm:$0xff] }
  0x22   :  { %v219_v21 = vld [vmem:[#allocation5 + $0x18] sm:$0xff]  ;;  %v218_v22 = vld [vmem:[#allocation5 + $0x10] sm:$0xff]  ;;  %v217_v23 = vld [vmem:[#allocation5 + $0x8] sm:$0xff] }
  0x23   :  { %234 = vmatpush.msra.mxu0 %v229_v6  ;;  %2251 = vmatpush.msra.mxu3 %v229_v6  ;;  %v216_v24 = vld [vmem:[#allocation5] sm:$0xff]  ;;  %v318_v30 = vld [vmem:[#allocation7 + $0x168] sm:$0xff]  ;;  %v320_v31 = vld [vmem:[#allocation7 + $0x178] sm:$0xff] }
  0x24   :  { %v315_v32 = vld [vmem:[#allocation7 + $0x150] sm:$0xff]  ;;  %329 = vmatpush.msra.mxu1 %v318_v30  ;;  %v317_v33 = vld [vmem:[#allocation7 + $0x160] sm:$0xff]  ;;  %v2679_v34 = vld [vmem:[#allocation9 + $0x168] sm:$0xff] }
  0x25   :  { %144 = vperm.xlu1 %2295, %v129_v7   ;;  %235 = vmatpush.msra.mxu0 %v228_v9  ;;  %v312_v35 = vld [vmem:[#allocation7 + $0x138] sm:$0xff]  ;;  %v314_v36 = vld [vmem:[#allocation7 + $0x148] sm:$0xff]  ;;  %v2682_v37 = vld [vmem:[#allocation9 + $0x150] sm:$0xff] }
  0x26   :  { %138 = vperm.xlu0 %2294, %v127_v8   ;;  %2252 = vmatpush.msra.mxu3 %v228_v9  ;;  %v2684_v38 = vld [vmem:[#allocation7 + $0x170] sm:$0xff]  ;;  %v2686_v39 = vld [vmem:[#allocation9 + $0x138] sm:$0xff]  ;;  %v309_v40 = vld [vmem:[#allocation7 + $0x120] sm:$0xff] }
  0x27   :  { %150 = vperm.xlu2 %2296, %v131_v10   ;;  %236 = vmatpush.msra.mxu0 %v227_v11  ;;  %v311_v41 = vld [vmem:[#allocation7 + $0x130] sm:$0xff]  ;;  %v2690_v42 = vld [vmem:[#allocation7 + $0x158] sm:$0xff]  ;;  %v2692_v43 = vld [vmem:[#allocation7 + $0x140] sm:$0xff] }
  0x28   :  { %2253 = vmatpush.msra.mxu3 %v227_v11  ;;  %330 = vmatpush.msra.mxu1 %v315_v32  ;;  %v306_v45 = vld [vmem:[#allocation7 + $0x108] sm:$0xff]  ;;  %v308_v46 = vld [vmem:[#allocation7 + $0x118] sm:$0xff]  ;;  %v2700_v47 = vld [vmem:[#allocation9 + $0x120] sm:$0xff] }
  0x29   :  { %237 = vmatpush.msra.mxu0 %v226_v12  ;;  %2265 = vmatpush.msra.mxu2 %v2684_v38  ;;  %v2702_v48 = vld [vmem:[#allocation7 + $0x128] sm:$0xff]  ;;  %v303_v50 = vld [vmem:[#allocation7 + $0xf0] sm:$0xff]  ;;  %v305_v51 = vld [vmem:[#allocation7 + $0x100] sm:$0xff] }
  0x2a   :  { %2254 = vmatpush.msra.mxu3 %v226_v12  ;;  %331 = vmatpush.msra.mxu1 %v312_v35  ;;  %v2708_v52 = vld [vmem:[#allocation9 + $0x108] sm:$0xff]  ;;  %v2710_v53 = vld [vmem:[#allocation7 + $0x110] sm:$0xff]  ;;  %v300_v54 = vld [vmem:[#allocation7 + $0xd8] sm:$0xff] }
  0x2b   :  { %238 = vmatpush.msra.mxu0 %v225_v13  ;;  %2266 = vmatpush.msra.mxu2 %v2690_v42  ;;  %v302_v55 = vld [vmem:[#allocation7 + $0xe8] sm:$0xff]  ;;  %v2714_v56 = vld [vmem:[#allocation9 + $0xf0] sm:$0xff]  ;;  %v2716_v57 = vld [vmem:[#allocation7 + $0xf8] sm:$0xff] }
  0x2c   :  { %2255 = vmatpush.msra.mxu3 %v225_v13  ;;  %332 = vmatpush.msra.mxu1 %v309_v40  ;;  %v297_v58 = vld [vmem:[#allocation7 + $0xc0] sm:$0xff]  ;;  %v299_v59 = vld [vmem:[#allocation7 + $0xd0] sm:$0xff]  ;;  %v2725_v62 = vld [vmem:[#allocation9 + $0xd8] sm:$0xff] }
  0x2d   :  { %156 = vperm.xlu1 %2295, %v133_v14   ;;  %239 = vmatpush.msra.mxu0 %v224_v16  ;;  %v2720_v60 = vld [vmem:[#allocation7 + $0xe0] sm:$0xff]  ;;  %v294_v63 = vld [vmem:[#allocation7 + $0xa8] sm:$0xff]  ;;  %v296_v0 = vld [vmem:[#allocation7 + $0xb8] sm:$0xff] }
  0x2e   :  { %153 = vperm.xlu0 %2294, %v132_v15   ;;  %2256 = vmatpush.msra.mxu3 %v224_v16  ;;  %v2730_v1 = vld [vmem:[#allocation7 + $0xc8] sm:$0xff]  ;;  %v2733_v2 = vld [vmem:[#allocation9 + $0xc0] sm:$0xff]  ;;  %v291_v3 = vld [vmem:[#allocation7 + $0x90] sm:$0xff] }
  0x2f   :  { %240 = vmatpush.msra.mxu0 %v223_v17  ;;  %2267 = vmatpush.msra.mxu2 %v2692_v43  ;;  %v293_v4 = vld [vmem:[#allocation7 + $0xa0] sm:$0xff]  ;;  %v2737_v5 = vld [vmem:[#allocation7 + $0xb0] sm:$0xff]  ;;  %v2741_v7 = vld [vmem:[#allocation9 + $0xa8] sm:$0xff] }
  0x30   :  { %2257 = vmatpush.msra.mxu3 %v223_v17  ;;  %333 = vmatpush.msra.mxu1 %v306_v45  ;;  %v288_v8 = vld [vmem:[#allocation7 + $0x78] sm:$0xff]  ;;  %v290_v9 = vld [vmem:[#allocation7 + $0x88] sm:$0xff]  ;;  %v2747_v11 = vld [vmem:[#allocation9 + $0x90] sm:$0xff]  ;;  %v3572_v45 = vmov 0.0  }
  0x31   :  { %241 = vmatpush.msra.mxu0 %v222_v18  ;;  %2268 = vmatpush.msra.mxu2 %v2702_v48  ;;  %v2745_v10 = vld [vmem:[#allocation7 + $0x98] sm:$0xff]  ;;  %v285_v12 = vld [vmem:[#allocation7 + $0x60] sm:$0xff]  ;;  %v287_v14 = vld [vmem:[#allocation7 + $0x70] sm:$0xff] }
  0x32   :  { %2258 = vmatpush.msra.mxu3 %v222_v18  ;;  %334 = vmatpush.msra.mxu1 %v303_v50  ;;  %v2755_v15 = vld [vmem:[#allocation9 + $0x78] sm:$0xff]  ;;  %v282_v16 = vld [vmem:[#allocation7 + $0x48] sm:$0xff]  ;;  %v2761_v17 = vld [vmem:[#allocation7 + $0x80] sm:$0xff] }
  0x33   :  { %242 = vmatpush.msra.mxu0 %v221_v19  ;;  %2269 = vmatpush.msra.mxu2 %v2710_v53  ;;  %v284_v18 = vld [vmem:[#allocation7 + $0x58] sm:$0xff]  ;;  %v278_v30 = vld [vmem:[#allocation7 + $0x28] sm:$0xff]  ;;  %v273_v32 = vld [vmem:[#allocation7] sm:$0xff] }
  0x34   :  { %2259 = vmatpush.msra.mxu3 %v221_v19  ;;  %335 = vmatpush.msra.mxu1 %v300_v54  ;;  %v2765_v19 = vld [vmem:[#allocation9 + $0x60] sm:$0xff]  ;;  %v275_v35 = vld [vmem:[#allocation7 + $0x10] sm:$0xff]  ;;  %v2814_v50 = vld [vmem:[#allocation9 + $0x148] sm:$0xff] }
  0x35   :  { %243 = vmatpush.msra.mxu0 %v220_v20  ;;  %2270 = vmatpush.msra.mxu2 %v2716_v57  ;;  %v2793_v40 = vld [vmem:[#allocation9] sm:$0xff]  ;;  %v2845_v54 = vld [vmem:[#allocation9 + $0xd0] sm:$0xff] }
  0x36   :  { %2260 = vmatpush.msra.mxu3 %v220_v20  ;;  %336 = vmatpush.msra.mxu1 %v297_v58  ;;  %v279_v20 = vld [vmem:[#allocation7 + $0x30] sm:$0xff]  ;;  %v2858_v58 = vld [vmem:[#allocation9 + $0xa0] sm:$0xff] }
  0x37   :  { %244 = vmatpush.msra.mxu0 %v219_v21  ;;  %2271 = vmatpush.msra.mxu2 %v2720_v60 }
  0x38   :  { %2261 = vmatpush.msra.mxu3 %v219_v21  ;;  %337 = vmatpush.msra.mxu1 %v294_v63  ;;  %v2768_v21 = vld [vmem:[#allocation7 + $0x68] sm:$0xff]  ;;  %v2872_v63 = vld [vmem:[#allocation9 + $0x58] sm:$0xff] }
  0x39   :  { %245 = vmatpush.msra.mxu0 %v218_v22  ;;  %2272 = vmatpush.msra.mxu2 %v2730_v1 }
  0x3a   :  { %2262 = vmatpush.msra.mxu3 %v218_v22  ;;  %338 = vmatpush.msra.mxu1 %v291_v3  ;;  %v281_v22 = vld [vmem:[#allocation7 + $0x40] sm:$0xff]  ;;  %v2883_v3 = vld [vmem:[#allocation9 + $0x28] sm:$0xff] }
  0x3b   :  { %246 = vmatpush.msra.mxu0 %v217_v23  ;;  %2273 = vmatpush.msra.mxu2 %v2737_v5 }
  0x3c   :  { %2263 = vmatpush.msra.mxu3 %v217_v23  ;;  %339 = vmatpush.msra.mxu1 %v288_v8  ;;  %v2771_v23 = vld [vmem:[#allocation9 + $0x48] sm:$0xff] }
  0x3d   :  { %247 = vmatpush.msra.mxu0 %v216_v24  ;;  %2274 = vmatpush.msra.mxu2 %v2745_v10 }
  0x3e   :  { %2264 = vmatpush.msra.mxu3 %v216_v24  ;;  %340 = vmatpush.msra.mxu1 %v285_v12  ;;  %v276_v24 = vld [vmem:[#allocation7 + $0x18] sm:$0xff] }
  0x3f   :  { %532 = vmatpush.msrb.mxu0 %v2679_v34  ;;  %2275 = vmatpush.msra.mxu2 %v2761_v17  ;;  %v503_v12 = vld [vmem:[#allocation9 + $0x98] sm:$0xff] }
  0x40   :  { %411 = vmatpush.msrb.mxu3 %v320_v31  ;;  %341 = vmatpush.msra.mxu1 %v282_v16  ;;  %v2777_v31 = vld [vmem:[#allocation9 + $0x30] sm:$0xff] }
  0x41   :  { %533 = vmatpush.msrb.mxu0 %v2682_v37  ;;  %2276 = vmatpush.msra.mxu2 %v2768_v21  ;;  %v494_v16 = vld [vmem:[#allocation9 + $0x50] sm:$0xff] }
  0x42   :  { %412 = vmatpush.msrb.mxu3 %v317_v33  ;;  %342 = vmatpush.msra.mxu1 %v279_v20  ;;  %v2787_v33 = vld [vmem:[#allocation7 + $0x50] sm:$0xff] }
  0x43   :  { %534 = vmatpush.msrb.mxu0 %v2686_v39  ;;  %2277 = vmatpush.msra.mxu2 %v2787_v33 }
  0x44   :  { %413 = vmatpush.msrb.mxu3 %v314_v36  ;;  %343 = vmatpush.msra.mxu1 %v276_v24  ;;  %v2790_v36 = vld [vmem:[#allocation9 + $0x18] sm:$0xff] }
  0x45   :  { %535 = vmatpush.msrb.mxu0 %v2700_v47 }
  0x46   :  { %414 = vmatpush.msrb.mxu3 %v311_v41  ;;  %344 = vmatpush.msra.mxu1 %v273_v32  ;;  %v2795_v41 = vld [vmem:[#allocation7 + $0x20] sm:$0xff] }
  0x47   :  { %536 = vmatpush.msrb.mxu0 %v2708_v52 }
  0x48   :  { %415 = vmatpush.msrb.mxu3 %v308_v46  ;;  %370 = vmatpush.msrb.mxu1 %v2684_v38  ;;  %v2807_v46 = vld [vmem:[#allocation9 + $0x178] sm:$0xff]  ;;  %v2812_v38 = vld [vmem:[#allocation9 + $0x160] sm:$0xff] }
  0x49   :  { %537 = vmatpush.msrb.mxu0 %v2714_v56 }
  0x4a   :  { %416 = vmatpush.msrb.mxu3 %v305_v51  ;;  %371 = vmatpush.msrb.mxu1 %v2690_v42  ;;  %v2819_v42 = vld [vmem:[#allocation9 + $0x130] sm:$0xff]  ;;  %v2835_v51 = vld [vmem:[#allocation9 + $0x100] sm:$0xff] }
  0x4b   :  { %538 = vmatpush.msrb.mxu0 %v2725_v62 }
  0x4c   :  { %417 = vmatpush.msrb.mxu3 %v302_v55  ;;  %372 = vmatpush.msrb.mxu1 %v2692_v43  ;;  %v2827_v43 = vld [vmem:[#allocation9 + $0x118] sm:$0xff] }
  0x4d   :  { %539 = vmatpush.msrb.mxu0 %v2733_v2  ;;  %v2850_v55 = vld [vmem:[#allocation9 + $0xb8] sm:$0xff] }
  0x4e   :  { %418 = vmatpush.msrb.mxu3 %v299_v59  ;;  %373 = vmatpush.msrb.mxu1 %v2702_v48  ;;  %v2860_v59 = vld [vmem:[#allocation9 + $0x88] sm:$0xff] }
  0x4f   :  { %540 = vmatpush.msrb.mxu0 %v2741_v7 }
  0x50   :  { %419 = vmatpush.msrb.mxu3 %v296_v0  ;;  %374 = vmatpush.msrb.mxu1 %v2710_v53  ;;  %v2837_v53 = vld [vmem:[#allocation9 + $0xe8] sm:$0xff] }
  0x51   :  { %541 = vmatpush.msrb.mxu0 %v2747_v11 }
  0x52   :  { %420 = vmatpush.msrb.mxu3 %v293_v4  ;;  %375 = vmatpush.msrb.mxu1 %v2716_v57  ;;  %v2887_v4 = vld [vmem:[#allocation9 + $0x10] sm:$0xff] }
  0x53   :  { %542 = vmatpush.msrb.mxu0 %v2755_v15 }
  0x54   :  { %421 = vmatpush.msrb.mxu3 %v290_v9  ;;  %376 = vmatpush.msrb.mxu1 %v2720_v60  ;;  %v2868_v60 = vld [vmem:[#allocation9 + $0x70] sm:$0xff]  ;;  %v512_v9 = vld [vmem:[#allocation9 + $0xe0] sm:$0xff] }
  0x55   :  { %543 = vmatpush.msrb.mxu0 %v2765_v19 }
  0x56   :  { %422 = vmatpush.msrb.mxu3 %v287_v14  ;;  %377 = vmatpush.msrb.mxu1 %v2730_v1  ;;  %v2881_v1 = vld [vmem:[#allocation9 + $0x40] sm:$0xff] }
  0x57   :  { %544 = vmatpush.msrb.mxu0 %v2771_v23  ;;  %v500_v14 = vld [vmem:[#allocation9 + $0x80] sm:$0xff] }
  0x58   :  { %423 = vmatpush.msrb.mxu3 %v284_v18  ;;  %378 = vmatpush.msrb.mxu1 %v2737_v5  ;;  %v488_v18 = vld [vmem:[#allocation9 + $0x20] sm:$0xff] }
  0x59   :  { %545 = vmatpush.msrb.mxu0 %v2777_v31 }
  0x5a   :  { %424 = vmatpush.msrb.mxu3 %v281_v22  ;;  %379 = vmatpush.msrb.mxu1 %v2745_v10  ;;  %v509_v10 = vld [vmem:[#allocation9 + $0xc8] sm:$0xff] }
  0x5b   :  { %546 = vmatpush.msrb.mxu0 %v2790_v36 }
  0x5c   :  { %425 = vmatpush.msrb.mxu3 %v278_v30  ;;  %380 = vmatpush.msrb.mxu1 %v2761_v17  ;;  %v491_v17 = vld [vmem:[#allocation9 + $0x38] sm:$0xff] }
  0x5d   :  { %547 = vmatpush.msrb.mxu0 %v2793_v40 }
  0x5e   :  { %426 = vmatpush.msrb.mxu3 %v275_v35  ;;  %381 = vmatpush.msrb.mxu1 %v2768_v21  ;;  %v321_v21 = vld [vmem:[%s3566_s4] sm:$0x7] }
  0x60   :  { %382 = vmatpush.msrb.mxu1 %v2787_v33 }
  0x78   :  { %v2669_v27 = vpop.permute.xlu2 %147 }
  0x79   :  { %3592 = vst [vmem:[#allocation19_spill] sm:$0xff] %v2669_v27  ;;  %vm164_vm0 = vcmp.eq.s32.totalorder %v2669_v27, %v2667_v26 }
  0x7a   :  { %2221 = vmatmul.msk.f32.vlgmr.msra.gmra.mxu3 %vm164_vm0, %v2573_v28 }
  0x7b   :  { %701 = vmatpush.msra.mxu3 %v2679_v34 }
  0x7d   :  { %702 = vmatpush.msra.mxu3 %v2682_v37 }
  0x7f   :  { %703 = vmatpush.msra.mxu3 %v2686_v39 }
  0x81   :  { %v2674_v29 = vpop.permute.xlu2 %150  ;;  %704 = vmatpush.msra.mxu3 %v2700_v47 }
  0x82   :  { %3593 = vst [vmem:[#allocation20_spill] sm:$0xff] %v2674_v29  ;;  %vm165_vm1 = vcmp.eq.s32.totalorder %v2674_v29, %v2667_v26 }
  0x83   :  { %2222 = vmatmul.msk.f32.gmra.mxu3 %vm165_vm1, %v2573_v28 }
  0x84   :  { %705 = vmatpush.msra.mxu3 %v2708_v52 }
  0x86   :  { %706 = vmatpush.msra.mxu3 %v2714_v56 }
  0x88   :  { %707 = vmatpush.msra.mxu3 %v2725_v62 }
  0x8a   :  { %708 = vmatpush.msra.mxu3 %v2733_v2 }
  0x8c   :  { %709 = vmatpush.msra.mxu3 %v2741_v7 }
  0x8e   :  { %710 = vmatpush.msra.mxu3 %v2747_v11 }
  0x8f   :  { %v2704_v49 = vpop.permute.xlu1 %141 }
  0x90   :  { %v2694_v44 = vpop.permute.xlu0 %135  ;;  %vm162_vm4 = vcmp.eq.s32.totalorder %v2704_v49, %v2667_v26  ;;  %711 = vmatpush.msra.mxu3 %v2755_v15 }
  0x91   :  { %vm160_vm2 = vcmp.eq.s32.totalorder %v2694_v44, %v2667_v26  ;;  %vm184_vm13 = vcmp.gt.s32.totalorder %v2694_v44, 0 }
  0x92   :  { %2217 = vmatmul.msk.f32.vlgmr.msra.gmra.mxu0 %vm160_vm2, %v2573_v28  ;;  %712 = vmatpush.msra.mxu3 %v2765_v19 }
  0x94   :  { %713 = vmatpush.msra.mxu3 %v2771_v23 }
  0x96   :  { %714 = vmatpush.msra.mxu3 %v2777_v31 }
  0x97   :  { %v2739_v6 = vpop.permute.xlu1 %144 }
  0x98   :  { %v2722_v61 = vpop.permute.xlu0 %138  ;;  %vm163_vm7 = vcmp.eq.s32.totalorder %v2739_v6, %v2667_v26  ;;  %715 = vmatpush.msra.mxu3 %v2790_v36 }
  0x99   :  { %vm161_vm3 = vcmp.eq.s32.totalorder %v2722_v61, %v2667_v26 }
  0x9a   :  { %2218 = vmatmul.msk.f32.gmra.mxu0 %vm161_vm3, %v2573_v28  ;;  %716 = vmatpush.msra.mxu3 %v2793_v40 }
  0x9f   :  { %v2774_v25 = vpop.permute.xlu1 %156 }
  0xa0   :  { %v2753_v13 = vpop.permute.xlu0 %153  ;;  %3595 = vst [vmem:[#allocation22_spill] sm:$0xff] %v2774_v25  ;;  %vm167_vm6 = vcmp.eq.s32.totalorder %v2774_v25, %v2667_v26 }
  0xa1   :  { %3594 = vst [vmem:[#allocation21_spill] sm:$0xff] %v2753_v13  ;;  %vm166_vm5 = vcmp.eq.s32.totalorder %v2753_v13, %v2667_v26  ;;  %v280_v26 = vld [vmem:[#allocation7 + $0x38] sm:$0xff] }
  0xa2   :  { %2219 = vmatmul.msk.f32.gmra.mxu0 %vm162_vm4, %v2573_v28  ;;  %2223 = vmatmul.msk.f32.gmra.mxu3 %vm166_vm5, %v2573_v28 }
  0xa3   :  { %2278 = vmatpush.msra.mxu2 %v280_v26  ;;  %383 = vmatpush.msrb.mxu1 %v280_v26 }
  0xa5   :  { %2279 = vmatpush.msra.mxu2 %v2795_v41  ;;  %384 = vmatpush.msrb.mxu1 %v2795_v41 }
  0xaa   :  { %2220 = vmatmul.msk.f32.gmra.mxu0 %vm163_vm7, %v2573_v28  ;;  %2224 = vmatmul.msk.f32.gmra.mxu3 %vm167_vm6, %v2573_v28  ;;  %v2799_v28 = vld [vmem:[#allocation7 + $0x8] sm:$0xff] }
  0xab   :  { %2280 = vmatpush.msra.mxu2 %v2799_v28  ;;  %385 = vmatpush.msrb.mxu1 %v2799_v28 }
  0xad   :  { %572 = vmatpush.msrb.mxu2 %v2807_v46 }
  0xaf   :  { %573 = vmatpush.msrb.mxu2 %v2812_v38 }
  0xb1   :  { %574 = vmatpush.msrb.mxu2 %v2814_v50 }
  0xb2   :  { %548 = vmatmul.f32.vlgmr.msrb.gmra.mxu0 %v3572_v45 }
  0xb3   :  { %575 = vmatpush.msrb.mxu2 %v2819_v42 }
  0xb5   :  { %576 = vmatpush.msrb.mxu2 %v2827_v43 }
  0xb7   :  { %577 = vmatpush.msrb.mxu2 %v2835_v51 }
  0xb9   :  { %578 = vmatpush.msrb.mxu2 %v2837_v53 }
  0xbb   :  { %579 = vmatpush.msrb.mxu2 %v2845_v54 }
  0xbd   :  { %580 = vmatpush.msrb.mxu2 %v2850_v55 }
  0xbf   :  { %581 = vmatpush.msrb.mxu2 %v2858_v58 }
  0xc1   :  { %582 = vmatpush.msrb.mxu2 %v2860_v59 }
  0xc3   :  { %583 = vmatpush.msrb.mxu2 %v2868_v60 }
  0xc5   :  { %584 = vmatpush.msrb.mxu2 %v2872_v63 }
  0xc7   :  { %585 = vmatpush.msrb.mxu2 %v2881_v1 }
  0xc9   :  { %586 = vmatpush.msrb.mxu2 %v2883_v3 }
  0xcb   :  { %587 = vmatpush.msrb.mxu2 %v2887_v4 }
  0xfd   :  { %v2831_v48 = vpop.f32.mrf.mxu3 }
  0xfe   :  { %398 = vmatmul.f32.vlgmr.msra.gmra.mxu2 %v2831_v48 }
  0xff   :  { %871 = vmatpush.msra.mxu2 %v2679_v34 }
 0x101   :  { %872 = vmatpush.msra.mxu2 %v2682_v37 }
 0x103   :  { %873 = vmatpush.msra.mxu2 %v2686_v39 }
 0x105   :  { %874 = vmatpush.msra.mxu2 %v2700_v47  ;;  %v530_v47 = vld [vmem:[#allocation9 + $0x170] sm:$0xff] }
 0x106   :  { %v2853_v57 = vpop.f32.mrf.mxu3  ;;  %721 = vmatpush.msra.mxu0 %v530_v47 }
 0x107   :  { %401 = vmatmul.f32.gmra.mxu2 %v2853_v57 }
 0x108   :  { %875 = vmatpush.msra.mxu2 %v2708_v52  ;;  %v527_v52 = vld [vmem:[#allocation9 + $0x158] sm:$0xff] }
 0x109   :  { %722 = vmatpush.msra.mxu0 %v527_v52 }
 0x10a   :  { %876 = vmatpush.msra.mxu2 %v2714_v56  ;;  %v524_v56 = vld [vmem:[#allocation9 + $0x140] sm:$0xff] }
 0x10b   :  { %723 = vmatpush.msra.mxu0 %v524_v56 }
 0x10c   :  { %877 = vmatpush.msra.mxu2 %v2725_v62  ;;  %v521_v62 = vld [vmem:[#allocation9 + $0x128] sm:$0xff] }
 0x10d   :  { %724 = vmatpush.msra.mxu0 %v521_v62 }
 0x10e   :  { %878 = vmatpush.msra.mxu2 %v2733_v2  ;;  %v518_v2 = vld [vmem:[#allocation9 + $0x110] sm:$0xff] }
 0x10f   :  { %v2875_v0 = vpop.f32.mrf.mxu0  ;;  %725 = vmatpush.msra.mxu0 %v518_v2 }
 0x110   :  { %345 = vmatmul.f32.vlgmr.msra.gmra.mxu1 %v2875_v0  ;;  %427 = vmatmul.f32.vlgmr.msrb.gmra.mxu3 %v2875_v0 }
 0x111   :  { %879 = vmatpush.msra.mxu2 %v2741_v7  ;;  %552 = vmatpush.msra.mxu1 %v530_v47  ;;  %v515_v7 = vld [vmem:[#allocation9 + $0xf8] sm:$0xff] }
 0x112   :  { %891 = vmatpush.msrb.mxu3 %v530_v47  ;;  %726 = vmatpush.msra.mxu0 %v515_v7 }
 0x113   :  { %880 = vmatpush.msra.mxu2 %v2747_v11  ;;  %553 = vmatpush.msra.mxu1 %v527_v52  ;;  %v506_v11 = vld [vmem:[#allocation9 + $0xb0] sm:$0xff] }
 0x114   :  { %892 = vmatpush.msrb.mxu3 %v527_v52  ;;  %727 = vmatpush.msra.mxu0 %v512_v9 }
 0x115   :  { %881 = vmatpush.msra.mxu2 %v2755_v15  ;;  %554 = vmatpush.msra.mxu1 %v524_v56  ;;  %v497_v15 = vld [vmem:[#allocation9 + $0x68] sm:$0xff] }
 0x116   :  { %893 = vmatpush.msrb.mxu3 %v524_v56  ;;  %728 = vmatpush.msra.mxu0 %v509_v10 }
 0x117   :  { %v2893_v5 = vpop.f32.mrf.mxu0  ;;  %882 = vmatpush.msra.mxu2 %v2765_v19  ;;  %555 = vmatpush.msra.mxu1 %v521_v62  ;;  %v485_v19 = vld [vmem:[#allocation9 + $0x8] sm:$0xff] }
 0x118   :  { %348 = vmatmul.f32.gmra.mxu1 %v2893_v5  ;;  %430 = vmatmul.f32.gmra.mxu3 %v2893_v5 }
 0x119   :  { %883 = vmatpush.msra.mxu2 %v2771_v23  ;;  %556 = vmatpush.msra.mxu1 %v518_v2  ;;  %v323_v23 = vperm.slane %v321_v21, 0 }
 0x11a   :  { %894 = vmatpush.msrb.mxu3 %v521_v62  ;;  %729 = vmatpush.msra.mxu0 %v506_v11 }
 0x11b   :  { %884 = vmatpush.msra.mxu2 %v2777_v31  ;;  %557 = vmatpush.msra.mxu1 %v515_v7  ;;  %v2974_v31 = vperm.slane %v321_v21, 2 }
 0x11c   :  { %895 = vmatpush.msrb.mxu3 %v518_v2  ;;  %730 = vmatpush.msra.mxu0 %v503_v12 }
 0x11d   :  { %885 = vmatpush.msra.mxu2 %v2790_v36  ;;  %558 = vmatpush.msra.mxu1 %v512_v9  ;;  %3596 = vst [vmem:[#allocation23_spill] sm:$0xff] %v2974_v31 }
 0x11e   :  { %896 = vmatpush.msrb.mxu3 %v515_v7  ;;  %731 = vmatpush.msra.mxu0 %v500_v14 }
 0x11f   :  { %v2900_v8 = vpop.f32.mrf.mxu0  ;;  %886 = vmatpush.msra.mxu2 %v2793_v40  ;;  %559 = vmatpush.msra.mxu1 %v509_v10 }
 0x120   :  { %351 = vmatmul.f32.gmra.mxu1 %v2900_v8  ;;  %433 = vmatmul.f32.gmra.mxu3 %v2900_v8 }
 0x121   :  { %560 = vmatpush.msra.mxu1 %v506_v11  ;;  %897 = vmatpush.msrb.mxu3 %v512_v9 }
 0x122   :  { %732 = vmatpush.msra.mxu0 %v497_v15 }
 0x123   :  { %561 = vmatpush.msra.mxu1 %v503_v12  ;;  %898 = vmatpush.msrb.mxu3 %v509_v10 }
 0x124   :  { %733 = vmatpush.msra.mxu0 %v494_v16 }
 0x125   :  { %v267_v34 = vpop.f32.mrf.mxu3  ;;  %562 = vmatpush.msra.mxu1 %v500_v14  ;;  %899 = vmatpush.msrb.mxu3 %v506_v11 }
 0x126   :  { %404 = vmatmul.f32.gmra.mxu2 %v267_v34  ;;  %734 = vmatpush.msra.mxu0 %v491_v17 }
 0x127   :  { %v2908_v37 = vpop.f32.mrf.mxu0  ;;  %563 = vmatpush.msra.mxu1 %v497_v15  ;;  %900 = vmatpush.msrb.mxu3 %v503_v12 }
 0x128   :  { %354 = vmatmul.f32.gmra.mxu1 %v2908_v37  ;;  %436 = vmatmul.f32.gmra.mxu3 %v2908_v37 }
 0x129   :  { %564 = vmatpush.msra.mxu1 %v494_v16  ;;  %901 = vmatpush.msrb.mxu3 %v500_v14 }
 0x12a   :  { %735 = vmatpush.msra.mxu0 %v488_v18 }
 0x12b   :  { %565 = vmatpush.msra.mxu1 %v491_v17  ;;  %902 = vmatpush.msrb.mxu3 %v497_v15 }
 0x12c   :  { %736 = vmatpush.msra.mxu0 %v485_v19 }
 0x12d   :  { %v2915_v39 = vpop.f32.mrf.mxu3  ;;  %566 = vmatpush.msra.mxu1 %v488_v18  ;;  %903 = vmatpush.msrb.mxu3 %v494_v16 }
 0x12e   :  { %407 = vmatmul.f32.gmra.mxu2 %v2915_v39  ;;  %911 = vmatpush.msrb.mxu0 %v2807_v46 }
 0x12f   :  { %567 = vmatpush.msra.mxu1 %v485_v19  ;;  %904 = vmatpush.msrb.mxu3 %v491_v17 }
 0x130   :  { %357 = vmatmul.f32.gmra.mxu1 %v2831_v48  ;;  %439 = vmatmul.f32.gmra.mxu3 %v2831_v48 }
 0x131   :  { %912 = vmatpush.msrb.mxu0 %v2812_v38  ;;  %905 = vmatpush.msrb.mxu3 %v488_v18 }
 0x133   :  { %913 = vmatpush.msrb.mxu0 %v2814_v50  ;;  %906 = vmatpush.msrb.mxu3 %v485_v19 }
 0x135   :  { %914 = vmatpush.msrb.mxu0 %v2819_v42 }
 0x136   :  { %588 = vmatmul.f32.vlgmr.msrb.gmra.mxu2 %v3572_v45 }
 0x137   :  { %1061 = vmatpush.msrb.mxu2 %v530_v47  ;;  %915 = vmatpush.msrb.mxu0 %v2827_v43 }
 0x138   :  { %360 = vmatmul.f32.gmra.mxu1 %v2853_v57  ;;  %442 = vmatmul.f32.gmra.mxu3 %v2853_v57 }
 0x139   :  { %1062 = vmatpush.msrb.mxu2 %v527_v52  ;;  %916 = vmatpush.msrb.mxu0 %v2835_v51 }
 0x13b   :  { %1063 = vmatpush.msrb.mxu2 %v524_v56  ;;  %917 = vmatpush.msrb.mxu0 %v2837_v53 }
 0x13d   :  { %1064 = vmatpush.msrb.mxu2 %v521_v62  ;;  %918 = vmatpush.msrb.mxu0 %v2845_v54 }
 0x13f   :  { %1065 = vmatpush.msrb.mxu2 %v518_v2  ;;  %919 = vmatpush.msrb.mxu0 %v2850_v55 }
 0x140   :  { %363 = vmatmul.f32.gmra.mxu1 %v267_v34  ;;  %445 = vmatmul.f32.gmra.mxu3 %v267_v34  ;;  %v549_v34 = vpop.f32.mrf.mxu0 }
 0x141   :  { %1066 = vmatpush.msrb.mxu2 %v515_v7  ;;  %920 = vmatpush.msrb.mxu0 %v2858_v58 }
 0x143   :  { %1067 = vmatpush.msrb.mxu2 %v512_v9  ;;  %921 = vmatpush.msrb.mxu0 %v2860_v59 }
 0x145   :  { %1068 = vmatpush.msrb.mxu2 %v509_v10  ;;  %922 = vmatpush.msrb.mxu0 %v2868_v60 }
 0x147   :  { %1069 = vmatpush.msrb.mxu2 %v506_v11  ;;  %923 = vmatpush.msrb.mxu0 %v2872_v63 }
 0x148   :  { %366 = vmatmul.f32.gmra.mxu1 %v2915_v39  ;;  %448 = vmatmul.f32.gmra.mxu3 %v2915_v39 }
 0x149   :  { %1070 = vmatpush.msrb.mxu2 %v503_v12  ;;  %924 = vmatpush.msrb.mxu0 %v2881_v1 }
 0x14b   :  { %1071 = vmatpush.msrb.mxu2 %v500_v14  ;;  %925 = vmatpush.msrb.mxu0 %v2883_v3  ;;  %v3018_v14 = vperm.slane %v321_v21, 1 }
 0x14d   :  { %1072 = vmatpush.msrb.mxu2 %v497_v15  ;;  %926 = vmatpush.msrb.mxu0 %v2887_v4  ;;  %3607 = vst [vmem:[#allocation34_spill] sm:$0xff] %v3018_v14 }
 0x14f   :  { %1073 = vmatpush.msrb.mxu2 %v494_v16 }
 0x150   :  { %386 = vmatmul.f32.vlgmr.msrb.gmra.mxu1 %v2875_v0 }
 0x151   :  { %741 = vmatpush.msrb.mxu1 %v2807_v46  ;;  %1074 = vmatpush.msrb.mxu2 %v491_v17 }
 0x153   :  { %742 = vmatpush.msrb.mxu1 %v2812_v38  ;;  %1075 = vmatpush.msrb.mxu2 %v488_v18 }
 0x155   :  { %743 = vmatpush.msrb.mxu1 %v2814_v50  ;;  %1076 = vmatpush.msrb.mxu2 %v485_v19 }
 0x157   :  { %744 = vmatpush.msrb.mxu1 %v2819_v42 }
 0x158   :  { %389 = vmatmul.f32.gmra.mxu1 %v2893_v5 }
 0x159   :  { %745 = vmatpush.msrb.mxu1 %v2827_v43 }
 0x15b   :  { %746 = vmatpush.msrb.mxu1 %v2835_v51 }
 0x15d   :  { %747 = vmatpush.msrb.mxu1 %v2837_v53 }
 0x15f   :  { %748 = vmatpush.msrb.mxu1 %v2845_v54 }
 0x160   :  { %392 = vmatmul.f32.gmra.mxu1 %v2900_v8 }
 0x161   :  { %749 = vmatpush.msrb.mxu1 %v2850_v55 }
 0x163   :  { %750 = vmatpush.msrb.mxu1 %v2858_v58 }
 0x165   :  { %751 = vmatpush.msrb.mxu1 %v2860_v59 }
 0x167   :  { %752 = vmatpush.msrb.mxu1 %v2868_v60 }
 0x168   :  { %395 = vmatmul.f32.gmra.mxu1 %v2908_v37 }
 0x169   :  { %753 = vmatpush.msrb.mxu1 %v2872_v63 }
 0x16b   :  { %754 = vmatpush.msrb.mxu1 %v2881_v1 }
 0x16d   :  { %755 = vmatpush.msrb.mxu1 %v2883_v3 }
 0x16f   :  { %756 = vmatpush.msrb.mxu1 %v2887_v4 }
 0x170   :  { %568 = vmatmul.f32.vlgmr.msra.gmra.mxu1 %v3572_v45 }
 0x181   :  { %v3006_v47 = vpop.f32.mrf.mxu2 }
 0x182   :  { %3604 = vst [vmem:[#allocation31_spill] sm:$0xff] %v3006_v47 }
 0x18a   :  { %v3010_v62 = vpop.f32.mrf.mxu2 }
 0x18b   :  { %3605 = vst [vmem:[#allocation32_spill] sm:$0xff] %v3010_v62 }
 0x18d   :  { %v346_v20 = vpop.f32.mrf.mxu1 }
 0x18e   :  { %v347_v8 = vadd.f32 %v346_v20, %v323_v23 }
 0x190   :  { %v592_v37 = vadd.f32 %v549_v34, %v347_v8 }
 0x192   :  { %v2225_v52 = vmul.f32 -1.442695, %v592_v37 }
 0x193   :  { %v2970_v22 = vpop.f32.mrf.mxu3 }
 0x194   :  { %2297 = vpow2.f32 %v2225_v52  ;;  %v429_v8 = vadd.f32 %v2970_v22, %v2974_v31 }
 0x195   :  { %v349_v24 = vpop.f32.mrf.mxu1 }
 0x196   :  { %v2972_v30 = vadd.f32 %v349_v24, %v323_v23 }
 0x19a   :  { %v2298_v2 = vpop.eup %2297 }
 0x19b   :  { %v431_v32 = vpop.f32.mrf.mxu3  ;;  %v596_v9 = vadd.f32 1.0, %v2298_v2 }
 0x19c   :  { %v2977_v33 = vadd.f32 %v431_v32, %v2974_v31 }
 0x19d   :  { %v352_v35 = vpop.f32.mrf.mxu1  ;;  %2299 = vrcp.f32 %v596_v9  ;;  %vm602_vm9 = vweird.f32 %v596_v9 }
 0x19e   :  { %v2979_v36 = vadd.f32 %v352_v35, %v323_v23 }
 0x1a3   :  { %v434_v26 = vpop.f32.mrf.mxu3  ;;  %v2300_v12 = vpop.eup %2299 }
 0x1a4   :  { %v2982_v40 = vadd.f32 %v434_v26, %v2974_v31  ;;  %v598_v15 = vmul.f32 %v2300_v12, %v596_v9  ;;  %vm603_vm8 = vweird.f32 %v2300_v12  ;;  %v3026_v26 = vld [vmem:[%s3567_s5] sm:$0xff] }
 0x1a5   :  { %v355_v41 = vpop.f32.mrf.mxu1  ;;  %vm604_vm10 = vmor %vm602_vm9, %vm603_vm8  ;;  %vm185_vm9 = vcmp.gt.s32.totalorder %v2722_v61, 0  ;;  %v3072_v61 = vld [vmem:[#allocation9 + $0x168] sm:$0xff] }
 0x1a6   :  { %v2984_v28 = vadd.f32 %v355_v41, %v323_v23  ;;  %v599_v20 = vsub.f32 1.0, %v598_v15  ;;  %v608_v41 = vand.u32 2147483648, %v596_v9  ;;  %1041 = vmatpush.msra.mxu1 %v3072_v61 }
 0x1a8   :  { %v600_v24 = vmul.f32 %v2300_v12, %v599_v20 }
 0x1a9   :  { %v3014_v10 = vpop.f32.mrf.mxu2 }
 0x1aa   :  { %3606 = vst [vmem:[#allocation33_spill] sm:$0xff] %v3014_v10  ;;  %v601_v32 = vadd.f32 %v2300_v12, %v600_v24 }
 0x1ab   :  { %v437_v43 = vpop.f32.mrf.mxu3 }
 0x1ac   :  { %v2987_v48 = vadd.f32 %v437_v43, %v2974_v31  ;;  %v606_v43 = vand.u32 2147483647, %v596_v9 }
 0x1ad   :  { %v358_v51 = vpop.f32.mrf.mxu1 }
 0x1ae   :  { %v2989_v53 = vadd.f32 %v358_v51, %v323_v23  ;;  %vm607_vm11 = vcmp.eq.f32.partialorder %v606_v43, 8.507059e+37 }
 0x1b0   :  { %3597 = vst [vmem:[#allocation24_spill] sm:$0xff] %v2989_v53 }
 0x1b1   :  { %v3021_v18 = vpop.f32.mrf.mxu2 }
 0x1b2   :  { %3608 = vst [vmem:[#allocation35_spill] sm:$0xff] %v3021_v18 }
 0x1b3   :  { %v440_v54 = vpop.f32.mrf.mxu3 }
 0x1b4   :  { %v2992_v55 = vadd.f32 %v440_v54, %v2974_v31  ;;  %v605_v54 = vsel %vm604_vm10, %v2300_v12, %v601_v32 }
 0x1b5   :  { %v361_v57 = vpop.f32.mrf.mxu1 }
 0x1b6   :  { %3598 = vst [vmem:[#allocation25_spill] sm:$0xff] %v2992_v55  ;;  %v2994_v58 = vadd.f32 %v361_v57, %v323_v23 }
 0x1b8   :  { %3599 = vst [vmem:[#allocation26_spill] sm:$0xff] %v2994_v58 }
 0x1b9   :  { %v589_v21 = vpop.f32.mrf.mxu2 }
 0x1ba   :  { %v632_v57 = vadd.f32 %v589_v21, %v3026_v26 }
 0x1bb   :  { %v443_v59 = vpop.f32.mrf.mxu3 }
 0x1bc   :  { %v2997_v60 = vadd.f32 %v443_v59, %v2974_v31  ;;  %v609_v59 = vor.u32 1.1754944e-38, %v608_v41 }
 0x1bd   :  { %v364_v63 = vpop.f32.mrf.mxu1 }
 0x1be   :  { %3600 = vst [vmem:[#allocation27_spill] sm:$0xff] %v2997_v60  ;;  %v2999_v0 = vadd.f32 %v364_v63, %v323_v23  ;;  %v610_v63 = vsel %vm607_vm11, %v609_v59, %v605_v54 }
 0x1c0   :  { %3601 = vst [vmem:[#allocation28_spill] sm:$0xff] %v2999_v0 }
 0x1c3   :  { %v446_v1 = vpop.f32.mrf.mxu3 }
 0x1c4   :  { %v3002_v3 = vadd.f32 %v446_v1, %v2974_v31  ;;  %v633_v1 = vmul.f32 %v632_v57, %v610_v63 }
 0x1c5   :  { %v367_v4 = vpop.f32.mrf.mxu1 }
 0x1c6   :  { %3602 = vst [vmem:[#allocation29_spill] sm:$0xff] %v3002_v3  ;;  %v3004_v5 = vadd.f32 %v367_v4, %v323_v23  ;;  %v634_v37 = vadd.f32 %v633_v1, %v429_v8 }
 0x1c8   :  { %3603 = vst [vmem:[#allocation30_spill] sm:$0xff] %v3004_v5 }
 0x1cb   :  { %v3049_v43 = vpop.f32.mrf.mxu3 }
 0x1cc   :  { %3611 = vst [vmem:[#allocation38_spill] sm:$0xff] %v3049_v43 }
 0x1cd   :  { %v387_v39 = vpop.f32.mrf.mxu1 }
 0x1ce   :  { %v388_v16 = vadd.f32 %v387_v39, %v3018_v14 }
 0x1d5   :  { %v3008_v56 = vpop.f32.mrf.mxu1 }
 0x1dd   :  { %v3012_v7 = vpop.f32.mrf.mxu1 }
 0x1e5   :  { %v3016_v11 = vpop.f32.mrf.mxu1 }
 0x1ed   :  { %v569_v17 = vpop.f32.mrf.mxu1 }
 0x1ee   :  { %v612_v19 = vadd.f32 %v569_v17, %v388_v16  ;;  %v3033_v17 = vsel %vm184_vm13, 1.0, %v3572_v45 }
 0x1ef   :  { %3609 = vst [vmem:[#allocation36_spill] sm:$0xff] %v3033_v17 }
 0x1f0   :  { %v2226_v23 = vmul.f32 -1.442695, %v612_v19 }
 0x1f2   :  { %2301 = vpow2.f32 %v2226_v23  ;;  %v642_v23 = vsub.f32 1.0, %v3033_v17 }
 0x1f4   :  { %v643_v21 = vmul.f32 0.0, %v642_v23 }
 0x1f8   :  { %v2302_v35 = vpop.eup %2301 }
 0x1f9   :  { %v616_v51 = vadd.f32 1.0, %v2302_v35 }
 0x1fb   :  { %2303 = vrcp.f32 %v616_v51  ;;  %v628_v52 = vand.u32 2147483648, %v616_v51  ;;  %v626_v9 = vand.u32 2147483647, %v616_v51  ;;  %vm622_vm14 = vweird.f32 %v616_v51 }
 0x1fc   :  { %2305 = vtanh.f32 %v634_v37 }
 0x1fd   :  { %v629_v15 = vor.u32 1.1754944e-38, %v628_v52  ;;  %vm627_vm0 = vcmp.eq.f32.partialorder %v626_v9, 8.507059e+37 }
 0x201   :  { %v2304_v4 = vpop.eup %2303 }
 0x202   :  { %v618_v34 = vmul.f32 %v2304_v4, %v616_v51  ;;  %vm623_vm12 = vweird.f32 %v2304_v4  ;;  %v2306_v20 = vpop.eup %2305  ;;  %v391_v51 = vadd.f32 %v3008_v56, %v3018_v14 }
 0x203   :  { %vm624_vm15 = vmor %vm622_vm14, %vm623_vm12 }
 0x204   :  { %v619_v39 = vsub.f32 1.0, %v618_v34 }
 0x206   :  { %v620_v2 = vmul.f32 %v2304_v4, %v619_v39 }
 0x208   :  { %v621_v12 = vadd.f32 %v2304_v4, %v620_v2 }
 0x20a   :  { %v625_v16 = vsel %vm624_vm15, %v2304_v4, %v621_v12 }
 0x20b   :  { %v630_v22 = vsel %vm627_vm0, %v629_v15, %v625_v16 }
 0x20c   :  { %v636_v19 = vsub.f32 1.0, %v630_v22  ;;  %v638_v24 = vmul.f32 0.0, %v630_v22 }
 0x20e   :  { %v637_v32 = vmul.f32 %v2306_v20, %v636_v19 }
 0x210   :  { %v639_v35 = vadd.f32 %v638_v24, %v637_v32 }
 0x212   :  { %v3037_v44 = vmul.f32 %v3033_v17, %v639_v35 }
 0x214   :  { %3610 = vst [vmem:[#allocation37_spill] sm:$0xff] %v3037_v44  ;;  %v3040_v41 = vadd.f32 %v643_v21, %v3037_v44  ;;  %v3304_v44 = vld [vmem:[#allocation9 + $0x8] sm:$0xff] }
 0x215   :  { %3618 = vst [vmem:[#allocation44_spill] sm:$0xff] %v3304_v44 }
 0x216   :  { %717 = vmatmul.f32.vlgmr.msra.gmra.mxu3 %v3040_v41  ;;  %737 = vmatmul.f32.vlgmr.msra.gmra.mxu0 %v3040_v41 }
 0x217   :  { %757 = vmatmul.f32.vlgmr.msrb.gmra.mxu1 %v3040_v41  ;;  %1081 = vmatpush.msra.mxu3 %v2807_v46 }
 0x218   :  { %1211 = vmatpush.msra.mxu0 %v3072_v61 }
 0x219   :  { %1082 = vmatpush.msra.mxu3 %v2812_v38 }
 0x21b   :  { %1083 = vmatpush.msra.mxu3 %v2814_v50 }
 0x21d   :  { %1084 = vmatpush.msra.mxu3 %v2819_v42 }
 0x293   :  { %v738_v54 = vpop.f32.mrf.mxu0 }
 0x294   :  { %v781_v57 = vadd.f32 %v738_v54, %v391_v51 }
 0x296   :  { %v2228_v59 = vmul.f32 -1.442695, %v781_v57 }
 0x298   :  { %2307 = vpow2.f32 %v2228_v59 }
 0x299   :  { %v718_v63 = vpop.f32.mrf.mxu3 }
 0x29a   :  { %v761_v1 = vadd.f32 %v718_v63, %v2972_v30  ;;  %v758_v30 = vpop.f32.mrf.mxu1 }
 0x29b   :  { %v801_v19 = vadd.f32 %v758_v30, %v3026_v26  ;;  %v3105_v30 = vld [vmem:[#allocation9 + $0xe8] sm:$0xff] }
 0x29c   :  { %v2227_v4 = vmul.f32 -1.442695, %v761_v1 }
 0x29e   :  { %v2308_v46 = vpop.eup %2307  ;;  %2309 = vpow2.f32 %v2227_v4  ;;  %v3058_v4 = vsel %vm185_vm9, 1.0, %v3572_v45 }
 0x29f   :  { %v785_v38 = vadd.f32 1.0, %v2308_v46  ;;  %3612 = vst [vmem:[#allocation39_spill] sm:$0xff] %v3058_v4 }
 0x2a1   :  { %2311 = vrcp.f32 %v785_v38  ;;  %v797_v32 = vand.u32 2147483648, %v785_v38  ;;  %vm791_vm6 = vweird.f32 %v785_v38  ;;  %v795_v21 = vand.u32 2147483647, %v785_v38 }
 0x2a3   :  { %v798_v57 = vor.u32 1.1754944e-38, %v797_v32  ;;  %vm796_vm8 = vcmp.eq.f32.partialorder %v795_v21, 8.507059e+37  ;;  %v3120_v21 = vld [vmem:[#allocation9 + $0xb8] sm:$0xff] }
 0x2a4   :  { %v2310_v50 = vpop.eup %2309 }
 0x2a5   :  { %v765_v8 = vadd.f32 1.0, %v2310_v50 }
 0x2a7   :  { %2313 = vrcp.f32 %v765_v8  ;;  %v2312_v42 = vpop.eup %2311  ;;  %v777_v2 = vand.u32 2147483648, %v765_v8  ;;  %v775_v12 = vand.u32 2147483647, %v765_v8  ;;  %vm771_vm2 = vweird.f32 %v765_v8 }
 0x2a8   :  { %v787_v34 = vmul.f32 %v2312_v42, %v785_v38  ;;  %vm792_vm5 = vweird.f32 %v2312_v42  ;;  %v812_v38 = vsub.f32 1.0, %v3058_v4 }
 0x2a9   :  { %v778_v22 = vor.u32 1.1754944e-38, %v777_v2  ;;  %vm776_vm4 = vcmp.eq.f32.partialorder %v775_v12, 8.507059e+37  ;;  %vm793_vm7 = vmor %vm791_vm6, %vm792_vm5  ;;  %v3094_v2 = vld [vmem:[#allocation9 + $0xf0] sm:$0xff]  ;;  %v394_v12 = vadd.f32 %v3012_v7, %v3018_v14 }
 0x2aa   :  { %v788_v56 = vsub.f32 1.0, %v787_v34 }
 0x2ac   :  { %v789_v15 = vmul.f32 %v2312_v42, %v788_v56  ;;  %v3088_v56 = vld [vmem:[#allocation9 + $0x108] sm:$0xff] }
 0x2ad   :  { %v2314_v37 = vpop.eup %2313 }
 0x2ae   :  { %v767_v39 = vmul.f32 %v2314_v37, %v765_v8  ;;  %vm772_vm1 = vweird.f32 %v2314_v37  ;;  %v790_v23 = vadd.f32 %v2312_v42, %v789_v15  ;;  %v3103_v15 = vld [vmem:[#allocation9 + $0xd8] sm:$0xff] }
 0x2af   :  { %vm773_vm3 = vmor %vm771_vm2, %vm772_vm1  ;;  %vm186_vm2 = vcmp.gt.s32.totalorder %v2704_v49, 0 }
 0x2b0   :  { %v768_v52 = vsub.f32 1.0, %v767_v39  ;;  %v794_v54 = vsel %vm793_vm7, %v2312_v42, %v790_v23  ;;  %v813_v42 = vmul.f32 %v812_v38, %v3040_v41  ;;  %v3084_v39 = vld [vmem:[#allocation9 + $0x120] sm:$0xff]  ;;  %v3150_v38 = vld [vmem:[#allocation9 + $0x30] sm:$0xff] }
 0x2b1   :  { %v799_v59 = vsel %vm796_vm8, %v798_v57, %v794_v54  ;;  %v3111_v23 = vld [vmem:[#allocation9 + $0xc0] sm:$0xff]  ;;  %v3129_v54 = vld [vmem:[#allocation9 + $0x78] sm:$0xff]  ;;  %v3131_v57 = vld [vmem:[#allocation9 + $0x88] sm:$0xff] }
 0x2b2   :  { %v769_v9 = vmul.f32 %v2314_v37, %v768_v52  ;;  %v805_v63 = vsub.f32 1.0, %v799_v59  ;;  %v807_v46 = vmul.f32 %v799_v59, %v3040_v41  ;;  %v3080_v41 = vld [vmem:[#allocation9 + $0x138] sm:$0xff]  ;;  %v3136_v59 = vld [vmem:[#allocation9 + $0x60] sm:$0xff] }
 0x2b3   :  { %v3090_v52 = vld [vmem:[#allocation9 + $0x118] sm:$0xff] }
 0x2b4   :  { %v770_v16 = vadd.f32 %v2314_v37, %v769_v9  ;;  %1085 = vmatpush.msra.mxu3 %v3090_v52  ;;  %v3096_v9 = vld [vmem:[#allocation9 + $0x100] sm:$0xff] }
 0x2b6   :  { %v774_v20 = vsel %vm773_vm3, %v2314_v37, %v770_v16  ;;  %v3076_v37 = vld [vmem:[#allocation9 + $0x150] sm:$0xff]  ;;  %1086 = vmatpush.msra.mxu3 %v3096_v9 }
 0x2b7   :  { %v779_v24 = vsel %vm776_vm4, %v778_v22, %v774_v20  ;;  %1042 = vmatpush.msra.mxu1 %v3076_v37  ;;  %1212 = vmatpush.msra.mxu0 %v3076_v37 }
 0x2b8   :  { %v802_v35 = vmul.f32 %v801_v19, %v779_v24  ;;  %1087 = vmatpush.msra.mxu3 %v3105_v30  ;;  %v3113_v24 = vld [vmem:[#allocation9 + $0xd0] sm:$0xff] }
 0x2b9   :  { %1043 = vmatpush.msra.mxu1 %v3080_v41  ;;  %1213 = vmatpush.msra.mxu0 %v3080_v41 }
 0x2ba   :  { %v803_v51 = vadd.f32 %v802_v35, %v2977_v33  ;;  %1088 = vmatpush.msra.mxu3 %v3113_v24  ;;  %v3118_v35 = vld [vmem:[#allocation9 + $0xa8] sm:$0xff] }
 0x2bb   :  { %1044 = vmatpush.msra.mxu1 %v3084_v39  ;;  %1214 = vmatpush.msra.mxu0 %v3084_v39 }
 0x2bc   :  { %2315 = vtanh.f32 %v803_v51  ;;  %1089 = vmatpush.msra.mxu3 %v3120_v21  ;;  %v3127_v51 = vld [vmem:[#allocation9 + $0xa0] sm:$0xff] }
 0x2bd   :  { %1045 = vmatpush.msra.mxu1 %v3088_v56  ;;  %1215 = vmatpush.msra.mxu0 %v3088_v56 }
 0x2be   :  { %1090 = vmatpush.msra.mxu3 %v3127_v51 }
 0x2bf   :  { %1046 = vmatpush.msra.mxu1 %v3094_v2  ;;  %1216 = vmatpush.msra.mxu0 %v3094_v2 }
 0x2c0   :  { %1091 = vmatpush.msra.mxu3 %v3131_v57 }
 0x2c1   :  { %1047 = vmatpush.msra.mxu1 %v3103_v15  ;;  %1217 = vmatpush.msra.mxu0 %v3103_v15 }
 0x2c2   :  { %v2316_v1 = vpop.eup %2315 }
 0x2c3   :  { %v806_v50 = vmul.f32 %v2316_v1, %v805_v63  ;;  %1048 = vmatpush.msra.mxu1 %v3111_v23  ;;  %1218 = vmatpush.msra.mxu0 %v3111_v23  ;;  %v3138_v63 = vld [vmem:[#allocation9 + $0x70] sm:$0xff]  ;;  %v3143_v1 = vld [vmem:[#allocation9 + $0x48] sm:$0xff] }
 0x2c4   :  { %1092 = vmatpush.msra.mxu3 %v3138_v63 }
 0x2c5   :  { %v808_v8 = vadd.f32 %v807_v46, %v806_v50  ;;  %1049 = vmatpush.msra.mxu1 %v3118_v35  ;;  %1219 = vmatpush.msra.mxu0 %v3118_v35  ;;  %v3145_v46 = vld [vmem:[#allocation9 + $0x58] sm:$0xff] }
 0x2c6   :  { %1093 = vmatpush.msra.mxu3 %v3145_v46 }
 0x2c7   :  { %v3063_v33 = vmul.f32 %v3058_v4, %v808_v8  ;;  %v3152_v8 = vld [vmem:[#allocation9 + $0x40] sm:$0xff] }
 0x2c8   :  { %1094 = vmatpush.msra.mxu3 %v3152_v8 }
 0x2c9   :  { %3613 = vst [vmem:[#allocation40_spill] sm:$0xff] %v3063_v33  ;;  %v3067_v34 = vadd.f32 %v813_v42, %v3063_v33 }
 0x2cb   :  { %887 = vmatmul.f32.vlgmr.msra.gmra.mxu2 %v3067_v34  ;;  %907 = vmatmul.f32.vlgmr.msrb.gmra.mxu3 %v3067_v34 }
 0x2cc   :  { %927 = vmatmul.f32.vlgmr.msrb.gmra.mxu0 %v3067_v34 }
 0x349   :  { %v928_v18 = vpop.f32.mrf.mxu0 }
 0x34a   :  { %v971_v0 = vadd.f32 %v928_v18, %v3026_v26 }
 0x34e   :  { %v888_v16 = vpop.f32.mrf.mxu2  ;;  %v908_v22 = vpop.f32.mrf.mxu3 }
 0x34f   :  { %v931_v19 = vadd.f32 %v888_v16, %v2979_v36  ;;  %v951_v20 = vadd.f32 %v908_v22, %v394_v12  ;;  %v3125_v36 = vld [vmem:[#allocation9 + $0x90] sm:$0xff]  ;;  %v3157_v22 = vld [vmem:[#allocation9 + $0x18] sm:$0xff] }
 0x350   :  { %1050 = vmatpush.msra.mxu1 %v3125_v36  ;;  %1220 = vmatpush.msra.mxu0 %v3125_v36 }
 0x351   :  { %v2229_v7 = vmul.f32 -1.442695, %v931_v19  ;;  %v2230_v32 = vmul.f32 -1.442695, %v951_v20  ;;  %v3159_v19 = vld [vmem:[#allocation9 + $0x28] sm:$0xff]  ;;  %v3164_v20 = vld [vmem:[#allocation9] sm:$0xff] }
 0x352   :  { %1051 = vmatpush.msra.mxu1 %v3129_v54  ;;  %1221 = vmatpush.msra.mxu0 %v3129_v54 }
 0x353   :  { %2317 = vpow2.f32 %v2229_v7  ;;  %v3166_v7 = vld [vmem:[#allocation9 + $0x10] sm:$0xff]  ;;  %1095 = vmatpush.msra.mxu3 %v3159_v19 }
 0x354   :  { %2319 = vpow2.f32 %v2230_v32  ;;  %1052 = vmatpush.msra.mxu1 %v3136_v59  ;;  %1222 = vmatpush.msra.mxu0 %v3136_v59 }
 0x355   :  { %1096 = vmatpush.msra.mxu3 %v3166_v7 }
 0x356   :  { %1053 = vmatpush.msra.mxu1 %v3143_v1  ;;  %1223 = vmatpush.msra.mxu0 %v3143_v1 }
 0x357   :  { %1381 = vmatpush.msrb.mxu3 %v3072_v61 }
 0x358   :  { %1054 = vmatpush.msra.mxu1 %v3150_v38  ;;  %1224 = vmatpush.msra.mxu0 %v3150_v38 }
 0x359   :  { %v2318_v50 = vpop.eup %2317  ;;  %1382 = vmatpush.msrb.mxu3 %v3076_v37 }
 0x35a   :  { %v2320_v42 = vpop.eup %2319  ;;  %v935_v12 = vadd.f32 1.0, %v2318_v50  ;;  %1055 = vmatpush.msra.mxu1 %v3157_v22  ;;  %1225 = vmatpush.msra.mxu0 %v3157_v22 }
 0x35b   :  { %v955_v16 = vadd.f32 1.0, %v2320_v42  ;;  %1383 = vmatpush.msrb.mxu3 %v3080_v41 }
 0x35c   :  { %2321 = vrcp.f32 %v935_v12  ;;  %1056 = vmatpush.msra.mxu1 %v3164_v20  ;;  %1226 = vmatpush.msra.mxu0 %v3164_v20  ;;  %v947_v17 = vand.u32 2147483648, %v935_v12  ;;  %v945_v31 = vand.u32 2147483647, %v935_v12  ;;  %vm941_vm11 = vweird.f32 %v935_v12 }
 0x35d   :  { %2323 = vrcp.f32 %v955_v16  ;;  %1384 = vmatpush.msrb.mxu3 %v3084_v39  ;;  %v967_v33 = vand.u32 2147483648, %v955_v16  ;;  %vm961_vm15 = vweird.f32 %v955_v16 }
 0x35e   :  { %v948_v3 = vor.u32 1.1754944e-38, %v947_v17  ;;  %vm946_vm13 = vcmp.eq.f32.partialorder %v945_v31, 8.507059e+37 }
 0x35f   :  { %1385 = vmatpush.msrb.mxu3 %v3088_v56 }
 0x361   :  { %1386 = vmatpush.msrb.mxu3 %v3094_v2 }
 0x362   :  { %v2322_v32 = vpop.eup %2321 }
 0x363   :  { %v2324_v50 = vpop.eup %2323  ;;  %v937_v42 = vmul.f32 %v2322_v32, %v935_v12  ;;  %vm942_vm10 = vweird.f32 %v2322_v32  ;;  %1387 = vmatpush.msrb.mxu3 %v3103_v15 }
 0x364   :  { %v957_v45 = vmul.f32 %v2324_v50, %v955_v16  ;;  %vm943_vm12 = vmor %vm941_vm11, %vm942_vm10  ;;  %vm962_vm14 = vweird.f32 %v2324_v50  ;;  %vm187_vm11 = vcmp.gt.s32.totalorder %v2739_v6, 0 }
 0x365   :  { %v938_v4 = vsub.f32 1.0, %v937_v42  ;;  %vm963_vm0 = vmor %vm961_vm15, %vm962_vm14  ;;  %1388 = vmatpush.msrb.mxu3 %v3111_v23 }
 0x366   :  { %v958_v25 = vsub.f32 1.0, %v957_v45 }
 0x367   :  { %v939_v43 = vmul.f32 %v2322_v32, %v938_v4  ;;  %1389 = vmatpush.msrb.mxu3 %v3118_v35 }
 0x368   :  { %v959_v5 = vmul.f32 %v2324_v50, %v958_v25  ;;  %v965_v25 = vand.u32 2147483647, %v955_v16 }
 0x369   :  { %v940_v13 = vadd.f32 %v2322_v32, %v939_v43  ;;  %1390 = vmatpush.msrb.mxu3 %v3125_v36 }
 0x36a   :  { %v960_v4 = vadd.f32 %v2324_v50, %v959_v5  ;;  %vm966_vm1 = vcmp.eq.f32.partialorder %v965_v25, 8.507059e+37  ;;  %v3614_v5 = vmov 0.0   ;;  %v3225_v25 = vld [vmem:[#allocation9 + $0x148] sm:$0xff] }
 0x36b   :  { %v944_v42 = vsel %vm943_vm12, %v2322_v32, %v940_v13  ;;  %v968_v13 = vor.u32 1.1754944e-38, %v967_v33  ;;  %1391 = vmatpush.msrb.mxu3 %v3129_v54 }
 0x36c   :  { %v949_v45 = vsel %vm946_vm13, %v948_v3, %v944_v42  ;;  %v964_v17 = vsel %vm963_vm0, %v2324_v50, %v960_v4  ;;  %v3209_v50 = vld [vmem:[#allocation9 + $0x170] sm:$0xff]  ;;  %v3211_v42 = vld [vmem:[#allocation9 + $0x178] sm:$0xff]  ;;  %v3223_v4 = vld [vmem:[#allocation9 + $0x140] sm:$0xff] }
 0x36d   :  { %v972_v10 = vmul.f32 %v971_v0, %v949_v45  ;;  %v969_v31 = vsel %vm966_vm1, %v968_v13, %v964_v17  ;;  %1392 = vmatpush.msrb.mxu3 %v3136_v59  ;;  %1231 = vmatpush.msrb.mxu1 %v3209_v50  ;;  %v3217_v45 = vld [vmem:[#allocation9 + $0x160] sm:$0xff]  ;;  %v3233_v17 = vld [vmem:[#allocation9 + $0x130] sm:$0xff] }
 0x36e   :  { %v975_v0 = vsub.f32 1.0, %v969_v31  ;;  %1251 = vmatpush.msra.mxu2 %v3211_v42  ;;  %1401 = vmatpush.msrb.mxu0 %v3209_v50  ;;  %v3239_v13 = vld [vmem:[#allocation9 + $0x110] sm:$0xff] }
 0x36f   :  { %v973_v43 = vadd.f32 %v972_v10, %v2982_v40  ;;  %v3190_v40 = vsel %vm186_vm2, 1.0, %v3614_v5  ;;  %v977_v10 = vmul.f32 %v969_v31, %v3067_v34  ;;  %1393 = vmatpush.msrb.mxu3 %v3143_v1  ;;  %v3245_v31 = vld [vmem:[#allocation9 + $0xf8] sm:$0xff] }
 0x370   :  { %3615 = vst [vmem:[#allocation41_spill] sm:$0xff] %v3190_v40  ;;  %v982_v33 = vsub.f32 1.0, %v3190_v40  ;;  %1252 = vmatpush.msra.mxu2 %v3217_v45 }
 0x371   :  { %2325 = vtanh.f32 %v973_v43  ;;  %1394 = vmatpush.msrb.mxu3 %v3150_v38  ;;  %v3231_v43 = vld [vmem:[#allocation9 + $0x128] sm:$0xff] }
 0x372   :  { %v983_v16 = vmul.f32 %v982_v33, %v3067_v34  ;;  %v3215_v34 = vld [vmem:[#allocation9 + $0x158] sm:$0xff]  ;;  %1253 = vmatpush.msra.mxu2 %v3225_v25 }
 0x373   :  { %1395 = vmatpush.msrb.mxu3 %v3157_v22  ;;  %1232 = vmatpush.msrb.mxu1 %v3215_v34 }
 0x374   :  { %1402 = vmatpush.msrb.mxu0 %v3215_v34  ;;  %1254 = vmatpush.msra.mxu2 %v3233_v17 }
 0x375   :  { %1396 = vmatpush.msrb.mxu3 %v3164_v20  ;;  %1233 = vmatpush.msrb.mxu1 %v3223_v4 }
 0x376   :  { %1403 = vmatpush.msrb.mxu0 %v3223_v4  ;;  %1255 = vmatpush.msra.mxu2 %v3090_v52 }
 0x377   :  { %v2326_v3 = vpop.eup %2325  ;;  %1234 = vmatpush.msrb.mxu1 %v3231_v43 }
 0x378   :  { %v976_v18 = vmul.f32 %v2326_v3, %v975_v0  ;;  %1404 = vmatpush.msrb.mxu0 %v3231_v43  ;;  %1256 = vmatpush.msra.mxu2 %v3096_v9  ;;  %v3251_v0 = vld [vmem:[#allocation9 + $0xe0] sm:$0xff] }
 0x379   :  { %1235 = vmatpush.msrb.mxu1 %v3239_v13 }
 0x37a   :  { %v978_v12 = vadd.f32 %v977_v10, %v976_v18  ;;  %1405 = vmatpush.msrb.mxu0 %v3239_v13  ;;  %1257 = vmatpush.msra.mxu2 %v3105_v30  ;;  %v3258_v18 = vld [vmem:[#allocation9 + $0xc8] sm:$0xff] }
 0x37b   :  { %1236 = vmatpush.msrb.mxu1 %v3245_v31 }
 0x37c   :  { %v3198_v49 = vmul.f32 %v3190_v40, %v978_v12  ;;  %1406 = vmatpush.msrb.mxu0 %v3245_v31  ;;  %1258 = vmatpush.msra.mxu2 %v3113_v24  ;;  %v3264_v12 = vld [vmem:[#allocation9 + $0xb0] sm:$0xff]  ;;  %v3278_v40 = vld [vmem:[#allocation9 + $0x80] sm:$0xff] }
 0x37d   :  { %1237 = vmatpush.msrb.mxu1 %v3251_v0 }
 0x37e   :  { %3616 = vst [vmem:[#allocation42_spill] sm:$0xff] %v3198_v49  ;;  %v3203_v32 = vadd.f32 %v983_v16, %v3198_v49  ;;  %1407 = vmatpush.msrb.mxu0 %v3251_v0  ;;  %1259 = vmatpush.msra.mxu2 %v3120_v21  ;;  %v3272_v16 = vld [vmem:[#allocation9 + $0x98] sm:$0xff] }
 0x37f   :  { %1238 = vmatpush.msrb.mxu1 %v3258_v18 }
 0x380   :  { %1057 = vmatmul.f32.vlgmr.msra.gmra.mxu1 %v3203_v32  ;;  %1077 = vmatmul.f32.vlgmr.msrb.gmra.mxu2 %v3203_v32 }
 0x381   :  { %1097 = vmatmul.f32.vlgmr.msra.gmra.mxu3 %v3203_v32  ;;  %1408 = vmatpush.msrb.mxu0 %v3258_v18 }
 0x382   :  { %1571 = vmatpush.msra.mxu3 %v3209_v50  ;;  %1239 = vmatpush.msrb.mxu1 %v3264_v12 }
 0x383   :  { %1409 = vmatpush.msrb.mxu0 %v3264_v12  ;;  %1260 = vmatpush.msra.mxu2 %v3127_v51 }
 0x384   :  { %1572 = vmatpush.msra.mxu3 %v3215_v34  ;;  %1240 = vmatpush.msrb.mxu1 %v3272_v16 }
 0x385   :  { %1410 = vmatpush.msrb.mxu0 %v3272_v16  ;;  %1261 = vmatpush.msra.mxu2 %v3131_v57 }
 0x386   :  { %1573 = vmatpush.msra.mxu3 %v3223_v4  ;;  %1241 = vmatpush.msrb.mxu1 %v3278_v40 }
 0x387   :  { %1411 = vmatpush.msrb.mxu0 %v3278_v40  ;;  %1262 = vmatpush.msra.mxu2 %v3138_v63 }
 0x388   :  { %1574 = vmatpush.msra.mxu3 %v3231_v43 }
 0x389   :  { %1263 = vmatpush.msra.mxu2 %v3145_v46 }
 0x38a   :  { %1575 = vmatpush.msra.mxu3 %v3239_v13 }
 0x38b   :  { %1264 = vmatpush.msra.mxu2 %v3152_v8 }
 0x38c   :  { %1576 = vmatpush.msra.mxu3 %v3245_v31 }
 0x38d   :  { %1265 = vmatpush.msra.mxu2 %v3159_v19 }
 0x38e   :  { %1577 = vmatpush.msra.mxu3 %v3251_v0 }
 0x38f   :  { %1266 = vmatpush.msra.mxu2 %v3166_v7 }
 0x390   :  { %1578 = vmatpush.msra.mxu3 %v3258_v18 }
 0x391   :  { %1551 = vmatpush.msrb.mxu2 %v3072_v61 }
 0x392   :  { %1579 = vmatpush.msra.mxu3 %v3264_v12 }
 0x393   :  { %1552 = vmatpush.msrb.mxu2 %v3076_v37 }
 0x394   :  { %1580 = vmatpush.msra.mxu3 %v3272_v16 }
 0x395   :  { %1553 = vmatpush.msrb.mxu2 %v3080_v41 }
 0x396   :  { %1581 = vmatpush.msra.mxu3 %v3278_v40 }
 0x397   :  { %1554 = vmatpush.msrb.mxu2 %v3084_v39 }
 0x399   :  { %1555 = vmatpush.msrb.mxu2 %v3088_v56 }
 0x39b   :  { %1556 = vmatpush.msrb.mxu2 %v3094_v2 }
 0x39d   :  { %1557 = vmatpush.msrb.mxu2 %v3103_v15 }
 0x39f   :  { %1558 = vmatpush.msrb.mxu2 %v3111_v23 }
 0x3a1   :  { %1559 = vmatpush.msrb.mxu2 %v3118_v35 }
 0x3a3   :  { %1560 = vmatpush.msrb.mxu2 %v3125_v36 }
 0x3a5   :  { %1561 = vmatpush.msrb.mxu2 %v3129_v54  ;;  %v3623_v54 = vld [vmem:[#allocation24_spill] sm:$0xff] }
 0x3a7   :  { %1562 = vmatpush.msrb.mxu2 %v3136_v59 }
 0x3a9   :  { %1563 = vmatpush.msrb.mxu2 %v3143_v1 }
 0x3ab   :  { %1564 = vmatpush.msrb.mxu2 %v3150_v38 }
 0x3ad   :  { %1565 = vmatpush.msrb.mxu2 %v3157_v22 }
 0x3af   :  { %1566 = vmatpush.msrb.mxu2 %v3164_v20 }
 0x3fd   :  { %v1058_v3 = vpop.f32.mrf.mxu1 }
 0x3fe   :  { %v1101_v10 = vadd.f32 %v1058_v3, %v2984_v28  ;;  %v397_v28 = vadd.f32 %v3016_v11, %v3018_v14 }
 0x400   :  { %v2231_v33 = vmul.f32 -1.442695, %v1101_v10 }
 0x402   :  { %2327 = vpow2.f32 %v2231_v33  ;;  %v3284_v33 = vld [vmem:[#allocation9 + $0x68] sm:$0xff] }
 0x403   :  { %v1078_v3 = vpop.f32.mrf.mxu2  ;;  %1242 = vmatpush.msrb.mxu1 %v3284_v33  ;;  %1412 = vmatpush.msrb.mxu0 %v3284_v33 }
 0x404   :  { %v1121_v10 = vadd.f32 %v1078_v3, %v397_v28  ;;  %v3290_v3 = vld [vmem:[#allocation9 + $0x50] sm:$0xff]  ;;  %1582 = vmatpush.msra.mxu3 %v3284_v33  ;;  %v1098_v61 = vpop.f32.mrf.mxu3 }
 0x405   :  { %1243 = vmatpush.msrb.mxu1 %v3290_v3  ;;  %1413 = vmatpush.msrb.mxu0 %v3290_v3 }
 0x406   :  { %v2232_v11 = vmul.f32 -1.442695, %v1121_v10  ;;  %v3296_v10 = vld [vmem:[#allocation9 + $0x38] sm:$0xff]  ;;  %1583 = vmatpush.msra.mxu3 %v3290_v3 }
 0x407   :  { %1244 = vmatpush.msrb.mxu1 %v3296_v10  ;;  %1414 = vmatpush.msrb.mxu0 %v3296_v10 }
 0x408   :  { %v2328_v28 = vpop.eup %2327  ;;  %2329 = vpow2.f32 %v2232_v11  ;;  %v3302_v11 = vld [vmem:[#allocation9 + $0x20] sm:$0xff]  ;;  %1584 = vmatpush.msra.mxu3 %v3296_v10 }
 0x409   :  { %v1105_v49 = vadd.f32 1.0, %v2328_v28  ;;  %3617 = vst [vmem:[#allocation43_spill] sm:$0xff] %v3302_v11  ;;  %1245 = vmatpush.msrb.mxu1 %v3302_v11  ;;  %1415 = vmatpush.msrb.mxu0 %v3302_v11 }
 0x40a   :  { %1585 = vmatpush.msra.mxu3 %v3302_v11 }
 0x40b   :  { %2331 = vrcp.f32 %v1105_v49  ;;  %1246 = vmatpush.msrb.mxu1 %v3304_v44  ;;  %1416 = vmatpush.msrb.mxu0 %v3304_v44  ;;  %v1117_v62 = vand.u32 2147483648, %v1105_v49  ;;  %v1115_v55 = vand.u32 2147483647, %v1105_v49  ;;  %vm1111_vm4 = vweird.f32 %v1105_v49 }
 0x40c   :  { %1586 = vmatpush.msra.mxu3 %v3304_v44 }
 0x40d   :  { %1421 = vmatpush.msra.mxu1 %v3211_v42  ;;  %vm1116_vm6 = vcmp.eq.f32.partialorder %v1115_v55, 8.507059e+37 }
 0x40e   :  { %v2330_v28 = vpop.eup %2329 }
 0x40f   :  { %v1125_v29 = vadd.f32 1.0, %v2330_v28  ;;  %1422 = vmatpush.msra.mxu1 %v3217_v45 }
 0x411   :  { %v2332_v60 = vpop.eup %2331  ;;  %2333 = vrcp.f32 %v1125_v29  ;;  %1423 = vmatpush.msra.mxu1 %v3225_v25  ;;  %v1135_v11 = vand.u32 2147483647, %v1125_v29  ;;  %vm1131_vm8 = vweird.f32 %v1125_v29 }
 0x412   :  { %v1107_v58 = vmul.f32 %v2332_v60, %v1105_v49  ;;  %vm1112_vm3 = vweird.f32 %v2332_v60 }
 0x413   :  { %1424 = vmatpush.msra.mxu1 %v3233_v17  ;;  %vm1113_vm5 = vmor %vm1111_vm4, %vm1112_vm3  ;;  %vm1136_vm10 = vcmp.eq.f32.partialorder %v1135_v11, 8.507059e+37 }
 0x414   :  { %v1108_v28 = vsub.f32 1.0, %v1107_v58  ;;  %v1118_v58 = vor.u32 1.1754944e-38, %v1117_v62 }
 0x415   :  { %1425 = vmatpush.msra.mxu1 %v3090_v52 }
 0x416   :  { %v1109_v27 = vmul.f32 %v2332_v60, %v1108_v28  ;;  %v1141_v28 = vadd.f32 %v1098_v61, %v3026_v26 }
 0x417   :  { %v2334_v53 = vpop.eup %2333  ;;  %1426 = vmatpush.msra.mxu1 %v3096_v9 }
 0x418   :  { %v1127_v47 = vmul.f32 %v2334_v53, %v1125_v29  ;;  %v1110_v14 = vadd.f32 %v2332_v60, %v1109_v27  ;;  %vm1132_vm7 = vweird.f32 %v2334_v53  ;;  %v1137_v27 = vand.u32 2147483648, %v1125_v29 }
 0x419   :  { %1427 = vmatpush.msra.mxu1 %v3105_v30  ;;  %vm1133_vm9 = vmor %vm1131_vm8, %vm1132_vm7 }
 0x41a   :  { %v1128_v37 = vsub.f32 1.0, %v1127_v47  ;;  %v1114_v41 = vsel %vm1113_vm5, %v2332_v60, %v1110_v14  ;;  %v1138_v60 = vor.u32 1.1754944e-38, %v1137_v27  ;;  %v3625_v27 = vld [vmem:[#allocation19_spill] sm:$0xff] }
 0x41b   :  { %v1119_v44 = vsel %vm1116_vm6, %v1118_v58, %v1114_v41  ;;  %1428 = vmatpush.msra.mxu1 %v3113_v24  ;;  %v3624_v58 = vld [vmem:[#allocation25_spill] sm:$0xff]  ;;  %vm188_vm4 = vcmp.gt.s32.totalorder %v3625_v27, 0 }
 0x41c   :  { %v1129_v39 = vmul.f32 %v2334_v53, %v1128_v37  ;;  %v1142_v49 = vmul.f32 %v1141_v28, %v1119_v44 }
 0x41d   :  { %1429 = vmatpush.msra.mxu1 %v3120_v21 }
 0x41e   :  { %v1130_v62 = vadd.f32 %v2334_v53, %v1129_v39  ;;  %v1143_v55 = vadd.f32 %v1142_v49, %v2987_v48 }
 0x41f   :  { %1430 = vmatpush.msra.mxu1 %v3127_v51 }
 0x420   :  { %v1134_v47 = vsel %vm1133_vm9, %v2334_v53, %v1130_v62  ;;  %2335 = vtanh.f32 %v1143_v55  ;;  %v3342_v53 = vsel %vm187_vm11, 1.0, %v3614_v5 }
 0x421   :  { %v1139_v14 = vsel %vm1136_vm10, %v1138_v60, %v1134_v47  ;;  %1431 = vmatpush.msra.mxu1 %v3131_v57  ;;  %v1152_v6 = vsub.f32 1.0, %v3342_v53 }
 0x422   :  { %v1145_v29 = vsub.f32 1.0, %v1139_v14  ;;  %v1147_v56 = vmul.f32 %v1139_v14, %v3203_v32 }
 0x423   :  { %1432 = vmatpush.msra.mxu1 %v3138_v63  ;;  %v1153_v23 = vmul.f32 %v1152_v6, %v3203_v32 }
 0x425   :  { %1433 = vmatpush.msra.mxu1 %v3145_v46 }
 0x426   :  { %v2336_v48 = vpop.eup %2335 }
 0x427   :  { %v1146_v44 = vmul.f32 %v2336_v48, %v1145_v29  ;;  %1434 = vmatpush.msra.mxu1 %v3152_v8 }
 0x429   :  { %v1148_v2 = vadd.f32 %v1147_v56, %v1146_v44  ;;  %1435 = vmatpush.msra.mxu1 %v3159_v19  ;;  %v3626_v56 = vld [vmem:[#allocation32_spill] sm:$0xff] }
 0x42b   :  { %v3352_v15 = vmul.f32 %v3342_v53, %v1148_v2  ;;  %1436 = vmatpush.msra.mxu1 %v3166_v7 }
 0x42d   :  { %v3358_v35 = vadd.f32 %v1153_v23, %v3352_v15 }
 0x42f   :  { %1227 = vmatmul.f32.vlgmr.msra.gmra.mxu0 %v3358_v35  ;;  %1247 = vmatmul.f32.vlgmr.msrb.gmra.mxu1 %v3358_v35 }
 0x430   :  { %1267 = vmatmul.f32.vlgmr.msra.gmra.mxu2 %v3358_v35  ;;  %1591 = vmatpush.msra.mxu0 %v3211_v42 }
 0x431   :  { %1741 = vmatpush.msra.mxu2 %v3209_v50 }
 0x432   :  { %1592 = vmatpush.msra.mxu0 %v3217_v45 }
 0x433   :  { %1742 = vmatpush.msra.mxu2 %v3215_v34 }
 0x434   :  { %1593 = vmatpush.msra.mxu0 %v3225_v25 }
 0x435   :  { %1743 = vmatpush.msra.mxu2 %v3223_v4 }
 0x436   :  { %1594 = vmatpush.msra.mxu0 %v3233_v17 }
 0x437   :  { %1744 = vmatpush.msra.mxu2 %v3231_v43 }
 0x438   :  { %1595 = vmatpush.msra.mxu0 %v3090_v52  ;;  %v3619_v52 = vld [vmem:[#allocation43_spill] sm:$0xff] }
 0x439   :  { %1745 = vmatpush.msra.mxu2 %v3239_v13 }
 0x43a   :  { %1596 = vmatpush.msra.mxu0 %v3096_v9  ;;  %v3620_v9 = vld [vmem:[#allocation44_spill] sm:$0xff] }
 0x43b   :  { %1746 = vmatpush.msra.mxu2 %v3245_v31 }
 0x43c   :  { %1597 = vmatpush.msra.mxu0 %v3105_v30  ;;  %v3621_v30 = vld [vmem:[#allocation34_spill] sm:$0xff] }
 0x43d   :  { %1747 = vmatpush.msra.mxu2 %v3251_v0  ;;  %v403_v6 = vadd.f32 %v3626_v56, %v3621_v30 }
 0x43e   :  { %1598 = vmatpush.msra.mxu0 %v3113_v24  ;;  %v3622_v24 = vld [vmem:[#allocation31_spill] sm:$0xff] }
 0x43f   :  { %1748 = vmatpush.msra.mxu2 %v3258_v18 }
 0x440   :  { %1599 = vmatpush.msra.mxu0 %v3120_v21  ;;  %v400_v21 = vadd.f32 %v3622_v24, %v3621_v30  ;;  %v1864_v24 = vld [vmem:[#allocation10 + $0x68] sm:$0xff] }
 0x441   :  { %1749 = vmatpush.msra.mxu2 %v3264_v12 }
 0x442   :  { %1600 = vmatpush.msra.mxu0 %v3127_v51 }
 0x443   :  { %1750 = vmatpush.msra.mxu2 %v3272_v16 }
 0x444   :  { %1601 = vmatpush.msra.mxu0 %v3131_v57 }
 0x445   :  { %1751 = vmatpush.msra.mxu2 %v3278_v40 }
 0x446   :  { %1602 = vmatpush.msra.mxu0 %v3138_v63 }
 0x447   :  { %1752 = vmatpush.msra.mxu2 %v3284_v33 }
 0x448   :  { %1603 = vmatpush.msra.mxu0 %v3145_v46 }
 0x449   :  { %1753 = vmatpush.msra.mxu2 %v3290_v3 }
 0x44a   :  { %1604 = vmatpush.msra.mxu0 %v3152_v8 }
 0x44b   :  { %1754 = vmatpush.msra.mxu2 %v3296_v10 }
 0x44c   :  { %1605 = vmatpush.msra.mxu0 %v3159_v19 }
 0x44d   :  { %1755 = vmatpush.msra.mxu2 %v3619_v52 }
 0x44e   :  { %1606 = vmatpush.msra.mxu0 %v3166_v7 }
 0x44f   :  { %1756 = vmatpush.msra.mxu2 %v3620_v9  ;;  %v1865_v9 = vld [vmem:[#allocation10 + $0x70] sm:$0xff] }
 0x4ac   :  { %v1228_v36 = vpop.f32.mrf.mxu0  ;;  %v1248_v51 = vpop.f32.mrf.mxu1 }
 0x4ad   :  { %v1271_v57 = vadd.f32 %v1228_v36, %v3623_v54  ;;  %v1291_v59 = vadd.f32 %v1248_v51, %v400_v21  ;;  %v1863_v36 = vld [vmem:[#allocation10 + $0x60] sm:$0xff]  ;;  %v1861_v51 = vld [vmem:[#allocation10 + $0x50] sm:$0xff] }
 0x4af   :  { %v2233_v63 = vmul.f32 -1.442695, %v1271_v57  ;;  %v2234_v1 = vmul.f32 -1.442695, %v1291_v59  ;;  %v1860_v57 = vld [vmem:[#allocation10 + $0x48] sm:$0xff] }
 0x4b1   :  { %2337 = vpow2.f32 %v2233_v63  ;;  %v1859_v63 = vld [vmem:[#allocation10 + $0x40] sm:$0xff] }
 0x4b2   :  { %2339 = vpow2.f32 %v2234_v1  ;;  %v1858_v1 = vld [vmem:[#allocation10 + $0x38] sm:$0xff] }
 0x4b3   :  { %v1268_v31 = vpop.f32.mrf.mxu2 }
 0x4b4   :  { %v1311_v16 = vadd.f32 %v1268_v31, %v3026_v26  ;;  %v3405_v26 = vsel %vm188_vm4, 1.0, %v3614_v5  ;;  %v1851_v31 = vld [vmem:[#allocation10] sm:$0xff] }
 0x4b5   :  { %v1322_v47 = vsub.f32 1.0, %v3405_v26 }
 0x4b7   :  { %v2338_v46 = vpop.eup %2337  ;;  %v1323_v48 = vmul.f32 %v1322_v47, %v3358_v35 }
 0x4b8   :  { %v2340_v38 = vpop.eup %2339  ;;  %v1275_v8 = vadd.f32 1.0, %v2338_v46 }
 0x4b9   :  { %v1295_v22 = vadd.f32 1.0, %v2340_v38  ;;  %v1857_v38 = vld [vmem:[#allocation10 + $0x30] sm:$0xff] }
 0x4ba   :  { %2341 = vrcp.f32 %v1275_v8  ;;  %v1287_v34 = vand.u32 2147483648, %v1275_v8  ;;  %v1285_v43 = vand.u32 2147483647, %v1275_v8  ;;  %vm1281_vm13 = vweird.f32 %v1275_v8 }
 0x4bb   :  { %2343 = vrcp.f32 %v1295_v22  ;;  %v1307_v10 = vand.u32 2147483648, %v1295_v22  ;;  %vm1301_vm1 = vweird.f32 %v1295_v22  ;;  %v1305_v61 = vand.u32 2147483647, %v1295_v22 }
 0x4bc   :  { %v1288_v18 = vor.u32 1.1754944e-38, %v1287_v34  ;;  %vm1286_vm15 = vcmp.eq.f32.partialorder %v1285_v43, 8.507059e+37 }
 0x4bd   :  { %v1308_v28 = vor.u32 1.1754944e-38, %v1307_v10  ;;  %vm1306_vm3 = vcmp.eq.f32.partialorder %v1305_v61, 8.507059e+37 }
 0x4c0   :  { %v2342_v19 = vpop.eup %2341 }
 0x4c1   :  { %v2344_v20 = vpop.eup %2343  ;;  %v1277_v7 = vmul.f32 %v2342_v19, %v1275_v8  ;;  %vm1282_vm12 = vweird.f32 %v2342_v19 }
 0x4c2   :  { %v1297_v40 = vmul.f32 %v2344_v20, %v1295_v22  ;;  %vm1283_vm14 = vmor %vm1281_vm13, %vm1282_vm12  ;;  %vm1302_vm0 = vweird.f32 %v2344_v20  ;;  %v1856_v22 = vld [vmem:[#allocation10 + $0x28] sm:$0xff] }
 0x4c3   :  { %v1278_v32 = vsub.f32 1.0, %v1277_v7  ;;  %vm1303_vm2 = vmor %vm1301_vm1, %vm1302_vm0 }
 0x4c4   :  { %v1298_v50 = vsub.f32 1.0, %v1297_v40  ;;  %v1854_v40 = vld [vmem:[#allocation10 + $0x18] sm:$0xff] }
 0x4c5   :  { %v1279_v4 = vmul.f32 %v2342_v19, %v1278_v32  ;;  %v1853_v32 = vld [vmem:[#allocation10 + $0x10] sm:$0xff] }
 0x4c6   :  { %v1299_v13 = vmul.f32 %v2344_v20, %v1298_v50 }
 0x4c7   :  { %v1280_v0 = vadd.f32 %v2342_v19, %v1279_v4  ;;  %v1852_v4 = vld [vmem:[#allocation10 + $0x8] sm:$0xff] }
 0x4c8   :  { %v1300_v33 = vadd.f32 %v2344_v20, %v1299_v13 }
 0x4c9   :  { %v1284_v12 = vsel %vm1283_vm14, %v2342_v19, %v1280_v0 }
 0x4ca   :  { %v1289_v3 = vsel %vm1286_vm15, %v1288_v18, %v1284_v12  ;;  %v1304_v41 = vsel %vm1303_vm2, %v2344_v20, %v1300_v33  ;;  %v1855_v20 = vld [vmem:[#allocation10 + $0x20] sm:$0xff] }
 0x4cb   :  { %v1312_v11 = vmul.f32 %v1311_v16, %v1289_v3  ;;  %v1309_v39 = vsel %vm1306_vm3, %v1308_v28, %v1304_v41 }
 0x4cc   :  { %v1315_v49 = vsub.f32 1.0, %v1309_v39  ;;  %v1317_v60 = vmul.f32 %v1309_v39, %v3358_v35  ;;  %v1866_v35 = vld [vmem:[#allocation10 + $0x78] sm:$0xff] }
 0x4cd   :  { %v1313_v37 = vadd.f32 %v1312_v11, %v3624_v58  ;;  %v3429_v11 = vld [vmem:[%s3567_s5] sm:$0xff] }
 0x4cf   :  { %2345 = vtanh.f32 %v1313_v37 }
 0x4d5   :  { %v2346_v62 = vpop.eup %2345 }
 0x4d6   :  { %v1316_v55 = vmul.f32 %v2346_v62, %v1315_v49  ;;  %v3628_v49 = vld [vmem:[#allocation27_spill] sm:$0xff] }
 0x4d8   :  { %v1318_v14 = vadd.f32 %v1317_v60, %v1316_v55 }
 0x4da   :  { %v3410_v29 = vmul.f32 %v3405_v26, %v1318_v14  ;;  %v3629_v14 = vld [vmem:[#allocation20_spill] sm:$0xff] }
 0x4db   :  { %vm189_vm13 = vcmp.gt.s32.totalorder %v3629_v14, 0 }
 0x4dc   :  { %v3414_v44 = vadd.f32 %v1323_v48, %v3410_v29 }
 0x4de   :  { %1397 = vmatmul.f32.vlgmr.msrb.gmra.mxu3 %v3414_v44  ;;  %1417 = vmatmul.f32.vlgmr.msrb.gmra.mxu0 %v3414_v44 }
 0x4df   :  { %1437 = vmatmul.f32.vlgmr.msra.gmra.mxu1 %v3414_v44  ;;  %1761 = vmatpush.msrb.mxu3 %v3211_v42  ;;  %v3627_v42 = vld [vmem:[#allocation26_spill] sm:$0xff] }
 0x4e0   :  { %1867 = vmatpush.msrb.mxu0 %v1866_v35 }
 0x4e1   :  { %1762 = vmatpush.msrb.mxu3 %v3217_v45 }
 0x4e2   :  { %1868 = vmatpush.msrb.mxu0 %v1865_v9 }
 0x4e3   :  { %1763 = vmatpush.msrb.mxu3 %v3225_v25 }
 0x4e4   :  { %1869 = vmatpush.msrb.mxu0 %v1864_v24 }
 0x4e5   :  { %1764 = vmatpush.msrb.mxu3 %v3233_v17  ;;  %v1862_v17 = vld [vmem:[#allocation10 + $0x58] sm:$0xff] }
 0x4e6   :  { %1870 = vmatpush.msrb.mxu0 %v1863_v36  ;;  %v3632_v36 = vld [vmem:[#allocation42_spill] sm:$0xff] }
 0x4e8   :  { %1871 = vmatpush.msrb.mxu0 %v1862_v17  ;;  %v1712_v17 = vld [vmem:[#allocation9 + $0x138] sm:$0xff] }
 0x4ea   :  { %1872 = vmatpush.msrb.mxu0 %v1861_v51  ;;  %v1709_v51 = vld [vmem:[#allocation9 + $0x120] sm:$0xff] }
 0x4ec   :  { %1873 = vmatpush.msrb.mxu0 %v1860_v57  ;;  %v1708_v57 = vld [vmem:[#allocation9 + $0x118] sm:$0xff] }
 0x4ed   :  { %1765 = vmatpush.msrb.mxu3 %v1708_v57 }
 0x4ee   :  { %1874 = vmatpush.msrb.mxu0 %v1859_v63  ;;  %v1705_v63 = vld [vmem:[#allocation9 + $0x100] sm:$0xff] }
 0x4ef   :  { %1766 = vmatpush.msrb.mxu3 %v1705_v63 }
 0x4f0   :  { %1875 = vmatpush.msrb.mxu0 %v1858_v1  ;;  %v1700_v1 = vld [vmem:[#allocation9 + $0xd8] sm:$0xff] }
 0x4f2   :  { %1876 = vmatpush.msrb.mxu0 %v1857_v38  ;;  %v3633_v38 = vld [vmem:[#allocation33_spill] sm:$0xff] }
 0x4f4   :  { %1877 = vmatpush.msrb.mxu0 %v1856_v22  ;;  %v1697_v22 = vld [vmem:[#allocation9 + $0xc0] sm:$0xff] }
 0x4f6   :  { %1878 = vmatpush.msrb.mxu0 %v1855_v20 }
 0x4f8   :  { %1879 = vmatpush.msrb.mxu0 %v1854_v40  ;;  %v3634_v40 = vld [vmem:[#allocation28_spill] sm:$0xff] }
 0x4fa   :  { %1880 = vmatpush.msrb.mxu0 %v1853_v32 }
 0x4fc   :  { %1881 = vmatpush.msrb.mxu0 %v1852_v4 }
 0x4fe   :  { %1882 = vmatpush.msrb.mxu0 %v1851_v31  ;;  %v1691_v31 = vld [vmem:[#allocation9 + $0x90] sm:$0xff] }
 0x55b   :  { %v1418_v2 = vpop.f32.mrf.mxu0 }
 0x55c   :  { %v1461_v23 = vadd.f32 %v1418_v2, %v403_v6  ;;  %v1438_v33 = vpop.f32.mrf.mxu1  ;;  %v3435_v6 = vsel %vm189_vm13, 1.0, %v3614_v5 }
 0x55d   :  { %v1481_v61 = vadd.f32 %v3429_v11, %v1438_v33  ;;  %v1492_v35 = vsub.f32 1.0, %v3435_v6  ;;  %v1687_v33 = vld [vmem:[#allocation9 + $0x70] sm:$0xff] }
 0x55e   :  { %v2236_v52 = vmul.f32 -1.442695, %v1461_v23 }
 0x55f   :  { %v1493_v24 = vmul.f32 %v1492_v35, %v3414_v44 }
 0x560   :  { %2347 = vpow2.f32 %v2236_v52 }
 0x561   :  { %v1398_v21 = vpop.f32.mrf.mxu3 }
 0x562   :  { %v1441_v45 = vadd.f32 %v1398_v21, %v3627_v42  ;;  %v3630_v42 = vld [vmem:[#allocation37_spill] sm:$0xff] }
 0x564   :  { %v2235_v25 = vmul.f32 -1.442695, %v1441_v45  ;;  %v3631_v45 = vld [vmem:[#allocation40_spill] sm:$0xff] }
 0x566   :  { %v2348_v54 = vpop.eup %2347  ;;  %2349 = vpow2.f32 %v2235_v25  ;;  %v1715_v25 = vld [vmem:[#allocation9 + $0x150] sm:$0xff] }
 0x567   :  { %v1465_v59 = vadd.f32 1.0, %v2348_v54  ;;  %v1706_v54 = vld [vmem:[#allocation9 + $0x108] sm:$0xff] }
 0x569   :  { %2351 = vrcp.f32 %v1465_v59  ;;  %v1477_v28 = vand.u32 2147483648, %v1465_v59  ;;  %vm1471_vm10 = vweird.f32 %v1465_v59  ;;  %v1475_v27 = vand.u32 2147483647, %v1465_v59 }
 0x56b   :  { %v1478_v60 = vor.u32 1.1754944e-38, %v1477_v28  ;;  %vm1476_vm12 = vcmp.eq.f32.partialorder %v1475_v27, 8.507059e+37  ;;  %v1681_v28 = vld [vmem:[#allocation9 + $0x40] sm:$0xff]  ;;  %v1676_v27 = vld [vmem:[#allocation9 + $0x18] sm:$0xff] }
 0x56c   :  { %v2350_v46 = vpop.eup %2349 }
 0x56d   :  { %v1445_v8 = vadd.f32 1.0, %v2350_v46  ;;  %v1702_v46 = vld [vmem:[#allocation9 + $0xe8] sm:$0xff] }
 0x56e   :  { %1767 = vmatpush.msrb.mxu3 %v1702_v46 }
 0x56f   :  { %2353 = vrcp.f32 %v1445_v8  ;;  %v2352_v19 = vpop.eup %2351  ;;  %v1457_v0 = vand.u32 2147483648, %v1445_v8  ;;  %v1455_v12 = vand.u32 2147483647, %v1445_v8  ;;  %vm1451_vm6 = vweird.f32 %v1445_v8 }
 0x570   :  { %v1467_v7 = vmul.f32 %v2352_v19, %v1465_v59  ;;  %vm1472_vm9 = vweird.f32 %v2352_v19  ;;  %v1703_v59 = vld [vmem:[#allocation9 + $0xf0] sm:$0xff] }
 0x571   :  { %v1458_v10 = vor.u32 1.1754944e-38, %v1457_v0  ;;  %vm1456_vm8 = vcmp.eq.f32.partialorder %v1455_v12, 8.507059e+37  ;;  %vm1473_vm11 = vmor %vm1471_vm10, %vm1472_vm9  ;;  %v1693_v0 = vld [vmem:[#allocation9 + $0xa0] sm:$0xff]  ;;  %v1690_v12 = vld [vmem:[#allocation9 + $0x88] sm:$0xff] }
 0x572   :  { %v1468_v43 = vsub.f32 1.0, %v1467_v7 }
 0x574   :  { %v1469_v16 = vmul.f32 %v2352_v19, %v1468_v43  ;;  %v1694_v43 = vld [vmem:[#allocation9 + $0xa8] sm:$0xff] }
 0x575   :  { %v2354_v50 = vpop.eup %2353 }
 0x576   :  { %v1447_v34 = vmul.f32 %v2354_v50, %v1445_v8  ;;  %vm1452_vm5 = vweird.f32 %v2354_v50  ;;  %v1470_v37 = vadd.f32 %v2352_v19, %v1469_v16  ;;  %v406_v8 = vadd.f32 %v3633_v38, %v3621_v30  ;;  %v1685_v16 = vld [vmem:[#allocation9 + $0x60] sm:$0xff]  ;;  %v3635_v38 = vld [vmem:[#allocation29_spill] sm:$0xff] }
 0x577   :  { %vm1453_vm7 = vmor %vm1451_vm6, %vm1452_vm5 }
 0x578   :  { %v1448_v13 = vsub.f32 1.0, %v1447_v34  ;;  %v1474_v55 = vsel %vm1473_vm11, %v2352_v19, %v1470_v37  ;;  %v1699_v19 = vld [vmem:[#allocation9 + $0xd0] sm:$0xff] }
 0x579   :  { %v1479_v47 = vsel %vm1476_vm12, %v1478_v60, %v1474_v55  ;;  %1768 = vmatpush.msrb.mxu3 %v1699_v19  ;;  %v1675_v55 = vld [vmem:[#allocation9 + $0x10] sm:$0xff] }
 0x57a   :  { %v1449_v18 = vmul.f32 %v2354_v50, %v1448_v13  ;;  %v1485_v48 = vsub.f32 1.0, %v1479_v47  ;;  %v1487_v2 = vmul.f32 %v1479_v47, %v3414_v44  ;;  %v1718_v44 = vld [vmem:[#allocation9 + $0x168] sm:$0xff]  ;;  %v1696_v13 = vld [vmem:[#allocation9 + $0xb8] sm:$0xff] }
 0x57b   :  { %1721 = vmatpush.msrb.mxu1 %v1718_v44  ;;  %1769 = vmatpush.msrb.mxu3 %v1696_v13 }
 0x57c   :  { %v1450_v3 = vadd.f32 %v2354_v50, %v1449_v18  ;;  %v1688_v18 = vld [vmem:[#allocation9 + $0x78] sm:$0xff] }
 0x57d   :  { %1722 = vmatpush.msrb.mxu1 %v1715_v25  ;;  %1770 = vmatpush.msrb.mxu3 %v1693_v0 }
 0x57e   :  { %v1454_v58 = vsel %vm1453_vm7, %v2354_v50, %v1450_v3 }
 0x57f   :  { %v1459_v41 = vsel %vm1456_vm8, %v1458_v10, %v1454_v58  ;;  %1723 = vmatpush.msrb.mxu1 %v1712_v17  ;;  %1771 = vmatpush.msrb.mxu3 %v1690_v12  ;;  %v1682_v10 = vld [vmem:[#allocation9 + $0x48] sm:$0xff]  ;;  %v1679_v58 = vld [vmem:[#allocation9 + $0x30] sm:$0xff]  ;;  %v1923_v12 = vld [vmem:[#allocation12 + $0x78] sm:$0xff] }
 0x580   :  { %v1482_v39 = vmul.f32 %v1481_v61, %v1459_v41  ;;  %v1684_v61 = vld [vmem:[#allocation9 + $0x58] sm:$0xff] }
 0x581   :  { %1724 = vmatpush.msrb.mxu1 %v1709_v51  ;;  %1772 = vmatpush.msrb.mxu3 %v1687_v33  ;;  %v1921_v33 = vld [vmem:[#allocation12 + $0x68] sm:$0xff] }
 0x582   :  { %v1483_v62 = vadd.f32 %v1482_v39, %v3628_v49  ;;  %v1678_v49 = vld [vmem:[#allocation9 + $0x28] sm:$0xff] }
 0x583   :  { %1725 = vmatpush.msrb.mxu1 %v1706_v54  ;;  %1773 = vmatpush.msrb.mxu3 %v1684_v61  ;;  %v1917_v61 = vld [vmem:[#allocation12 + $0x48] sm:$0xff] }
 0x584   :  { %2355 = vtanh.f32 %v1483_v62  ;;  %v1673_v62 = vld [vmem:[#allocation9] sm:$0xff] }
 0x585   :  { %1726 = vmatpush.msrb.mxu1 %v1703_v59  ;;  %1774 = vmatpush.msrb.mxu3 %v1681_v28  ;;  %v1916_v28 = vld [vmem:[#allocation12 + $0x40] sm:$0xff] }
 0x587   :  { %1727 = vmatpush.msrb.mxu1 %v1700_v1  ;;  %1775 = vmatpush.msrb.mxu3 %v1678_v49  ;;  %v1914_v49 = vld [vmem:[#allocation12 + $0x30] sm:$0xff] }
 0x589   :  { %1728 = vmatpush.msrb.mxu1 %v1697_v22  ;;  %1776 = vmatpush.msrb.mxu3 %v1675_v55 }
 0x58a   :  { %v2356_v56 = vpop.eup %2355 }
 0x58b   :  { %v1486_v23 = vmul.f32 %v2356_v56, %v1485_v48  ;;  %1729 = vmatpush.msrb.mxu1 %v1694_v43 }
 0x58d   :  { %v1488_v52 = vadd.f32 %v1487_v2, %v1486_v23  ;;  %1730 = vmatpush.msrb.mxu1 %v1691_v31 }
 0x58f   :  { %v3440_v9 = vmul.f32 %v3435_v6, %v1488_v52  ;;  %1731 = vmatpush.msrb.mxu1 %v1688_v18 }
 0x591   :  { %v3444_v21 = vadd.f32 %v1493_v24, %v3440_v9  ;;  %1732 = vmatpush.msrb.mxu1 %v1685_v16  ;;  %v1922_v16 = vld [vmem:[#allocation12 + $0x70] sm:$0xff] }
 0x593   :  { %1567 = vmatmul.f32.vlgmr.msrb.gmra.mxu2 %v3444_v21  ;;  %1587 = vmatmul.f32.vlgmr.msra.gmra.mxu3 %v3444_v21 }
 0x594   :  { %1607 = vmatmul.f32.vlgmr.msra.gmra.mxu0 %v3444_v21  ;;  %1733 = vmatpush.msrb.mxu1 %v1682_v10  ;;  %v1918_v10 = vld [vmem:[#allocation12 + $0x50] sm:$0xff] }
 0x596   :  { %1734 = vmatpush.msrb.mxu1 %v1679_v58 }
 0x598   :  { %1735 = vmatpush.msrb.mxu1 %v1676_v27  ;;  %v1915_v27 = vld [vmem:[#allocation12 + $0x38] sm:$0xff] }
 0x59a   :  { %1736 = vmatpush.msrb.mxu1 %v1673_v62  ;;  %v3638_v62 = vld [vmem:[#allocation35_spill] sm:$0xff] }
 0x59b   :  { %v409_v55 = vadd.f32 %v3638_v62, %v3621_v30  ;;  %v1908_v30 = vld [vmem:[#allocation12] sm:$0xff] }
 0x59c   :  { %1883 = vmatmul.f32.vlgmr.msrb.gmra.mxu0 %v3630_v42  ;;  %1924 = vmatpush.msra.mxu1 %v1923_v12 }
 0x59e   :  { %1925 = vmatpush.msra.mxu1 %v1922_v16 }
 0x5a0   :  { %1926 = vmatpush.msra.mxu1 %v1921_v33 }
 0x5a4   :  { %1886 = vmatmul.f32.gmra.mxu0 %v3631_v45 }
 0x5ac   :  { %1889 = vmatmul.f32.gmra.mxu0 %v3632_v36 }
 0x5b4   :  { %1892 = vmatmul.f32.gmra.mxu0 %v3352_v15 }
 0x5bc   :  { %1895 = vmatmul.f32.gmra.mxu0 %v3410_v29 }
 0x5c4   :  { %1898 = vmatmul.f32.gmra.mxu0 %v3440_v9 }
 0x611   :  { %v1608_v24 = vpop.f32.mrf.mxu0 }
 0x612   :  { %v1651_v51 = vadd.f32 %v3429_v11, %v1608_v24  ;;  %v1909_v24 = vld [vmem:[#allocation12 + $0x8] sm:$0xff] }
 0x616   :  { %v1568_v20 = vpop.f32.mrf.mxu2  ;;  %v1588_v7 = vpop.f32.mrf.mxu3 }
 0x617   :  { %v1611_v32 = vadd.f32 %v1568_v20, %v3634_v40  ;;  %v1631_v50 = vadd.f32 %v1588_v7, %v406_v8  ;;  %v3636_v7 = vld [vmem:[#allocation21_spill] sm:$0xff] }
 0x618   :  { %vm190_vm6 = vcmp.gt.s32.totalorder %v3636_v7, 0 }
 0x619   :  { %v2237_v34 = vmul.f32 -1.442695, %v1611_v32  ;;  %v2238_v4 = vmul.f32 -1.442695, %v1631_v50  ;;  %v3462_v50 = vsel %vm190_vm6, 1.0, %v3614_v5 }
 0x61a   :  { %v1662_v43 = vsub.f32 1.0, %v3462_v50 }
 0x61b   :  { %2357 = vpow2.f32 %v2237_v34 }
 0x61c   :  { %2359 = vpow2.f32 %v2238_v4  ;;  %v1663_v0 = vmul.f32 %v1662_v43, %v3444_v21 }
 0x621   :  { %v2358_v3 = vpop.eup %2357 }
 0x622   :  { %v2360_v37 = vpop.eup %2359  ;;  %v1615_v41 = vadd.f32 1.0, %v2358_v3  ;;  %v1920_v3 = vld [vmem:[#allocation12 + $0x60] sm:$0xff] }
 0x623   :  { %v1635_v39 = vadd.f32 1.0, %v2360_v37  ;;  %1927 = vmatpush.msra.mxu1 %v1920_v3  ;;  %v3637_v37 = vld [vmem:[#allocation30_spill] sm:$0xff] }
 0x624   :  { %2361 = vrcp.f32 %v1615_v41  ;;  %v1627_v2 = vand.u32 2147483648, %v1615_v41  ;;  %v1625_v52 = vand.u32 2147483647, %v1615_v41  ;;  %vm1621_vm15 = vweird.f32 %v1615_v41 }
 0x625   :  { %2363 = vrcp.f32 %v1635_v39  ;;  %v1647_v63 = vand.u32 2147483648, %v1635_v39  ;;  %vm1641_vm3 = vweird.f32 %v1635_v39  ;;  %v1645_v46 = vand.u32 2147483647, %v1635_v39 }
 0x626   :  { %v1628_v17 = vor.u32 1.1754944e-38, %v1627_v2  ;;  %vm1626_vm1 = vcmp.eq.f32.partialorder %v1625_v52, 8.507059e+37  ;;  %v1911_v2 = vld [vmem:[#allocation12 + $0x18] sm:$0xff] }
 0x627   :  { %v1648_v19 = vor.u32 1.1754944e-38, %v1647_v63  ;;  %vm1646_vm5 = vcmp.eq.f32.partialorder %v1645_v46, 8.507059e+37 }
 0x62a   :  { %v2362_v60 = vpop.eup %2361 }
 0x62b   :  { %v2364_v47 = vpop.eup %2363  ;;  %v1617_v14 = vmul.f32 %v2362_v60, %v1615_v41  ;;  %vm1622_vm14 = vweird.f32 %v2362_v60 }
 0x62c   :  { %v1637_v48 = vmul.f32 %v2364_v47, %v1635_v39  ;;  %vm1623_vm0 = vmor %vm1621_vm15, %vm1622_vm14  ;;  %vm1642_vm2 = vweird.f32 %v2364_v47 }
 0x62d   :  { %v1618_v56 = vsub.f32 1.0, %v1617_v14  ;;  %vm1643_vm4 = vmor %vm1641_vm3, %vm1642_vm2 }
 0x62e   :  { %v1638_v23 = vsub.f32 1.0, %v1637_v48  ;;  %v1912_v48 = vld [vmem:[#allocation12 + $0x20] sm:$0xff] }
 0x62f   :  { %v1619_v35 = vmul.f32 %v2362_v60, %v1618_v56 }
 0x630   :  { %v1639_v44 = vmul.f32 %v2364_v47, %v1638_v23 }
 0x631   :  { %v1620_v25 = vadd.f32 %v2362_v60, %v1619_v35  ;;  %v1910_v35 = vld [vmem:[#allocation12 + $0x10] sm:$0xff] }
 0x632   :  { %v1640_v59 = vadd.f32 %v2364_v47, %v1639_v44 }
 0x633   :  { %v1624_v54 = vsel %vm1623_vm0, %v2362_v60, %v1620_v25  ;;  %v1913_v60 = vld [vmem:[#allocation12 + $0x28] sm:$0xff] }
 0x634   :  { %v1629_v57 = vsel %vm1626_vm1, %v1628_v17, %v1624_v54  ;;  %v1644_v22 = vsel %vm1643_vm4, %v2364_v47, %v1640_v59 }
 0x635   :  { %v1652_v1 = vmul.f32 %v1651_v51, %v1629_v57  ;;  %v1649_v20 = vsel %vm1646_vm5, %v1648_v19, %v1644_v22 }
 0x636   :  { %v1655_v40 = vsub.f32 1.0, %v1649_v20  ;;  %v1657_v4 = vmul.f32 %v1649_v20, %v3444_v21  ;;  %v1919_v21 = vld [vmem:[#allocation12 + $0x58] sm:$0xff] }
 0x637   :  { %v1653_v8 = vadd.f32 %v1652_v1, %v3635_v38  ;;  %1928 = vmatpush.msra.mxu1 %v1919_v21 }
 0x639   :  { %2365 = vtanh.f32 %v1653_v8  ;;  %1929 = vmatpush.msra.mxu1 %v1918_v10 }
 0x63b   :  { %1930 = vmatpush.msra.mxu1 %v1917_v61  ;;  %v3641_v61 = vld [vmem:[#allocation22_spill] sm:$0xff] }
 0x63c   :  { %vm191_vm15 = vcmp.gt.s32.totalorder %v3641_v61, 0 }
 0x63d   :  { %1931 = vmatpush.msra.mxu1 %v1916_v28 }
 0x63f   :  { %v2366_v32 = vpop.eup %2365  ;;  %1932 = vmatpush.msra.mxu1 %v1915_v27 }
 0x640   :  { %v1656_v34 = vmul.f32 %v2366_v32, %v1655_v40  ;;  %v3639_v40 = vld [vmem:[#allocation23_spill] sm:$0xff]  ;;  %v3640_v32 = vld [vmem:[#allocation38_spill] sm:$0xff] }
 0x641   :  { %1933 = vmatpush.msra.mxu1 %v1914_v49 }
 0x642   :  { %v1658_v13 = vadd.f32 %v1657_v4, %v1656_v34  ;;  %v450_v34 = vadd.f32 %v3640_v32, %v3639_v40 }
 0x643   :  { %1934 = vmatpush.msra.mxu1 %v1913_v60  ;;  %v1884_v60 = vpop.f32.mrf.mxu0 }
 0x644   :  { %v3467_v31 = vmul.f32 %v3462_v50, %v1658_v13 }
 0x645   :  { %1935 = vmatpush.msra.mxu1 %v1912_v48  ;;  %v2124_v48 = vld [vmem:[#allocation13 + $0x60] sm:$0xff] }
 0x646   :  { %v3471_v18 = vadd.f32 %v1663_v0, %v3467_v31  ;;  %1901 = vmatmul.f32.gmra.mxu0 %v3467_v31 }
 0x647   :  { %1936 = vmatpush.msra.mxu1 %v1911_v2  ;;  %v2121_v2 = vld [vmem:[#allocation13 + $0x48] sm:$0xff] }
 0x648   :  { %1737 = vmatmul.f32.vlgmr.msrb.gmra.mxu1 %v3471_v18  ;;  %1757 = vmatmul.f32.vlgmr.msra.gmra.mxu2 %v3471_v18 }
 0x649   :  { %1777 = vmatmul.f32.vlgmr.msrb.gmra.mxu3 %v3471_v18  ;;  %1937 = vmatpush.msra.mxu1 %v1910_v35  ;;  %v2120_v35 = vld [vmem:[#allocation13 + $0x40] sm:$0xff] }
 0x64b   :  { %1938 = vmatpush.msra.mxu1 %v1909_v24  ;;  %v2118_v24 = vld [vmem:[#allocation13 + $0x30] sm:$0xff] }
 0x64d   :  { %1939 = vmatpush.msra.mxu1 %v1908_v30  ;;  %v2117_v30 = vld [vmem:[#allocation13 + $0x28] sm:$0xff] }
 0x6c5   :  { %v1738_v58 = vpop.f32.mrf.mxu1 }
 0x6c6   :  { %v1781_v41 = vadd.f32 %v1738_v58, %v3637_v37  ;;  %v3485_v37 = vsel %vm191_vm15, 1.0, %v3614_v5  ;;  %v2127_v5 = vld [vmem:[#allocation13 + $0x78] sm:$0xff] }
 0x6c7   :  { %2128 = vmatpush.msrb.mxu2 %v2127_v5 }
 0x6c8   :  { %v2239_v39 = vmul.f32 -1.442695, %v1781_v41 }
 0x6ca   :  { %2367 = vpow2.f32 %v2239_v39  ;;  %v1832_v39 = vsub.f32 1.0, %v3485_v37 }
 0x6cb   :  { %v1758_v47 = vpop.f32.mrf.mxu2 }
 0x6cc   :  { %v1801_v14 = vadd.f32 %v1758_v47, %v409_v55  ;;  %v1778_v46 = vpop.f32.mrf.mxu3  ;;  %v1833_v62 = vmul.f32 %v1832_v39, %v3471_v18  ;;  %v2126_v47 = vld [vmem:[#allocation13 + $0x70] sm:$0xff] }
 0x6cd   :  { %v1821_v7 = vadd.f32 %v3429_v11, %v1778_v46  ;;  %2129 = vmatpush.msrb.mxu2 %v2126_v47  ;;  %v3643_v46 = vld [vmem:[#allocation39_spill] sm:$0xff] }
 0x6ce   :  { %v2240_v56 = vmul.f32 -1.442695, %v1801_v14  ;;  %v2125_v14 = vld [vmem:[#allocation13 + $0x68] sm:$0xff] }
 0x6cf   :  { %2130 = vmatpush.msrb.mxu2 %v2125_v14 }
 0x6d0   :  { %v2368_v23 = vpop.eup %2367  ;;  %2369 = vpow2.f32 %v2240_v56  ;;  %v2123_v56 = vld [vmem:[#allocation13 + $0x58] sm:$0xff] }
 0x6d1   :  { %v1785_v52 = vadd.f32 1.0, %v2368_v23  ;;  %2131 = vmatpush.msrb.mxu2 %v2124_v48  ;;  %v1887_v23 = vpop.f32.mrf.mxu0 }
 0x6d3   :  { %2371 = vrcp.f32 %v1785_v52  ;;  %v1797_v57 = vand.u32 2147483648, %v1785_v52  ;;  %v1795_v63 = vand.u32 2147483647, %v1785_v52  ;;  %vm1791_vm8 = vweird.f32 %v1785_v52  ;;  %2132 = vmatpush.msrb.mxu2 %v2123_v56 }
 0x6d5   :  { %v1798_v22 = vor.u32 1.1754944e-38, %v1797_v57  ;;  %vm1796_vm10 = vcmp.eq.f32.partialorder %v1795_v63, 8.507059e+37  ;;  %v2112_v57 = vld [vmem:[#allocation13] sm:$0xff]  ;;  %v3642_v63 = vld [vmem:[#allocation36_spill] sm:$0xff] }
 0x6d6   :  { %v2370_v44 = vpop.eup %2369 }
 0x6d7   :  { %v1805_v25 = vadd.f32 1.0, %v2370_v44  ;;  %v2116_v44 = vld [vmem:[#allocation13 + $0x20] sm:$0xff] }
 0x6d9   :  { %v2372_v17 = vpop.eup %2371  ;;  %2373 = vrcp.f32 %v1805_v25  ;;  %v1817_v0 = vand.u32 2147483648, %v1805_v25  ;;  %v1815_v12 = vand.u32 2147483647, %v1805_v25  ;;  %vm1811_vm12 = vweird.f32 %v1805_v25 }
 0x6da   :  { %v1787_v51 = vmul.f32 %v2372_v17, %v1785_v52  ;;  %vm1792_vm7 = vweird.f32 %v2372_v17  ;;  %v2119_v52 = vld [vmem:[#allocation13 + $0x38] sm:$0xff] }
 0x6db   :  { %vm1793_vm9 = vmor %vm1791_vm8, %vm1792_vm7  ;;  %v1818_v21 = vor.u32 1.1754944e-38, %v1817_v0  ;;  %vm1816_vm14 = vcmp.eq.f32.partialorder %v1815_v12, 8.507059e+37 }
 0x6dc   :  { %v1788_v54 = vsub.f32 1.0, %v1787_v51  ;;  %v2114_v51 = vld [vmem:[#allocation13 + $0x10] sm:$0xff] }
 0x6de   :  { %v1789_v59 = vmul.f32 %v2372_v17, %v1788_v54  ;;  %v2113_v54 = vld [vmem:[#allocation13 + $0x8] sm:$0xff] }
 0x6df   :  { %v2374_v1 = vpop.eup %2373 }
 0x6e0   :  { %v1807_v38 = vmul.f32 %v2374_v1, %v1805_v25  ;;  %v1790_v8 = vadd.f32 %v2372_v17, %v1789_v59  ;;  %vm1812_vm11 = vweird.f32 %v2374_v1  ;;  %v1890_v25 = vpop.f32.mrf.mxu0 }
 0x6e1   :  { %vm1813_vm13 = vmor %vm1811_vm12, %vm1812_vm11 }
 0x6e2   :  { %v1808_v19 = vsub.f32 1.0, %v1807_v38  ;;  %v1794_v20 = vsel %vm1793_vm9, %v2372_v17, %v1790_v8  ;;  %v2115_v17 = vld [vmem:[#allocation13 + $0x18] sm:$0xff]  ;;  %v3644_v8 = vld [vmem:[#allocation41_spill] sm:$0xff] }
 0x6e3   :  { %v1799_v4 = vsel %vm1796_vm10, %v1798_v22, %v1794_v20 }
 0x6e4   :  { %v1822_v43 = vmul.f32 %v1821_v7, %v1799_v4  ;;  %v1809_v13 = vmul.f32 %v2374_v1, %v1808_v19 }
 0x6e6   :  { %v1823_v16 = vadd.f32 %v1822_v43, %v450_v34  ;;  %v1810_v33 = vadd.f32 %v2374_v1, %v1809_v13 }
 0x6e8   :  { %2375 = vtanh.f32 %v1823_v16  ;;  %v1814_v3 = vsel %vm1813_vm13, %v2374_v1, %v1810_v33  ;;  %v1893_v19 = vpop.f32.mrf.mxu0 }
 0x6e9   :  { %v1819_v10 = vsel %vm1816_vm14, %v1818_v21, %v1814_v3 }
 0x6ea   :  { %v1825_v11 = vsub.f32 1.0, %v1819_v10  ;;  %v1827_v28 = vmul.f32 %v1819_v10, %v3471_v18  ;;  %v2122_v18 = vld [vmem:[#allocation13 + $0x50] sm:$0xff] }
 0x6eb   :  { %2133 = vmatpush.msrb.mxu2 %v2122_v18 }
 0x6ed   :  { %2134 = vmatpush.msrb.mxu2 %v2121_v2 }
 0x6ee   :  { %v2376_v58 = vpop.eup %2375 }
 0x6ef   :  { %v1826_v41 = vmul.f32 %v2376_v58, %v1825_v11  ;;  %2135 = vmatpush.msrb.mxu2 %v2120_v35 }
 0x6f0   :  { %v1896_v16 = vpop.f32.mrf.mxu0 }
 0x6f1   :  { %v1828_v27 = vadd.f32 %v1827_v28, %v1826_v41  ;;  %2136 = vmatpush.msrb.mxu2 %v2119_v52 }
 0x6f3   :  { %v3490_v49 = vmul.f32 %v3485_v37, %v1828_v27  ;;  %2137 = vmatpush.msrb.mxu2 %v2118_v24 }
 0x6f5   :  { %1904 = vmatmul.f32.gmra.mxu0 %v3490_v49  ;;  %v1834_v55 = vadd.f32 %v1833_v62, %v3490_v49  ;;  %2138 = vmatpush.msrb.mxu2 %v2117_v30 }
 0x6f7   :  { %1940 = vmatmul.f32.vlgmr.msra.gmra.mxu1 %v1834_v55  ;;  %2185 = vst [vmem:[%s3571_s9 + $0x8] sm:$0xff] %v1834_v55  ;;  %2139 = vmatpush.msrb.mxu2 %v2116_v44 }
 0x6f8   :  { %v1899_v39 = vpop.f32.mrf.mxu0 }
 0x6f9   :  { %2140 = vmatpush.msrb.mxu2 %v2115_v17 }
 0x6fb   :  { %2141 = vmatpush.msrb.mxu2 %v2114_v51 }
 0x6fd   :  { %2142 = vmatpush.msrb.mxu2 %v2113_v54 }
 0x6ff   :  { %2143 = vmatpush.msrb.mxu2 %v2112_v57 }
 0x700   :  { %v1902_v44 = vpop.f32.mrf.mxu0 }
 0x774   :  { %v3498_v59 = vpop.f32.mrf.mxu1 }
 0x775   :  { %v1944_v1 = vmul.f32 %v3642_v63, %v3498_v59  ;;  %v1945_v38 = vmul.f32 %v3643_v46, %v3498_v59  ;;  %v1946_v22 = vmul.f32 %v3644_v8, %v3498_v59  ;;  %v1947_v20 = vmul.f32 %v3342_v53, %v3498_v59 }
 0x776   :  { %v1948_v0 = vmul.f32 %v3405_v26, %v3498_v59  ;;  %v1949_v58 = vmul.f32 %v3435_v6, %v3498_v59  ;;  %v1950_v48 = vmul.f32 %v3462_v50, %v3498_v59 }
 0x777   :  { %v1952_v7 = vadd.f32 %v1944_v1, %v1884_v60  ;;  %v1953_v40 = vadd.f32 %v1945_v38, %v1887_v23  ;;  %v1954_v32 = vadd.f32 %v1946_v22, %v1890_v25  ;;  %v1955_v13 = vadd.f32 %v1947_v20, %v1893_v19 }
 0x778   :  { %v1956_v53 = vadd.f32 %v1948_v0, %v1896_v16  ;;  %v1957_v62 = vadd.f32 %v1949_v58, %v1899_v39  ;;  %v1958_v17 = vadd.f32 %v1950_v48, %v1902_v44  ;;  %v1951_v38 = vmul.f32 %v3485_v37, %v3498_v59 }
 0x779   :  { %v2241_v34 = vmul.f32 -1.442695, %v1952_v7  ;;  %v2242_v4 = vmul.f32 -1.442695, %v1953_v40  ;;  %v2243_v43 = vmul.f32 -1.442695, %v1954_v32  ;;  %v1905_v32 = vpop.f32.mrf.mxu0 }
 0x77a   :  { %v2244_v12 = vmul.f32 -1.442695, %v1955_v13  ;;  %v2245_v41 = vmul.f32 -1.442695, %v1956_v53  ;;  %v2246_v23 = vmul.f32 -1.442695, %v1957_v62 }
 0x77b   :  { %2377 = vpow2.f32 %v2241_v34  ;;  %v2247_v22 = vmul.f32 -1.442695, %v1958_v17 }
 0x77c   :  { %2379 = vpow2.f32 %v2242_v4  ;;  %v1959_v4 = vadd.f32 %v1951_v38, %v1905_v32 }
 0x77d   :  { %2381 = vpow2.f32 %v2243_v43 }
 0x77e   :  { %2383 = vpow2.f32 %v2244_v12 }
 0x781   :  { %v2378_v33 = vpop.eup %2377 }
 0x782   :  { %v2380_v3 = vpop.eup %2379  ;;  %v1984_v21 = vadd.f32 1.0, %v2378_v33  ;;  %v2248_v33 = vmul.f32 -1.442695, %v1959_v4 }
 0x783   :  { %v2382_v10 = vpop.eup %2381  ;;  %v1985_v61 = vadd.f32 1.0, %v2380_v3 }
 0x784   :  { %2385 = vrcp.f32 %v1984_v21  ;;  %v3510_v11 = vadd.f32 1.0, %v2382_v10  ;;  %v2384_v26 = vpop.eup %2383  ;;  %v2003_v6 = vand.u32 2147483648, %v1984_v21  ;;  %v2001_v2 = vand.u32 2147483647, %v1984_v21 }
 0x785   :  { %2387 = vrcp.f32 %v1985_v61  ;;  %v3515_v60 = vadd.f32 1.0, %v2384_v26  ;;  %vm1997_vm1 = vweird.f32 %v1984_v21  ;;  %v2018_v46 = vand.u32 2147483648, %v1985_v61 }
 0x786   :  { %2389 = vrcp.f32 %v3510_v11  ;;  %v2004_v25 = vor.u32 1.1754944e-38, %v2003_v6  ;;  %vm2002_vm3 = vcmp.eq.f32.partialorder %v2001_v2, 8.507059e+37  ;;  %vm2012_vm5 = vweird.f32 %v1985_v61 }
 0x787   :  { %2391 = vpow2.f32 %v2245_v41  ;;  %v2016_v8 = vand.u32 2147483647, %v1985_v61  ;;  %v2019_v34 = vor.u32 1.1754944e-38, %v2018_v46  ;;  %v2033_v12 = vand.u32 2147483648, %v3510_v11 }
 0x788   :  { %2393 = vrcp.f32 %v3515_v60  ;;  %vm2027_vm9 = vweird.f32 %v3510_v11  ;;  %v2031_v16 = vand.u32 2147483647, %v3510_v11  ;;  %v2048_v39 = vand.u32 2147483648, %v3515_v60 }
 0x789   :  { %2395 = vpow2.f32 %v2246_v23  ;;  %vm2017_vm7 = vcmp.eq.f32.partialorder %v2016_v8, 8.507059e+37  ;;  %vm2042_vm13 = vweird.f32 %v3515_v60 }
 0x78a   :  { %v2386_v28 = vpop.eup %2385  ;;  %vm2032_vm11 = vcmp.eq.f32.partialorder %v2031_v16, 8.507059e+37 }
 0x78b   :  { %v2388_v27 = vpop.eup %2387  ;;  %v1993_v55 = vmul.f32 %v2386_v28, %v1984_v21  ;;  %vm1998_vm0 = vweird.f32 %v2386_v28 }
 0x78c   :  { %v2008_v5 = vmul.f32 %v2388_v27, %v1985_v61  ;;  %v3517_v14 = vpop.eup %2389  ;;  %vm1999_vm2 = vmor %vm1997_vm1, %vm1998_vm0  ;;  %vm2013_vm4 = vweird.f32 %v2388_v27  ;;  %v2034_v61 = vor.u32 1.1754944e-38, %v2033_v12 }
 0x78d   :  { %v1994_v47 = vsub.f32 1.0, %v1993_v55  ;;  %v2392_v35 = vpop.eup %2391  ;;  %v2023_v30 = vmul.f32 %v3517_v14, %v3510_v11  ;;  %vm2014_vm6 = vmor %vm2012_vm5, %vm2013_vm4  ;;  %vm2028_vm8 = vweird.f32 %v3517_v14 }
 0x78e   :  { %v2009_v56 = vsub.f32 1.0, %v2008_v5  ;;  %v3524_v54 = vadd.f32 1.0, %v2392_v35  ;;  %v2394_v1 = vpop.eup %2393  ;;  %vm2029_vm10 = vmor %vm2027_vm9, %vm2028_vm8 }
 0x78f   :  { %v1995_v18 = vmul.f32 %v2386_v28, %v1994_v47  ;;  %v2024_v63 = vsub.f32 1.0, %v2023_v30  ;;  %v2396_v19 = vpop.eup %2395  ;;  %v2038_v40 = vmul.f32 %v2394_v1, %v3515_v60  ;;  %vm2043_vm12 = vweird.f32 %v2394_v1 }
 0x790   :  { %v2010_v24 = vmul.f32 %v2388_v27, %v2009_v56  ;;  %2397 = vrcp.f32 %v3524_v54  ;;  %v3531_v13 = vadd.f32 1.0, %v2396_v19  ;;  %vm2044_vm14 = vmor %vm2042_vm13, %vm2043_vm12  ;;  %v2063_v23 = vand.u32 2147483648, %v3524_v54 }
 0x791   :  { %v1996_v52 = vadd.f32 %v2386_v28, %v1995_v18  ;;  %v2025_v7 = vmul.f32 %v3517_v14, %v2024_v63  ;;  %2399 = vpow2.f32 %v2247_v22  ;;  %v2039_v59 = vsub.f32 1.0, %v2038_v40 }
 0x792   :  { %v2011_v57 = vadd.f32 %v2388_v27, %v2010_v24  ;;  %2401 = vrcp.f32 %v3531_v13  ;;  %vm2057_vm1 = vweird.f32 %v3524_v54  ;;  %v2064_v30 = vor.u32 1.1754944e-38, %v2063_v23 }
 0x793   :  { %v2000_v50 = vsel %vm1999_vm2, %v2386_v28, %v1996_v52  ;;  %v2026_v37 = vadd.f32 %v3517_v14, %v2025_v7  ;;  %v2040_v10 = vmul.f32 %v2394_v1, %v2039_v59  ;;  %2403 = vpow2.f32 %v2248_v33 }
 0x794   :  { %v2005_v51 = vsel %vm2002_vm3, %v2004_v25, %v2000_v50  ;;  %v2015_v20 = vsel %vm2014_vm6, %v2388_v27, %v2011_v57  ;;  %v2046_v27 = vand.u32 2147483647, %v3515_v60  ;;  %v2061_v60 = vand.u32 2147483647, %v3524_v54 }
 0x795   :  { %2144 = vmatmul.f32.vlgmr.msrb.gmra.mxu2 %v2005_v51  ;;  %v2020_v43 = vsel %vm2017_vm7, %v2019_v34, %v2015_v20  ;;  %v2030_v21 = vsel %vm2029_vm10, %v3517_v14, %v2026_v37  ;;  %v2041_v26 = vadd.f32 %v2394_v1, %v2040_v10  ;;  %v2049_v14 = vor.u32 1.1754944e-38, %v2048_v39 }
 0x796   :  { %v2398_v0 = vpop.eup %2397  ;;  %v2035_v58 = vsel %vm2032_vm11, %v2034_v61, %v2030_v21  ;;  %vm2047_vm15 = vcmp.eq.f32.partialorder %v2046_v27, 8.507059e+37  ;;  %vm2062_vm3 = vcmp.eq.f32.partialorder %v2061_v60, 8.507059e+37  ;;  %v2078_v51 = vand.u32 2147483648, %v3531_v13 }
 0x797   :  { %v2400_v3 = vpop.eup %2399  ;;  %v2053_v53 = vmul.f32 %v2398_v0, %v3524_v54  ;;  %v2045_v55 = vsel %vm2044_vm14, %v2394_v1, %v2041_v26  ;;  %vm2058_vm0 = vweird.f32 %v2398_v0  ;;  %vm2072_vm5 = vweird.f32 %v3531_v13 }
 0x798   :  { %v1990_v41 = vadd.f32 1.0, %v2400_v3  ;;  %v2402_v11 = vpop.eup %2401  ;;  %v2050_v48 = vsel %vm2047_vm15, %v2049_v14, %v2045_v55  ;;  %vm2059_vm2 = vmor %vm2057_vm1, %vm2058_vm0  ;;  %v2076_v57 = vand.u32 2147483647, %v3531_v13  ;;  %v2079_v46 = vor.u32 1.1754944e-38, %v2078_v51 }
 0x799   :  { %v2054_v28 = vsub.f32 1.0, %v2053_v53  ;;  %v2404_v62 = vpop.eup %2403  ;;  %v2068_v47 = vmul.f32 %v2402_v11, %v3531_v13  ;;  %vm2073_vm4 = vweird.f32 %v2402_v11 }
 0x79a   :  { %2405 = vrcp.f32 %v1990_v41  ;;  %v1991_v6 = vadd.f32 1.0, %v2404_v62  ;;  %vm2074_vm6 = vmor %vm2072_vm5, %vm2073_vm4  ;;  %vm2077_vm7 = vcmp.eq.f32.partialorder %v2076_v57, 8.507059e+37  ;;  %v2093_v19 = vand.u32 2147483648, %v1990_v41 }
 0x79b   :  { %v2055_v5 = vmul.f32 %v2398_v0, %v2054_v28  ;;  %v2069_v18 = vsub.f32 1.0, %v2068_v47  ;;  %vm2087_vm9 = vweird.f32 %v1990_v41  ;;  %v2091_v20 = vand.u32 2147483647, %v1990_v41 }
 0x79c   :  { %2407 = vrcp.f32 %v1991_v6  ;;  %v2094_v32 = vor.u32 1.1754944e-38, %v2093_v19  ;;  %vm2102_vm13 = vweird.f32 %v1991_v6  ;;  %v2106_v13 = vand.u32 2147483647, %v1991_v6 }
 0x79d   :  { %2147 = vmatmul.f32.gmra.mxu2 %v2020_v43  ;;  %v2056_v56 = vadd.f32 %v2398_v0, %v2055_v5  ;;  %v2070_v52 = vmul.f32 %v2402_v11, %v2069_v18  ;;  %vm2092_vm11 = vcmp.eq.f32.partialorder %v2091_v20, 8.507059e+37  ;;  %v2108_v43 = vand.u32 2147483648, %v1991_v6 }
 0x79e   :  { %vm2107_vm15 = vcmp.eq.f32.partialorder %v2106_v13, 8.507059e+37 }
 0x79f   :  { %v2060_v35 = vsel %vm2059_vm2, %v2398_v0, %v2056_v56  ;;  %v2071_v25 = vadd.f32 %v2402_v11, %v2070_v52  ;;  %v2109_v59 = vor.u32 1.1754944e-38, %v2108_v43 }
 0x7a0   :  { %v2406_v2 = vpop.eup %2405  ;;  %v2065_v44 = vsel %vm2062_vm3, %v2064_v30, %v2060_v35 }
 0x7a1   :  { %v2083_v24 = vmul.f32 %v2406_v2, %v1990_v41  ;;  %v2075_v54 = vsel %vm2074_vm6, %v2402_v11, %v2071_v25  ;;  %vm2088_vm8 = vweird.f32 %v2406_v2 }
 0x7a2   :  { %v2408_v50 = vpop.eup %2407  ;;  %v2080_v38 = vsel %vm2077_vm7, %v2079_v46, %v2075_v54  ;;  %vm2089_vm10 = vmor %vm2087_vm9, %vm2088_vm8 }
 0x7a3   :  { %v2084_v17 = vsub.f32 1.0, %v2083_v24  ;;  %v2098_v1 = vmul.f32 %v2408_v50, %v1991_v6  ;;  %vm2103_vm12 = vweird.f32 %v2408_v50 }
 0x7a4   :  { %vm2104_vm14 = vmor %vm2102_vm13, %vm2103_vm12 }
 0x7a5   :  { %2150 = vmatmul.f32.gmra.mxu2 %v2035_v58  ;;  %v2085_v63 = vmul.f32 %v2406_v2, %v2084_v17  ;;  %v2099_v22 = vsub.f32 1.0, %v2098_v1 }
 0x7a7   :  { %v2086_v8 = vadd.f32 %v2406_v2, %v2085_v63  ;;  %v2100_v40 = vmul.f32 %v2408_v50, %v2099_v22 }
 0x7a9   :  { %v2090_v7 = vsel %vm2089_vm10, %v2406_v2, %v2086_v8  ;;  %v2101_v4 = vadd.f32 %v2408_v50, %v2100_v40 }
 0x7aa   :  { %v2095_v34 = vsel %vm2092_vm11, %v2094_v32, %v2090_v7 }
 0x7ab   :  { %v2105_v37 = vsel %vm2104_vm14, %v2408_v50, %v2101_v4 }
 0x7ac   :  { %v2110_v0 = vsel %vm2107_vm15, %v2109_v59, %v2105_v37 }
 0x7ad   :  { %2153 = vmatmul.f32.gmra.mxu2 %v2050_v48 }
 0x7b5   :  { %2156 = vmatmul.f32.gmra.mxu2 %v2065_v44 }
 0x7bd   :  { %2159 = vmatmul.f32.gmra.mxu2 %v2080_v38 }
 0x7c5   :  { %2162 = vmatmul.f32.gmra.mxu2 %v2095_v34 }
 0x7cd   :  { %2165 = vmatmul.f32.gmra.mxu2 %v2110_v0 }
 0x818   :  { %v2145_v12 = vpop.f32.mrf.mxu2 }
 0x819   :  { %v2169_v61 = vmul.f32 %v2145_v12, %v3630_v42 }
 0x820   :  { %v2148_v16 = vpop.f32.mrf.mxu2 }
 0x821   :  { %v2170_v53 = vmul.f32 %v2148_v16, %v3631_v45 }
 0x823   :  { %v2177_v41 = vadd.f32 %v2170_v53, %v2169_v61 }
 0x828   :  { %v2151_v33 = vpop.f32.mrf.mxu2 }
 0x829   :  { %v2171_v58 = vmul.f32 %v2151_v33, %v3632_v36 }
 0x82b   :  { %v2178_v11 = vadd.f32 %v2177_v41, %v2171_v58 }
 0x830   :  { %v2154_v3 = vpop.f32.mrf.mxu2 }
 0x831   :  { %v2172_v26 = vmul.f32 %v2154_v3, %v3352_v15 }
 0x833   :  { %v2179_v27 = vadd.f32 %v2178_v11, %v2172_v26 }
 0x838   :  { %v2157_v21 = vpop.f32.mrf.mxu2 }
 0x839   :  { %v2173_v39 = vmul.f32 %v2157_v21, %v3410_v29 }
 0x83b   :  { %v2180_v55 = vadd.f32 %v2179_v27, %v2173_v39 }
 0x840   :  { %v2160_v10 = vpop.f32.mrf.mxu2 }
 0x841   :  { %v2174_v62 = vmul.f32 %v2160_v10, %v3440_v9 }
 0x843   :  { %v2181_v47 = vadd.f32 %v2180_v55, %v2174_v62 }
 0x848   :  { %v2163_v28 = vpop.f32.mrf.mxu2 }
 0x849   :  { %v2175_v5 = vmul.f32 %v2163_v28, %v3467_v31 }
 0x84b   :  { %v2182_v45 = vadd.f32 %v2181_v47, %v2175_v5 }
 0x850   :  { %v2166_v14 = vpop.f32.mrf.mxu2 }
 0x851   :  { %v2176_v42 = vmul.f32 %v2166_v14, %v3490_v49 }
 0x853   :  { %v2183_v48 = vadd.f32 %v2182_v45, %v2176_v42 }
 0x855   :  { %2184 = vst [vmem:[%s3571_s9] sm:$0xff] %v2183_v48 }
 0x856   :  { %2190 = vsyncpa [#allocation6], 1 }
 0x857   :  { %2191 = vsyncpa [#allocation8], 1 }
 0x858   :  { %2192 = vsyncpa [#allocation11], 1 }
 0x859   :  { %2193 = vsyncpa [#allocation14], 1 }

</bundles_post_ra>
